<compile_context>
chip_gen: v7x
topology: tpu7x:2x2x1
jax: 0.10.0
libtpu: 0.0.40
codegen_flags: <defaults>
</compile_context>

<pallas_src>
import numpy as np
import jax
import jax.numpy as jnp
from jax.experimental import pallas as pl
from jax.experimental.pallas import tpu as pltpu


# ----------------------------- parameters --------------------------------
def init_nerf_params(key, D=8, W=256, input_ch=3, input_ch_views=3,
                     output_ch=4, skips=(4,), use_viewdirs=False):
    """Deterministic params. Linear weights stored [in_features, out_features]."""
    skips = tuple(skips)

    def lin(k, fan_in, fan_out):
        kw, kb = jax.random.split(k)
        lim = 1.0 / np.sqrt(fan_in)
        w = jax.random.uniform(kw, (fan_in, fan_out), jnp.float32, -lim, lim)
        b = jax.random.uniform(kb, (1, fan_out), jnp.float32, -lim, lim)
        return w, b

    keys = jax.random.split(key, D + 8)
    params = {"pts": []}
    for i in range(D):
        fan_in = input_ch if i == 0 else (W + input_ch if (i - 1) in skips else W)
        params["pts"].append(lin(keys[i], fan_in, W))
    if use_viewdirs:
        params["feature"] = lin(keys[D + 0], W, W)
        params["alpha"] = lin(keys[D + 1], W, 1)
        params["views"] = lin(keys[D + 2], W + input_ch_views, W // 2)
        params["rgb"] = lin(keys[D + 3], W // 2, 3)
    else:
        params["output"] = lin(keys[D], W, output_ch)
    return params


# ------------------------- pure-JAX reference ----------------------------
def nerf_ref(params, x, *, D=8, W=256, input_ch=3, input_ch_views=3,
             skips=(4,), use_viewdirs=False):
    HIGH = jax.lax.Precision.HIGHEST
    pts = x[..., :input_ch]
    views = x[..., input_ch:input_ch + input_ch_views]
    h = pts
    for i in range(D):
        w, b = params["pts"][i]
        h = jnp.maximum(jnp.dot(h, w, precision=HIGH) + b, 0.0)
        if i in skips:
            h = jnp.concatenate([pts, h], axis=-1)
    if use_viewdirs:
        wa, ba = params["alpha"]
        alpha = jnp.dot(h, wa, precision=HIGH) + ba
        wf, bf = params["feature"]
        feat = jnp.dot(h, wf, precision=HIGH) + bf
        hv = jnp.concatenate([feat, views], axis=-1)
        wv, bv = params["views"]
        hv = jnp.maximum(jnp.dot(hv, wv, precision=HIGH) + bv, 0.0)
        wr, br = params["rgb"]
        rgb = jnp.dot(hv, wr, precision=HIGH) + br
        return jnp.concatenate([rgb, alpha], axis=-1)
    wo, bo = params["output"]
    return jnp.dot(h, wo, precision=HIGH) + bo


# ---------------------------- Pallas kernel -------------------------------
def make_nerf_forward(D=8, W=256, input_ch=3, input_ch_views=3, output_ch=4,
                      skips=(4,), use_viewdirs=False, tile_n=1024,
                      out_dtype=jnp.float32):
    """Builds forward(params, x) backed by a single Pallas kernel."""
    skips = tuple(skips)
    assert (D - 1) not in skips, "skip on the last pts layer is unsupported"
    c_in = input_ch + input_ch_views
    c_out = 4 if use_viewdirs else output_ch
    BF16 = jnp.bfloat16
    F32 = jnp.float32

    # ---- wrapper-side parameter prep: split skip weights, transpose tiny
    # output heads, cast MXU weights to bf16 (biases / tiny-K weights stay f32).
    def flatten_params(params):
        flat = []
        for i in range(D):
            w, b = params["pts"][i]
            if i == 0:
                flat += [w.astype(F32), b.astype(F32)]                    # (3,W) VPU
            elif (i - 1) in skips:
                # torch concat order is [input_pts, h]: rows [:input_ch] act on
                # pts, rows [input_ch:] act on h.
                flat += [w[input_ch:, :].astype(BF16),                    # (W,W) MXU
                         w[:input_ch, :].astype(F32),                     # (3,W) VPU
                         b.astype(F32)]
            else:
                flat += [w.astype(BF16), b.astype(F32)]                   # (W,W) MXU
        if use_viewdirs:
            wf, bf = params["feature"]
            wa, ba = params["alpha"]
            wv, bv = params["views"]
            wr, br = params["rgb"]
            flat += [wf.astype(BF16), bf.astype(F32),                     # (W,W) MXU
                     wa.T.astype(F32), ba.astype(F32),                    # (1,W) VPU
                     wv[:W, :].astype(BF16),                              # (W,W/2) MXU
                     wv[W:, :].astype(F32),                               # (3,W/2) VPU
                     bv.astype(F32),
                     wr.T.astype(F32), br.astype(F32)]                    # (3,W/2) VPU
        else:
            wo, bo = params["output"]
            flat += [wo.T.astype(F32), bo.astype(F32)]                    # (c_out,W) VPU
        return flat

    # (TN, k) x (k, F) with tiny k: VPU broadcast multiply-accumulate (f32).
    def _small_dot(a, w):
        acc = a[:, 0:1] * w[0:1, :]
        for j in range(1, w.shape[0]):
            acc = acc + a[:, j:j + 1] * w[j:j + 1, :]
        return acc

    # MXU matmul: bf16 operands, f32 accumulation.
    def _mxu_dot(a_f32, w_bf16):
        return jnp.dot(a_f32.astype(BF16), w_bf16,
                       preferred_element_type=jnp.float32)

    # Column j of (h @ w_t.T + b): VPU multiply + XLU lane-reduce, so narrow
    # output heads (1..4 lanes) don't consume full MXU weight passes.
    def _col_out(h, w_t, b, j):
        return (jnp.sum(h * w_t[j:j + 1, :], axis=-1, keepdims=True)
                + b[:, j:j + 1])

    def kernel(*refs):
        x_ref = refs[0]
        prm = refs[1:-1]
        out_ref = refs[-1]

        pts = x_ref[:, :input_ch]
        views = x_ref[:, input_ch:]

        idx = 0

        def nxt():
            nonlocal idx
            v = prm[idx][...]
            idx += 1
            return v

        h = None
        for i in range(D):
            if i == 0:
                w0, b0 = nxt(), nxt()
                z = _small_dot(pts, w0) + b0
            elif (i - 1) in skips:
                w_h, w_pts, b = nxt(), nxt(), nxt()
                z = _mxu_dot(h, w_h) + _small_dot(pts, w_pts) + b
            else:
                w, b = nxt(), nxt()
                z = _mxu_dot(h, w) + b
            h = jnp.maximum(z, 0.0)

        if use_viewdirs:
            wf, bf, wa_t, ba = nxt(), nxt(), nxt(), nxt()
            wv_f, wv_v, bv, wr_t, br = nxt(), nxt(), nxt(), nxt(), nxt()
            alpha = _col_out(h, wa_t, ba, 0)                      # (TN,1) VPU/XLU
            feat = _mxu_dot(h, wf) + bf
            hv = jnp.maximum(
                _mxu_dot(feat, wv_f) + _small_dot(views, wv_v) + bv, 0.0)
            for j in range(3):                                    # rgb, VPU/XLU
                out_ref[:, j:j + 1] = _col_out(hv, wr_t, br, j).astype(out_ref.dtype)
            out_ref[:, 3:4] = alpha.astype(out_ref.dtype)
        else:
            wo_t, bo = nxt(), nxt()
            for j in range(output_ch):
                out_ref[:, j:j + 1] = _col_out(h, wo_t, bo, j).astype(out_ref.dtype)

    def forward(params, x):
        x = jnp.asarray(x, jnp.float32)
        assert x.shape[-1] == c_in, f"expected last dim {c_in}, got {x.shape[-1]}"
        lead = x.shape[:-1]
        n = int(np.prod(lead)) if lead else 1
        xf = x.reshape(n, c_in)

        # Auto-shrink the row tile so small batches still give >= 2 grid blocks
        # (feeds both v7x TensorCores); floor at 256 (multiple of the 256-wide
        # v6e/v7x MXU and of the (8,128) layout quantum).
        tile = tile_n
        while tile >= 512 and n < 2 * tile:
            tile //= 2

        n_blocks = pl.cdiv(n, tile)
        n_pad = n_blocks * tile
        if n_pad != n:
            xf = jnp.pad(xf, ((0, n_pad - n), (0, 0)))

        flat = flatten_params(params)

        in_specs = [pl.BlockSpec((tile, c_in), lambda i: (i, 0))]
        # Whole-array blocks with constant index_map: weights are DMA'd once
        # and stay VMEM-resident across the (parallel) row-tile grid.
        for p in flat:
            in_specs.append(pl.BlockSpec(p.shape, lambda i: (0, 0)))

        out = pl.pallas_call(
            kernel,
            out_shape=jax.ShapeDtypeStruct((n_pad, c_out), out_dtype),
            grid_spec=pltpu.PrefetchScalarGridSpec(
                num_scalar_prefetch=0,
                grid=(n_blocks,),
                in_specs=in_specs,
                out_specs=pl.BlockSpec((tile, c_out), lambda i: (i, 0)),
            ),
            compiler_params=pltpu.CompilerParams(
                dimension_semantics=("parallel",)),
        )(xf, *flat)

        return out[:n].reshape(*lead, c_out)

    return forward


# -------------------------------- test ------------------------------------
if __name__ == "__main__":
    D, W = 8, 256
    input_ch, input_ch_views, output_ch = 3, 3, 4
    skips = (4,)

    key = jax.random.PRNGKey(0)
    k_par, k_par_v, k_x = jax.random.split(key, 3)

    # 2 rays x 160 samples x (3 pts + 3 view dirs) = 320 rows -> exercises the
    # multi-step grid + ragged cdiv padding (320 -> 384 at tile_n=128).
    B, S = 2, 160
    x = jax.random.normal(k_x, (B, S, input_ch + input_ch_views), jnp.float32)

    # ---- use_viewdirs=False (torch default), explicit small tile ----
    params = init_nerf_params(k_par, D=D, W=W, input_ch=input_ch,
                              input_ch_views=input_ch_views,
                              output_ch=output_ch, skips=skips,
                              use_viewdirs=False)
    fwd = make_nerf_forward(D=D, W=W, input_ch=input_ch,
                            input_ch_views=input_ch_views, output_ch=output_ch,
                            skips=skips, use_viewdirs=False, tile_n=128)
    out = fwd(params, x)
    jax.block_until_ready(out)
    ref = nerf_ref(params, x, D=D, W=W, input_ch=input_ch,
                   input_ch_views=input_ch_views, skips=skips,
                   use_viewdirs=False)
    assert out.shape == (B, S, output_ch)
    err = float(np.max(np.abs(np.asarray(out) - np.asarray(ref))))
    # bf16 MXU operands vs f32 HIGHEST reference: expect ~1e-3 abs error.
    assert np.allclose(np.asarray(out), np.asarray(ref), atol=1e-2, rtol=2e-2), err

    # ---- use_viewdirs=True, default (auto-shrunk) tile ----
    params_v = init_nerf_params(k_par_v, D=D, W=W, input_ch=input_ch,
                                input_ch_views=input_ch_views,
                                output_ch=output_ch, skips=skips,
                                use_viewdirs=True)
    fwd_v = make_nerf_forward(D=D, W=W, input_ch=input_ch,
                              input_ch_views=input_ch_views,
                              output_ch=output_ch, skips=skips,
                              use_viewdirs=True)
    out_v = fwd_v(params_v, x)
    jax.block_until_ready(out_v)
    ref_v = nerf_ref(params_v, x, D=D, W=W, input_ch=input_ch,
                     input_ch_views=input_ch_views, skips=skips,
                     use_viewdirs=True)
    assert out_v.shape == (B, S, 4)
    err_v = float(np.max(np.abs(np.asarray(out_v) - np.asarray(ref_v))))
    assert np.allclose(np.asarray(out_v), np.asarray(ref_v), atol=1e-2, rtol=2e-2), err_v

    print("KERNEL_OK")
</pallas_src>

<mosaic_0001>
module attributes {stable_mosaic.version = 11 : i64} {
  func.func @kernel(%arg0: i32, %arg1: memref<128x6xf32, #tpu.memory_space<vmem>>, %arg2: memref<3x256xf32, #tpu.memory_space<vmem>>, %arg3: memref<1x256xf32, #tpu.memory_space<vmem>>, %arg4: memref<256x256xbf16, #tpu.memory_space<vmem>>, %arg5: memref<1x256xf32, #tpu.memory_space<vmem>>, %arg6: memref<256x256xbf16, #tpu.memory_space<vmem>>, %arg7: memref<1x256xf32, #tpu.memory_space<vmem>>, %arg8: memref<256x256xbf16, #tpu.memory_space<vmem>>, %arg9: memref<1x256xf32, #tpu.memory_space<vmem>>, %arg10: memref<256x256xbf16, #tpu.memory_space<vmem>>, %arg11: memref<1x256xf32, #tpu.memory_space<vmem>>, %arg12: memref<256x256xbf16, #tpu.memory_space<vmem>>, %arg13: memref<3x256xf32, #tpu.memory_space<vmem>>, %arg14: memref<1x256xf32, #tpu.memory_space<vmem>>, %arg15: memref<256x256xbf16, #tpu.memory_space<vmem>>, %arg16: memref<1x256xf32, #tpu.memory_space<vmem>>, %arg17: memref<256x256xbf16, #tpu.memory_space<vmem>>, %arg18: memref<1x256xf32, #tpu.memory_space<vmem>>, %arg19: memref<4x256xf32, #tpu.memory_space<vmem>>, %arg20: memref<1x4xf32, #tpu.memory_space<vmem>>, %arg21: memref<128x4xf32, #tpu.memory_space<vmem>>) attributes {dimension_semantics = [#tpu.dimension_semantics<parallel>], iteration_bounds = array<i64: 3>, scalar_prefetch = 0 : i64, scratch_operands = 0 : i64, tpu.core_type = #tpu.core_type<tc>, window_params = [{transform_indices = @transform_0, window_bounds = array<i64: 128, 6>}, {pipeline_mode = #tpu.pipeline_mode<synchronous>, transform_indices = @transform_1, window_bounds = array<i64: 3, 256>}, {pipeline_mode = #tpu.pipeline_mode<synchronous>, transform_indices = @transform_2, window_bounds = array<i64: 1, 256>}, {pipeline_mode = #tpu.pipeline_mode<synchronous>, transform_indices = @transform_3, window_bounds = array<i64: 256, 256>}, {pipeline_mode = #tpu.pipeline_mode<synchronous>, transform_indices = @transform_4, window_bounds = array<i64: 1, 256>}, {pipeline_mode = #tpu.pipeline_mode<synchronous>, transform_indices = @transform_5, window_bounds = array<i64: 256, 256>}, {pipeline_mode = #tpu.pipeline_mode<synchronous>, transform_indices = @transform_6, window_bounds = array<i64: 1, 256>}, {pipeline_mode = #tpu.pipeline_mode<synchronous>, transform_indices = @transform_7, window_bounds = array<i64: 256, 256>}, {pipeline_mode = #tpu.pipeline_mode<synchronous>, transform_indices = @transform_8, window_bounds = array<i64: 1, 256>}, {pipeline_mode = #tpu.pipeline_mode<synchronous>, transform_indices = @transform_9, window_bounds = array<i64: 256, 256>}, {pipeline_mode = #tpu.pipeline_mode<synchronous>, transform_indices = @transform_10, window_bounds = array<i64: 1, 256>}, {pipeline_mode = #tpu.pipeline_mode<synchronous>, transform_indices = @transform_11, window_bounds = array<i64: 256, 256>}, {pipeline_mode = #tpu.pipeline_mode<synchronous>, transform_indices = @transform_12, window_bounds = array<i64: 3, 256>}, {pipeline_mode = #tpu.pipeline_mode<synchronous>, transform_indices = @transform_13, window_bounds = array<i64: 1, 256>}, {pipeline_mode = #tpu.pipeline_mode<synchronous>, transform_indices = @transform_14, window_bounds = array<i64: 256, 256>}, {pipeline_mode = #tpu.pipeline_mode<synchronous>, transform_indices = @transform_15, window_bounds = array<i64: 1, 256>}, {pipeline_mode = #tpu.pipeline_mode<synchronous>, transform_indices = @transform_16, window_bounds = array<i64: 256, 256>}, {pipeline_mode = #tpu.pipeline_mode<synchronous>, transform_indices = @transform_17, window_bounds = array<i64: 1, 256>}, {pipeline_mode = #tpu.pipeline_mode<synchronous>, transform_indices = @transform_18, window_bounds = array<i64: 4, 256>}, {pipeline_mode = #tpu.pipeline_mode<synchronous>, transform_indices = @transform_19, window_bounds = array<i64: 1, 4>}, {transform_indices = @transform_20, window_bounds = array<i64: 128, 4>}]} {
    %c0 = arith.constant 0 : index
    %c0_0 = arith.constant 0 : index
    %0 = vector.load %arg1[%c0, %c0_0] : memref<128x6xf32, #tpu.memory_space<vmem>>, vector<128x3xf32>
    %c0_1 = arith.constant 0 : index
    %c0_2 = arith.constant 0 : index
    %1 = vector.load %arg2[%c0_1, %c0_2] : memref<3x256xf32, #tpu.memory_space<vmem>>, vector<3x256xf32>
    %c0_3 = arith.constant 0 : index
    %c0_4 = arith.constant 0 : index
    %2 = vector.load %arg3[%c0_3, %c0_4] : memref<1x256xf32, #tpu.memory_space<vmem>>, vector<1x256xf32>
    %3 = vector.extract_strided_slice %0 {offsets = [0, 0], sizes = [128, 1], strides = [1, 1]} : vector<128x3xf32> to vector<128x1xf32>
    %4 = vector.extract_strided_slice %1 {offsets = [0, 0], sizes = [1, 256], strides = [1, 1]} : vector<3x256xf32> to vector<1x256xf32>
    %5 = vector.broadcast %3 : vector<128x1xf32> to vector<128x256xf32>
    %6 = vector.broadcast %4 : vector<1x256xf32> to vector<128x256xf32>
    %7 = arith.mulf %5, %6 : vector<128x256xf32>
    %8 = vector.extract_strided_slice %0 {offsets = [0, 1], sizes = [128, 1], strides = [1, 1]} : vector<128x3xf32> to vector<128x1xf32>
    %9 = vector.extract_strided_slice %1 {offsets = [1, 0], sizes = [1, 256], strides = [1, 1]} : vector<3x256xf32> to vector<1x256xf32>
    %10 = vector.broadcast %8 : vector<128x1xf32> to vector<128x256xf32>
    %11 = vector.broadcast %9 : vector<1x256xf32> to vector<128x256xf32>
    %12 = arith.mulf %10, %11 : vector<128x256xf32>
    %13 = arith.addf %7, %12 : vector<128x256xf32>
    %14 = vector.extract_strided_slice %0 {offsets = [0, 2], sizes = [128, 1], strides = [1, 1]} : vector<128x3xf32> to vector<128x1xf32>
    %15 = vector.extract_strided_slice %1 {offsets = [2, 0], sizes = [1, 256], strides = [1, 1]} : vector<3x256xf32> to vector<1x256xf32>
    %16 = vector.broadcast %14 : vector<128x1xf32> to vector<128x256xf32>
    %17 = vector.broadcast %15 : vector<1x256xf32> to vector<128x256xf32>
    %18 = arith.mulf %16, %17 : vector<128x256xf32>
    %19 = arith.addf %13, %18 : vector<128x256xf32>
    %20 = vector.broadcast %2 : vector<1x256xf32> to vector<128x256xf32>
    %21 = arith.addf %19, %20 : vector<128x256xf32>
    %cst = arith.constant 0.000000e+00 : f32
    %22 = vector.broadcast %cst : f32 to vector<128x256xf32>
    %23 = arith.maximumf %21, %22 : vector<128x256xf32>
    %c0_5 = arith.constant 0 : index
    %c0_6 = arith.constant 0 : index
    %24 = vector.load %arg4[%c0_5, %c0_6] : memref<256x256xbf16, #tpu.memory_space<vmem>>, vector<256x256xbf16>
    %c0_7 = arith.constant 0 : index
    %c0_8 = arith.constant 0 : index
    %25 = vector.load %arg5[%c0_7, %c0_8] : memref<1x256xf32, #tpu.memory_space<vmem>>, vector<1x256xf32>
    %26 = arith.truncf %23 : vector<128x256xf32> to vector<128x256xbf16>
    %cst_9 = arith.constant dense<0.000000e+00> : vector<128x256xf32>
    %27 = tpu.matmul %26, %24, %cst_9 {dimension_numbers = #tpu.dot_dimension_numbers<[1], [0], [0], [1], [0, 0, 1, 1], [], []>} : vector<128x256xbf16>, vector<256x256xbf16>, vector<128x256xf32> -> vector<128x256xf32>
    %28 = vector.broadcast %25 : vector<1x256xf32> to vector<128x256xf32>
    %29 = arith.addf %27, %28 : vector<128x256xf32>
    %cst_10 = arith.constant 0.000000e+00 : f32
    %30 = vector.broadcast %cst_10 : f32 to vector<128x256xf32>
    %31 = arith.maximumf %29, %30 : vector<128x256xf32>
    %c0_11 = arith.constant 0 : index
    %c0_12 = arith.constant 0 : index
    %32 = vector.load %arg6[%c0_11, %c0_12] : memref<256x256xbf16, #tpu.memory_space<vmem>>, vector<256x256xbf16>
    %c0_13 = arith.constant 0 : index
    %c0_14 = arith.constant 0 : index
    %33 = vector.load %arg7[%c0_13, %c0_14] : memref<1x256xf32, #tpu.memory_space<vmem>>, vector<1x256xf32>
    %34 = arith.truncf %31 : vector<128x256xf32> to vector<128x256xbf16>
    %cst_15 = arith.constant dense<0.000000e+00> : vector<128x256xf32>
    %35 = tpu.matmul %34, %32, %cst_15 {dimension_numbers = #tpu.dot_dimension_numbers<[1], [0], [0], [1], [0, 0, 1, 1], [], []>} : vector<128x256xbf16>, vector<256x256xbf16>, vector<128x256xf32> -> vector<128x256xf32>
    %36 = vector.broadcast %33 : vector<1x256xf32> to vector<128x256xf32>
    %37 = arith.addf %35, %36 : vector<128x256xf32>
    %cst_16 = arith.constant 0.000000e+00 : f32
    %38 = vector.broadcast %cst_16 : f32 to vector<128x256xf32>
    %39 = arith.maximumf %37, %38 : vector<128x256xf32>
    %c0_17 = arith.constant 0 : index
    %c0_18 = arith.constant 0 : index
    %40 = vector.load %arg8[%c0_17, %c0_18] : memref<256x256xbf16, #tpu.memory_space<vmem>>, vector<256x256xbf16>
    %c0_19 = arith.constant 0 : index
    %c0_20 = arith.constant 0 : index
    %41 = vector.load %arg9[%c0_19, %c0_20] : memref<1x256xf32, #tpu.memory_space<vmem>>, vector<1x256xf32>
    %42 = arith.truncf %39 : vector<128x256xf32> to vector<128x256xbf16>
    %cst_21 = arith.constant dense<0.000000e+00> : vector<128x256xf32>
    %43 = tpu.matmul %42, %40, %cst_21 {dimension_numbers = #tpu.dot_dimension_numbers<[1], [0], [0], [1], [0, 0, 1, 1], [], []>} : vector<128x256xbf16>, vector<256x256xbf16>, vector<128x256xf32> -> vector<128x256xf32>
    %44 = vector.broadcast %41 : vector<1x256xf32> to vector<128x256xf32>
    %45 = arith.addf %43, %44 : vector<128x256xf32>
    %cst_22 = arith.constant 0.000000e+00 : f32
    %46 = vector.broadcast %cst_22 : f32 to vector<128x256xf32>
    %47 = arith.maximumf %45, %46 : vector<128x256xf32>
    %c0_23 = arith.constant 0 : index
    %c0_24 = arith.constant 0 : index
    %48 = vector.load %arg10[%c0_23, %c0_24] : memref<256x256xbf16, #tpu.memory_space<vmem>>, vector<256x256xbf16>
    %c0_25 = arith.constant 0 : index
    %c0_26 = arith.constant 0 : index
    %49 = vector.load %arg11[%c0_25, %c0_26] : memref<1x256xf32, #tpu.memory_space<vmem>>, vector<1x256xf32>
    %50 = arith.truncf %47 : vector<128x256xf32> to vector<128x256xbf16>
    %cst_27 = arith.constant dense<0.000000e+00> : vector<128x256xf32>
    %51 = tpu.matmul %50, %48, %cst_27 {dimension_numbers = #tpu.dot_dimension_numbers<[1], [0], [0], [1], [0, 0, 1, 1], [], []>} : vector<128x256xbf16>, vector<256x256xbf16>, vector<128x256xf32> -> vector<128x256xf32>
    %52 = vector.broadcast %49 : vector<1x256xf32> to vector<128x256xf32>
    %53 = arith.addf %51, %52 : vector<128x256xf32>
    %cst_28 = arith.constant 0.000000e+00 : f32
    %54 = vector.broadcast %cst_28 : f32 to vector<128x256xf32>
    %55 = arith.maximumf %53, %54 : vector<128x256xf32>
    %c0_29 = arith.constant 0 : index
    %c0_30 = arith.constant 0 : index
    %56 = vector.load %arg12[%c0_29, %c0_30] : memref<256x256xbf16, #tpu.memory_space<vmem>>, vector<256x256xbf16>
    %c0_31 = arith.constant 0 : index
    %c0_32 = arith.constant 0 : index
    %57 = vector.load %arg13[%c0_31, %c0_32] : memref<3x256xf32, #tpu.memory_space<vmem>>, vector<3x256xf32>
    %c0_33 = arith.constant 0 : index
    %c0_34 = arith.constant 0 : index
    %58 = vector.load %arg14[%c0_33, %c0_34] : memref<1x256xf32, #tpu.memory_space<vmem>>, vector<1x256xf32>
    %59 = arith.truncf %55 : vector<128x256xf32> to vector<128x256xbf16>
    %cst_35 = arith.constant dense<0.000000e+00> : vector<128x256xf32>
    %60 = tpu.matmul %59, %56, %cst_35 {dimension_numbers = #tpu.dot_dimension_numbers<[1], [0], [0], [1], [0, 0, 1, 1], [], []>} : vector<128x256xbf16>, vector<256x256xbf16>, vector<128x256xf32> -> vector<128x256xf32>
    %61 = vector.extract_strided_slice %0 {offsets = [0, 0], sizes = [128, 1], strides = [1, 1]} : vector<128x3xf32> to vector<128x1xf32>
    %62 = vector.extract_strided_slice %57 {offsets = [0, 0], sizes = [1, 256], strides = [1, 1]} : vector<3x256xf32> to vector<1x256xf32>
    %63 = vector.broadcast %61 : vector<128x1xf32> to vector<128x256xf32>
    %64 = vector.broadcast %62 : vector<1x256xf32> to vector<128x256xf32>
    %65 = arith.mulf %63, %64 : vector<128x256xf32>
    %66 = vector.extract_strided_slice %0 {offsets = [0, 1], sizes = [128, 1], strides = [1, 1]} : vector<128x3xf32> to vector<128x1xf32>
    %67 = vector.extract_strided_slice %57 {offsets = [1, 0], sizes = [1, 256], strides = [1, 1]} : vector<3x256xf32> to vector<1x256xf32>
    %68 = vector.broadcast %66 : vector<128x1xf32> to vector<128x256xf32>
    %69 = vector.broadcast %67 : vector<1x256xf32> to vector<128x256xf32>
    %70 = arith.mulf %68, %69 : vector<128x256xf32>
    %71 = arith.addf %65, %70 : vector<128x256xf32>
    %72 = vector.extract_strided_slice %0 {offsets = [0, 2], sizes = [128, 1], strides = [1, 1]} : vector<128x3xf32> to vector<128x1xf32>
    %73 = vector.extract_strided_slice %57 {offsets = [2, 0], sizes = [1, 256], strides = [1, 1]} : vector<3x256xf32> to vector<1x256xf32>
    %74 = vector.broadcast %72 : vector<128x1xf32> to vector<128x256xf32>
    %75 = vector.broadcast %73 : vector<1x256xf32> to vector<128x256xf32>
    %76 = arith.mulf %74, %75 : vector<128x256xf32>
    %77 = arith.addf %71, %76 : vector<128x256xf32>
    %78 = arith.addf %60, %77 : vector<128x256xf32>
    %79 = vector.broadcast %58 : vector<1x256xf32> to vector<128x256xf32>
    %80 = arith.addf %78, %79 : vector<128x256xf32>
    %cst_36 = arith.constant 0.000000e+00 : f32
    %81 = vector.broadcast %cst_36 : f32 to vector<128x256xf32>
    %82 = arith.maximumf %80, %81 : vector<128x256xf32>
    %c0_37 = arith.constant 0 : index
    %c0_38 = arith.constant 0 : index
    %83 = vector.load %arg15[%c0_37, %c0_38] : memref<256x256xbf16, #tpu.memory_space<vmem>>, vector<256x256xbf16>
    %c0_39 = arith.constant 0 : index
    %c0_40 = arith.constant 0 : index
    %84 = vector.load %arg16[%c0_39, %c0_40] : memref<1x256xf32, #tpu.memory_space<vmem>>, vector<1x256xf32>
    %85 = arith.truncf %82 : vector<128x256xf32> to vector<128x256xbf16>
    %cst_41 = arith.constant dense<0.000000e+00> : vector<128x256xf32>
    %86 = tpu.matmul %85, %83, %cst_41 {dimension_numbers = #tpu.dot_dimension_numbers<[1], [0], [0], [1], [0, 0, 1, 1], [], []>} : vector<128x256xbf16>, vector<256x256xbf16>, vector<128x256xf32> -> vector<128x256xf32>
    %87 = vector.broadcast %84 : vector<1x256xf32> to vector<128x256xf32>
    %88 = arith.addf %86, %87 : vector<128x256xf32>
    %cst_42 = arith.constant 0.000000e+00 : f32
    %89 = vector.broadcast %cst_42 : f32 to vector<128x256xf32>
    %90 = arith.maximumf %88, %89 : vector<128x256xf32>
    %c0_43 = arith.constant 0 : index
    %c0_44 = arith.constant 0 : index
    %91 = vector.load %arg17[%c0_43, %c0_44] : memref<256x256xbf16, #tpu.memory_space<vmem>>, vector<256x256xbf16>
    %c0_45 = arith.constant 0 : index
    %c0_46 = arith.constant 0 : index
    %92 = vector.load %arg18[%c0_45, %c0_46] : memref<1x256xf32, #tpu.memory_space<vmem>>, vector<1x256xf32>
    %93 = arith.truncf %90 : vector<128x256xf32> to vector<128x256xbf16>
    %cst_47 = arith.constant dense<0.000000e+00> : vector<128x256xf32>
    %94 = tpu.matmul %93, %91, %cst_47 {dimension_numbers = #tpu.dot_dimension_numbers<[1], [0], [0], [1], [0, 0, 1, 1], [], []>} : vector<128x256xbf16>, vector<256x256xbf16>, vector<128x256xf32> -> vector<128x256xf32>
    %95 = vector.broadcast %92 : vector<1x256xf32> to vector<128x256xf32>
    %96 = arith.addf %94, %95 : vector<128x256xf32>
    %cst_48 = arith.constant 0.000000e+00 : f32
    %97 = vector.broadcast %cst_48 : f32 to vector<128x256xf32>
    %98 = arith.maximumf %96, %97 : vector<128x256xf32>
    %c0_49 = arith.constant 0 : index
    %c0_50 = arith.constant 0 : index
    %99 = vector.load %arg19[%c0_49, %c0_50] : memref<4x256xf32, #tpu.memory_space<vmem>>, vector<4x256xf32>
    %c0_51 = arith.constant 0 : index
    %c0_52 = arith.constant 0 : index
    %100 = vector.load %arg20[%c0_51, %c0_52] : memref<1x4xf32, #tpu.memory_space<vmem>>, vector<1x4xf32>
    %101 = vector.extract_strided_slice %99 {offsets = [0, 0], sizes = [1, 256], strides = [1, 1]} : vector<4x256xf32> to vector<1x256xf32>
    %102 = vector.broadcast %101 : vector<1x256xf32> to vector<128x256xf32>
    %103 = arith.mulf %98, %102 : vector<128x256xf32>
    %cst_53 = arith.constant dense<0.000000e+00> : vector<128xf32>
    %104 = vector.multi_reduction <add>, %103, %cst_53 [1] : vector<128x256xf32> to vector<128xf32>
    %105 = vector.shape_cast %104 : vector<128xf32> to vector<128x1xf32>
    %106 = vector.extract_strided_slice %100 {offsets = [0, 0], sizes = [1, 1], strides = [1, 1]} : vector<1x4xf32> to vector<1x1xf32>
    %107 = vector.broadcast %106 : vector<1x1xf32> to vector<128x1xf32>
    %108 = arith.addf %105, %107 : vector<128x1xf32>
    %c0_54 = arith.constant 0 : index
    %c0_55 = arith.constant 0 : index
    %109 = vector.load %arg21[%c0_54, %c0_55] : memref<128x4xf32, #tpu.memory_space<vmem>>, vector<128x1xf32>
    tpu.vector_store %arg21[%c0_54, %c0_55], %108 {strides = array<i32>} : memref<128x4xf32, #tpu.memory_space<vmem>>, vector<128x1xf32>,
    %110 = vector.extract_strided_slice %99 {offsets = [1, 0], sizes = [1, 256], strides = [1, 1]} : vector<4x256xf32> to vector<1x256xf32>
    %111 = vector.broadcast %110 : vector<1x256xf32> to vector<128x256xf32>
    %112 = arith.mulf %98, %111 : vector<128x256xf32>
    %cst_56 = arith.constant dense<0.000000e+00> : vector<128xf32>
    %113 = vector.multi_reduction <add>, %112, %cst_56 [1] : vector<128x256xf32> to vector<128xf32>
    %114 = vector.shape_cast %113 : vector<128xf32> to vector<128x1xf32>
    %115 = vector.extract_strided_slice %100 {offsets = [0, 1], sizes = [1, 1], strides = [1, 1]} : vector<1x4xf32> to vector<1x1xf32>
    %116 = vector.broadcast %115 : vector<1x1xf32> to vector<128x1xf32>
    %117 = arith.addf %114, %116 : vector<128x1xf32>
    %c0_57 = arith.constant 0 : index
    %c1 = arith.constant 1 : index
    %118 = vector.load %arg21[%c0_57, %c1] : memref<128x4xf32, #tpu.memory_space<vmem>>, vector<128x1xf32>
    tpu.vector_store %arg21[%c0_57, %c1], %117 {strides = array<i32>} : memref<128x4xf32, #tpu.memory_space<vmem>>, vector<128x1xf32>,
    %119 = vector.extract_strided_slice %99 {offsets = [2, 0], sizes = [1, 256], strides = [1, 1]} : vector<4x256xf32> to vector<1x256xf32>
    %120 = vector.broadcast %119 : vector<1x256xf32> to vector<128x256xf32>
    %121 = arith.mulf %98, %120 : vector<128x256xf32>
    %cst_58 = arith.constant dense<0.000000e+00> : vector<128xf32>
    %122 = vector.multi_reduction <add>, %121, %cst_58 [1] : vector<128x256xf32> to vector<128xf32>
    %123 = vector.shape_cast %122 : vector<128xf32> to vector<128x1xf32>
    %124 = vector.extract_strided_slice %100 {offsets = [0, 2], sizes = [1, 1], strides = [1, 1]} : vector<1x4xf32> to vector<1x1xf32>
    %125 = vector.broadcast %124 : vector<1x1xf32> to vector<128x1xf32>
    %126 = arith.addf %123, %125 : vector<128x1xf32>
    %c0_59 = arith.constant 0 : index
    %c2 = arith.constant 2 : index
    %127 = vector.load %arg21[%c0_59, %c2] : memref<128x4xf32, #tpu.memory_space<vmem>>, vector<128x1xf32>
    tpu.vector_store %arg21[%c0_59, %c2], %126 {strides = array<i32>} : memref<128x4xf32, #tpu.memory_space<vmem>>, vector<128x1xf32>,
    %128 = vector.extract_strided_slice %99 {offsets = [3, 0], sizes = [1, 256], strides = [1, 1]} : vector<4x256xf32> to vector<1x256xf32>
    %129 = vector.broadcast %128 : vector<1x256xf32> to vector<128x256xf32>
    %130 = arith.mulf %98, %129 : vector<128x256xf32>
    %cst_60 = arith.constant dense<0.000000e+00> : vector<128xf32>
    %131 = vector.multi_reduction <add>, %130, %cst_60 [1] : vector<128x256xf32> to vector<128xf32>
    %132 = vector.shape_cast %131 : vector<128xf32> to vector<128x1xf32>
    %133 = vector.extract_strided_slice %100 {offsets = [0, 3], sizes = [1, 1], strides = [1, 1]} : vector<1x4xf32> to vector<1x1xf32>
    %134 = vector.broadcast %133 : vector<1x1xf32> to vector<128x1xf32>
    %135 = arith.addf %132, %134 : vector<128x1xf32>
    %c0_61 = arith.constant 0 : index
    %c3 = arith.constant 3 : index
    %136 = vector.load %arg21[%c0_61, %c3] : memref<128x4xf32, #tpu.memory_space<vmem>>, vector<128x1xf32>
    tpu.vector_store %arg21[%c0_61, %c3], %135 {strides = array<i32>} : memref<128x4xf32, #tpu.memory_space<vmem>>, vector<128x1xf32>,
    return
  }
  func.func @transform_0(%arg0: i32) -> (i32, i32) {
    %c0_i32 = arith.constant 0 : i32
    %c0_i32_0 = arith.constant 0 : i32
    return %arg0, %c0_i32 : i32, i32
  }
  func.func @transform_1(%arg0: i32) -> (i32, i32) {
    %c0_i32 = arith.constant 0 : i32
    %c0_i32_0 = arith.constant 0 : i32
    %c0_i32_1 = arith.constant 0 : i32
    return %c0_i32, %c0_i32_0 : i32, i32
  }
  func.func @transform_2(%arg0: i32) -> (i32, i32) {
    %c0_i32 = arith.constant 0 : i32
    %c0_i32_0 = arith.constant 0 : i32
    %c0_i32_1 = arith.constant 0 : i32
    return %c0_i32, %c0_i32_0 : i32, i32
  }
  func.func @transform_3(%arg0: i32) -> (i32, i32) {
    %c0_i32 = arith.constant 0 : i32
    %c0_i32_0 = arith.constant 0 : i32
    %c0_i32_1 = arith.constant 0 : i32
    return %c0_i32, %c0_i32_0 : i32, i32
  }
  func.func @transform_4(%arg0: i32) -> (i32, i32) {
    %c0_i32 = arith.constant 0 : i32
    %c0_i32_0 = arith.constant 0 : i32
    %c0_i32_1 = arith.constant 0 : i32
    return %c0_i32, %c0_i32_0 : i32, i32
  }
  func.func @transform_5(%arg0: i32) -> (i32, i32) {
    %c0_i32 = arith.constant 0 : i32
    %c0_i32_0 = arith.constant 0 : i32
    %c0_i32_1 = arith.constant 0 : i32
    return %c0_i32, %c0_i32_0 : i32, i32
  }
  func.func @transform_6(%arg0: i32) -> (i32, i32) {
    %c0_i32 = arith.constant 0 : i32
    %c0_i32_0 = arith.constant 0 : i32
    %c0_i32_1 = arith.constant 0 : i32
    return %c0_i32, %c0_i32_0 : i32, i32
  }
  func.func @transform_7(%arg0: i32) -> (i32, i32) {
    %c0_i32 = arith.constant 0 : i32
    %c0_i32_0 = arith.constant 0 : i32
    %c0_i32_1 = arith.constant 0 : i32
    return %c0_i32, %c0_i32_0 : i32, i32
  }
  func.func @transform_8(%arg0: i32) -> (i32, i32) {
    %c0_i32 = arith.constant 0 : i32
    %c0_i32_0 = arith.constant 0 : i32
    %c0_i32_1 = arith.constant 0 : i32
    return %c0_i32, %c0_i32_0 : i32, i32
  }
  func.func @transform_9(%arg0: i32) -> (i32, i32) {
    %c0_i32 = arith.constant 0 : i32
    %c0_i32_0 = arith.constant 0 : i32
    %c0_i32_1 = arith.constant 0 : i32
    return %c0_i32, %c0_i32_0 : i32, i32
  }
  func.func @transform_10(%arg0: i32) -> (i32, i32) {
    %c0_i32 = arith.constant 0 : i32
    %c0_i32_0 = arith.constant 0 : i32
    %c0_i32_1 = arith.constant 0 : i32
    return %c0_i32, %c0_i32_0 : i32, i32
  }
  func.func @transform_11(%arg0: i32) -> (i32, i32) {
    %c0_i32 = arith.constant 0 : i32
    %c0_i32_0 = arith.constant 0 : i32
    %c0_i32_1 = arith.constant 0 : i32
    return %c0_i32, %c0_i32_0 : i32, i32
  }
  func.func @transform_12(%arg0: i32) -> (i32, i32) {
    %c0_i32 = arith.constant 0 : i32
    %c0_i32_0 = arith.constant 0 : i32
    %c0_i32_1 = arith.constant 0 : i32
    return %c0_i32, %c0_i32_0 : i32, i32
  }
  func.func @transform_13(%arg0: i32) -> (i32, i32) {
    %c0_i32 = arith.constant 0 : i32
    %c0_i32_0 = arith.constant 0 : i32
    %c0_i32_1 = arith.constant 0 : i32
    return %c0_i32, %c0_i32_0 : i32, i32
  }
  func.func @transform_14(%arg0: i32) -> (i32, i32) {
    %c0_i32 = arith.constant 0 : i32
    %c0_i32_0 = arith.constant 0 : i32
    %c0_i32_1 = arith.constant 0 : i32
    return %c0_i32, %c0_i32_0 : i32, i32
  }
  func.func @transform_15(%arg0: i32) -> (i32, i32) {
    %c0_i32 = arith.constant 0 : i32
    %c0_i32_0 = arith.constant 0 : i32
    %c0_i32_1 = arith.constant 0 : i32
    return %c0_i32, %c0_i32_0 : i32, i32
  }
  func.func @transform_16(%arg0: i32) -> (i32, i32) {
    %c0_i32 = arith.constant 0 : i32
    %c0_i32_0 = arith.constant 0 : i32
    %c0_i32_1 = arith.constant 0 : i32
    return %c0_i32, %c0_i32_0 : i32, i32
  }
  func.func @transform_17(%arg0: i32) -> (i32, i32) {
    %c0_i32 = arith.constant 0 : i32
    %c0_i32_0 = arith.constant 0 : i32
    %c0_i32_1 = arith.constant 0 : i32
    return %c0_i32, %c0_i32_0 : i32, i32
  }
  func.func @transform_18(%arg0: i32) -> (i32, i32) {
    %c0_i32 = arith.constant 0 : i32
    %c0_i32_0 = arith.constant 0 : i32
    %c0_i32_1 = arith.constant 0 : i32
    return %c0_i32, %c0_i32_0 : i32, i32
  }
  func.func @transform_19(%arg0: i32) -> (i32, i32) {
    %c0_i32 = arith.constant 0 : i32
    %c0_i32_0 = arith.constant 0 : i32
    %c0_i32_1 = arith.constant 0 : i32
    return %c0_i32, %c0_i32_0 : i32, i32
  }
  func.func @transform_20(%arg0: i32) -> (i32, i32) {
    %c0_i32 = arith.constant 0 : i32
    %c0_i32_0 = arith.constant 0 : i32
    return %arg0, %c0_i32 : i32, i32
  }
}

</mosaic_0001>

<bundles_post_ra>
// kernel: tpu_custom_call.1
= control target key start
LH: loop header
LB: loop body
LE: loop exit
PB: predicated region body
PF: predicated region fallthrough
CT: control target
= control target key end

     0   :  { %s7253_s0 = inlined_call_operand.vmem [shape: f32[384,6], index: 0, kind: input, shape index: {}]   ;;  %s7254_s1 = inlined_call_operand.vmem [shape: f32[3,256], index: 1, kind: input, shape index: {}]   ;;  %s7255_s2 = inlined_call_operand.vmem [shape: f32[1,256], index: 2, kind: input, shape index: {}]   ;;  %s7256_s3 = inlined_call_operand.vmem [shape: bf16[256,256], index: 3, kind: input, shape index: {}]   ;;  %s7257_s4 = inlined_call_operand.vmem [shape: f32[1,256], index: 4, kind: input, shape index: {}]   ;;  %s7258_s5 = inlined_call_operand.hbm [shape: bf16[256,256], index: 5, kind: input, shape index: {}]   ;;  %s7259_s6 = inlined_call_operand.vmem [shape: f32[1,256], index: 6, kind: input, shape index: {}]   ;;  %s7260_s7 = inlined_call_operand.hbm [shape: bf16[256,256], index: 7, kind: input, shape index: {}]   ;;  %s7261_s8 = inlined_call_operand.vmem [shape: f32[1,256], index: 8, kind: input, shape index: {}]   ;;  %s7262_s9 = inlined_call_operand.hbm [shape: bf16[256,256], index: 9, kind: input, shape index: {}]   ;;  %s7263_s10 = inlined_call_operand.vmem [shape: f32[1,256], index: 10, kind: input, shape index: {}]   ;;  %s7264_s11 = inlined_call_operand.hbm [shape: bf16[256,256], index: 11, kind: input, shape index: {}]   ;;  %s7265_s12 = inlined_call_operand.vmem [shape: f32[3,256], index: 12, kind: input, shape index: {}]   ;;  %s7266_s13 = inlined_call_operand.vmem [shape: f32[1,256], index: 13, kind: input, shape index: {}]   ;;  %s7267_s14 = inlined_call_operand.hbm [shape: bf16[256,256], index: 14, kind: input, shape index: {}]   ;;  %s7268_s15 = inlined_call_operand.vmem [shape: f32[1,256], index: 15, kind: input, shape index: {}]   ;;  %s7269_s16 = inlined_call_operand.hbm [shape: bf16[256,256], index: 16, kind: input, shape index: {}]   ;;  %s7270_s17 = inlined_call_operand.vmem [shape: f32[1,256], index: 17, kind: input, shape index: {}]   ;;  %s7271_s18 = inlined_call_operand.vmem [shape: f32[4,256], index: 18, kind: input, shape index: {}]   ;;  %s7272_s19 = inlined_call_operand.vmem [shape: f32[1,4], index: 19, kind: input, shape index: {}]   ;;  %s7273_s20 = inlined_call_operand.vmem [shape: f32[384,4], index: 20, kind: output, shape index: {}]  }
   0x1   :  { %7292 = sst [smem:[#allocation34_spill]] %s7253_s0 }
   0x2   :  { %7293 = sst [smem:[#allocation35_spill]] %s7254_s1 }
   0x3   :  { %7294 = sst [smem:[#allocation36_spill]] %s7255_s2 }
   0x4   :  { %7295 = sst [smem:[#allocation37_spill]] %s7256_s3 }
   0x5   :  { %7296 = sst [smem:[#allocation38_spill]] %s7257_s4 }
   0x6   :  { %7297 = sst [smem:[#allocation39_spill]] %s7268_s15 }
   0x7   :  { %7298 = sst [smem:[#allocation40_spill]] %s7270_s17 }
   0x8   :  { %7299 = sst [smem:[#allocation41_spill]] %s7271_s18 }
   0x9   :  { %7300 = sst [smem:[#allocation42_spill]] %s7272_s19 }
   0xa   :  { %7301 = sst [smem:[#allocation43_spill]] %s7273_s20 }
   0xb   :  { %25 = vsyncpa [#allocation3], 0 }
   0xc   :  { %26 = vsyncpa [#allocation5], 0 }
   0xd   :  { %27 = vsyncpa [#allocation8], 0 }
   0xe   :  { %28 = vsyncpa [#allocation11], 0  ;;  %s5715_s1 = smov 0  }
   0xf LB: > { %s7275_s22 = sadd.s32 4294967295, %s5597_s1   ;;  %p4691_p0 = scmp.ge.s32.totalorder %s5597_s1, 1  ;;  %s5597_s1 = sphi %s5715_s1, %s34_s1  }
  0x10   : > { %p490_p1 = scmp.lt.s32.totalorder %s5597_s1, 4  ;;  %p5725_p2 = scmp.eq.s32.totalorder %s7275_s22, 0 }
  0x11   : > { %s5599_s2 = smov [#allocation4]   ;;  %s5600_s3 = smov [#allocation7]  }
  0x12   : > { %s7302_s23 = scalar_select %p5725_p2, 1, 0 }
  0x13   : > { %p5729_p3 = pnand %p4691_p0, %p490_p1  ;;  %s530_s25 = sshll.u32 %s5599_s2, 4  ;;  %s5733_s25 = int_to_ptr.vmem [resolvable:$true] %s530_s25 }
  0x14   : > { %s562_s26 = sshll.u32 %s5600_s3, 4  ;;  %s5601_s28 = smov [#allocation2]   ;;  %s5737_s26 = int_to_ptr.vmem [resolvable:$true] %s562_s26 }
  0x15   : > { %s7303_s24 = scalar_select %p5729_p3, 1, 0 }
  0x16   : > { %p4993_p4 = pneg %p5729_p3  ;;  %s514_s4 = sshll.u32 %s5601_s28, 4  ;;  %s5745_s4 = int_to_ptr.vmem [resolvable:$true] %s514_s4 }
  0x17   : > { %s5602_s29 = smov [#allocation6]   ;;  %s5407_s2 = scalar_lea.hbm %s7260_s7, 4096 }
  0x18   : > { %p5741_p5 = pnand %p5725_p2, %p4993_p4  ;;  %s5747_s30 = sshll.u32 %s5602_s29, 4  ;;  %s547_s30 = int_to_ptr.vmem [resolvable:$true] %s5747_s30 }
  0x19   : > { %p5408_p6 = scmp.ne.s32.totalorder %s7260_s7, %s5407_s2  ;;  %p5414_p10 = scmp.lt.u32.totalorder %s5407_s2, %s7260_s7 }
  0x1a   : > { %p5757_p7 = pneg %p5741_p5 }
  0x1c   : > { %p5410_p8 = pnand %p5757_p7, %p5408_p6 }
  0x1e   : > { %p5411_p9 = pneg %p5410_p8 }
  0x20   : > { %p5416_p11 = pnand %p5414_p10, %p5411_p9 }
  0x22   : > { %5419 = shalt.err (!%p5416_p11)
}
  0x23   : > { %s5420_s22 = scalar_lea.vmem %s5733_s25, 4096  ;;  %p5428_p1 = scmp.lt.s32.totalorder %s5733_s25, %s5733_s25 }
  0x24   : > { %p5421_p12 = scmp.ne.s32.totalorder %s5733_s25, %s5420_s22  ;;  %p5429_p4 = scmp.lt.s32.totalorder %s5420_s22, %s5420_s22 }
  0x26   : > { %p5423_p13 = pnand %p5421_p12, %p5757_p7  ;;  %p5430_p6 = por %p5429_p4, %p5428_p1 }
  0x28   : > { %p5424_p0 = pneg %p5423_p13 }
  0x2a   : > { %p5431_p8 = pnand %p5430_p6, %p5424_p0 }
  0x2c   : > { %5434 = shalt.err (!%p5431_p8)
}
  0x2d   : > { %s5603_s0 = smov 128   ;;  %s5604_s21 = smov 8  }
  0x2e   : > { %4999 = dma.hbm_to_vmem [thread:$0]  (!%p5741_p5), %s7260_s7, 4096, %s5733_s25, [#allocation5], %s5603_s0, %s5603_s0, %s5604_s21  }
  0x2f   : > { %s5435_s22 = scalar_lea.hbm %s7264_s11, 4096 }
  0x30   : > { %p5436_p9 = scmp.ne.s32.totalorder %s7264_s11, %s5435_s22  ;;  %p5442_p12 = scmp.lt.u32.totalorder %s5435_s22, %s7264_s11 }
  0x32   : > { %p5438_p10 = pnand %p5436_p9, %p5757_p7 }
  0x34   : > { %p5439_p11 = pneg %p5438_p10 }
  0x36   : > { %p5444_p13 = pnand %p5442_p12, %p5439_p11 }
  0x38   : > { %5447 = shalt.err (!%p5444_p13)
}
  0x39   : > { %s5448_s25 = scalar_lea.vmem %s5737_s26, 4096  ;;  %p5456_p6 = scmp.lt.s32.totalorder %s5737_s26, %s5737_s26 }
  0x3a   : > { %p5449_p0 = scmp.ne.s32.totalorder %s5737_s26, %s5448_s25  ;;  %p5457_p8 = scmp.lt.s32.totalorder %s5448_s25, %s5448_s25 }
  0x3c   : > { %p5451_p1 = pnand %p5449_p0, %p5757_p7  ;;  %p5458_p9 = por %p5457_p8, %p5456_p6 }
  0x3e   : > { %p5452_p4 = pneg %p5451_p1 }
  0x40   : > { %p5459_p10 = pnand %p5458_p9, %p5452_p4 }
  0x42   : > { %5462 = shalt.err (!%p5459_p10)
}
  0x43   : > { %5005 = dma.hbm_to_vmem [thread:$0]  (!%p5741_p5), %s7264_s11, 4096, %s5737_s26, [#allocation8], %s5603_s0, %s5603_s0, %s5604_s21  }
  0x44   : > { %s5463_s2 = scalar_lea.hbm %s7258_s5, 4096 }
  0x45   : > { %p5464_p11 = scmp.ne.s32.totalorder %s7258_s5, %s5463_s2  ;;  %p5470_p0 = scmp.lt.u32.totalorder %s5463_s2, %s7258_s5 }
  0x47   : > { %p5466_p12 = pnand %p5464_p11, %p5757_p7 }
  0x49   : > { %p5467_p13 = pneg %p5466_p12 }
  0x4b   : > { %p5472_p1 = pnand %p5470_p0, %p5467_p13 }
  0x4d   : > { %5475 = shalt.err (!%p5472_p1)
}
  0x4e   : > { %s5476_s26 = scalar_lea.vmem %s5745_s4, 4096  ;;  %p5484_p9 = scmp.lt.s32.totalorder %s5745_s4, %s5745_s4 }
  0x4f   : > { %p5477_p4 = scmp.ne.s32.totalorder %s5745_s4, %s5476_s26  ;;  %p5485_p10 = scmp.lt.s32.totalorder %s5476_s26, %s5476_s26 }
  0x51   : > { %p5479_p6 = pnand %p5477_p4, %p5757_p7  ;;  %p5486_p11 = por %p5485_p10, %p5484_p9 }
  0x53   : > { %p5480_p8 = pneg %p5479_p6 }
  0x55   : > { %p5487_p12 = pnand %p5486_p11, %p5480_p8 }
  0x57   : > { %5490 = shalt.err (!%p5487_p12)
}
  0x58   : > { %4996 = dma.hbm_to_vmem [thread:$0]  (!%p5741_p5), %s7258_s5, 4096, %s5745_s4, [#allocation3], %s5603_s0, %s5603_s0, %s5604_s21  }
  0x59   : > { %s5491_s19 = scalar_lea.hbm %s7262_s9, 4096 }
  0x5a   : > { %p5492_p13 = scmp.ne.s32.totalorder %s7262_s9, %s5491_s19  ;;  %p5498_p4 = scmp.lt.u32.totalorder %s5491_s19, %s7262_s9 }
  0x5c   : > { %p5494_p0 = pnand %p5492_p13, %p5757_p7 }
  0x5e   : > { %p5495_p1 = pneg %p5494_p0 }
  0x60   : > { %p5500_p6 = pnand %p5498_p4, %p5495_p1 }
  0x62   : > { %5503 = shalt.err (!%p5500_p6)
}
  0x63   : > { %s5504_s22 = scalar_lea.vmem %s547_s30, 4096  ;;  %p5512_p11 = scmp.lt.s32.totalorder %s547_s30, %s547_s30 }
  0x64   : > { %p5505_p8 = scmp.ne.s32.totalorder %s547_s30, %s5504_s22  ;;  %p5513_p12 = scmp.lt.s32.totalorder %s5504_s22, %s5504_s22 }
  0x66   : > { %p5507_p9 = pnand %p5505_p8, %p5757_p7  ;;  %p5514_p2 = por %p5513_p12, %p5512_p11 }
  0x68   : > { %p5508_p10 = pneg %p5507_p9 }
  0x6a   : > { %p5515_p3 = pnand %p5514_p2, %p5508_p10 }
  0x6c   : > { %5518 = shalt.err (!%p5515_p3)
}
  0x6d   : > { %5002 = dma.hbm_to_vmem [thread:$0]  (!%p5741_p5), %s7262_s9, 4096, %s547_s30, [#allocation5], %s5603_s0, %s5603_s0, %s5604_s21  }
  0x6e   : > { %s5605_s25 = smov [#allocation9]   ;;  %s5606_s17 = smov [#allocation10]  }
  0x6f   : > { %s581_s15 = sshll.u32 %s5605_s25, 4  ;;  %s597_s18 = sshll.u32 %s5606_s17, 4  ;;  %s582_s15 = int_to_ptr.vmem [resolvable:$true] %s581_s15  ;;  %s598_s18 = int_to_ptr.vmem [resolvable:$true] %s597_s18 }
  0x70   : > { %s5519_s3 = scalar_lea.hbm %s7267_s14, 4096 }
  0x71   : > { %p5520_p2 = scmp.ne.s32.totalorder %s7267_s14, %s5519_s3  ;;  %p5526_p0 = scmp.lt.u32.totalorder %s5519_s3, %s7267_s14 }
  0x73   : > { %p5522_p3 = pnand %p5520_p2, %p5757_p7 }
  0x75   : > { %p5523_p13 = pneg %p5522_p3 }
  0x77   : > { %p5528_p1 = pnand %p5526_p0, %p5523_p13 }
  0x79   : > { %5531 = shalt.err (!%p5528_p1)
}
  0x7a   : > { %s5532_s30 = scalar_lea.vmem %s582_s15, 4096  ;;  %p5540_p9 = scmp.lt.s32.totalorder %s582_s15, %s582_s15 }
  0x7b   : > { %p5533_p4 = scmp.ne.s32.totalorder %s582_s15, %s5532_s30  ;;  %p5541_p10 = scmp.lt.s32.totalorder %s5532_s30, %s5532_s30 }
  0x7d   : > { %p5535_p6 = pnand %p5533_p4, %p5757_p7  ;;  %p5542_p11 = por %p5541_p10, %p5540_p9 }
  0x7f   : > { %p5536_p8 = pneg %p5535_p6 }
  0x81   : > { %p5543_p12 = pnand %p5542_p11, %p5536_p8 }
  0x83   : > { %5546 = shalt.err (!%p5543_p12)
}
  0x84   : > { %5008 = dma.hbm_to_vmem [thread:$0]  (!%p5741_p5), %s7267_s14, 4096, %s582_s15, [#allocation8], %s5603_s0, %s5603_s0, %s5604_s21  }
  0x85   : > { %s5547_s2 = scalar_lea.hbm %s7269_s16, 4096 }
  0x86   : > { %p5548_p2 = scmp.ne.s32.totalorder %s7269_s16, %s5547_s2  ;;  %p5554_p0 = scmp.lt.u32.totalorder %s5547_s2, %s7269_s16 }
  0x88   : > { %p5550_p3 = pnand %p5548_p2, %p5757_p7 }
  0x8a   : > { %p5551_p13 = pneg %p5550_p3 }
  0x8c   : > { %p5556_p1 = pnand %p5554_p0, %p5551_p13 }
  0x8e   : > { %5559 = shalt.err (!%p5556_p1)
}
  0x8f   : > { %s5560_s4 = scalar_lea.vmem %s598_s18, 4096  ;;  %p5568_p9 = scmp.lt.s32.totalorder %s598_s18, %s598_s18 }
  0x90   : > { %p5561_p4 = scmp.ne.s32.totalorder %s598_s18, %s5560_s4  ;;  %p5569_p10 = scmp.lt.s32.totalorder %s5560_s4, %s5560_s4 }
  0x92   : > { %p5563_p6 = pnand %p5561_p4, %p5757_p7  ;;  %p5570_p11 = por %p5569_p10, %p5568_p9 }
  0x94   : > { %p5564_p8 = pneg %p5563_p6 }
  0x96   : > { %p5571_p12 = pnand %p5570_p11, %p5564_p8 }
  0x98   : > { %5574 = shalt.err (!%p5571_p12)
}
  0x99   : > { %5011 = dma.hbm_to_vmem [thread:$0]  (!%p5741_p5), %s7269_s16, 4096, %s598_s18, [#allocation11], %s5603_s0, %s5603_s0, %s5604_s21  }
  0x9a   : > { %p7306_p2 = scmp.ne.s32.totalorder %s7303_s24, 0 }
  0x9c   : > { %631 = sbr.rel (%p7306_p2) target bundleno = 2175 (0x87f), region = 100 }
  0xa3   : > { %p7307_p7 = scmp.ne.s32.totalorder %s7302_s23, 0 }
  0xa5   : > { %5580 = dma.done.wait (%p7307_p7), [#allocation3], 4096  }
  0xa6   : > { %5582 = vsyncadd (%p7307_p7), [#allocation3], 4294963200 }
  0xa7   : > { %5584 = dma.done.wait (%p7307_p7), [#allocation5], 8192  }
  0xa8   : > { %5586 = vsyncadd (%p7307_p7), [#allocation5], 4294959104 }
  0xa9   : > { %5588 = dma.done.wait (%p7307_p7), [#allocation8], 8192  }
  0xaa   : > { %5590 = vsyncadd (%p7307_p7), [#allocation8], 4294959104 }
  0xab   : > { %5592 = dma.done.wait (%p7307_p7), [#allocation11], 4096  }
  0xac   : > { %5594 = vsyncadd (%p7307_p7), [#allocation11], 4294963200  ;;  %s7308_s20 = sadd.s32 4294967295, %s5597_s1   ;;  %v5607_v0 = vmov 2   ;;  %v5608_v1 = vmov 1   ;;  %s7309_s23 = sld [smem:[#allocation34_spill]]  ;;  %v820_v51 = vlaneseq }
  0xad   : > { %s4706_s24 = sshll.u32 %s7308_s20, 4  ;;  %5044 = vset.pattern.permute.xlu0 %v5607_v0  ;;  %5043 = vset.pattern.permute.xlu1 %v5608_v1  ;;  %s7310_s17 = sld [smem:[#allocation37_spill]]  ;;  %v5609_v12 = vmov 0   ;;  %v2729_v60 = vld [vmem:[%s7265_s12] sm:$0x77]  ;;  %vm4163_vm0 = vcmask 7168  }
  0xae   : > { %p710_p5 = scmp.lt.s32.totalorder %s4706_s24, 47  ;;  %v6082_v52 = vshrl.u32 %v820_v51, 7  ;;  %s7313_s28 = sld [smem:[#allocation35_spill]]  ;;  %vm4294_vm1 = vcmask 15368   ;;  %vm4425_vm2 = vcmask 23568   ;;  %vm4556_vm3 = vcmask 31768  }
  0xaf   : > { %s7317_s30 = sld [smem:[#allocation36_spill]]  ;;  %s7331_s21 = sld [smem:[#allocation38_spill]] }
  0xb0   : > { %s7356_s24 = smov (!%p710_p5, %s4706_s24), 47  ;;  %7311 = vst [vmem:[#allocation16_spill] sm:$0xff] %v6082_v52  ;;  %v6088_v55 = vsub.s32 1, %v6082_v52  ;;  %v6091_v56 = vsub.s32 5, %v6082_v52  ;;  %v6097_v58 = vsub.s32 0, %v6082_v52  ;;  %v6100_v59 = vsub.s32 4, %v6082_v52 }
  0xb1   : > { %s4707_s27 = sshll.u32 %s7356_s24, 3  ;;  %v6106_v61 = vsub.s32 2, %v6082_v52  ;;  %v6109_v62 = vsub.s32 6, %v6082_v52  ;;  %s7345_s4 = sld [smem:[#allocation39_spill]] }
  0xb2   : > { %s5927_s18 = scalar_lea.vmem %s7309_s23, %s4707_s27  ;;  %7312 = vst [vmem:[#allocation17_spill] sm:$0xff] %v6091_v56  ;;  %7314 = vst [vmem:[#allocation18_spill] sm:$0xff] %v6100_v59  ;;  %s7346_s20 = sld [smem:[#allocation40_spill]] }
  0xb3   : > { %v721_v2 = vld [vmem:[%s5927_s18] sm:$0xff]  ;;  %v723_v3 = vld [vmem:[%s5927_s18 + $0x10] sm:$0xff]  ;;  %v722_v4 = vld [vmem:[%s5927_s18 + $0x8] sm:$0xff]  ;;  %7315 = vst [vmem:[#allocation19_spill] sm:$0xff] %v6106_v61  ;;  %s7347_s23 = sld [smem:[#allocation41_spill]]  ;;  %s7353_s19 = sld [smem:[#allocation42_spill]] }
  0xb4   : > { %1017 = vperm.xlu0 %5044, %v721_v2   ;;  %871 = vperm.xlu1 %5043, %v721_v2   ;;  %v5071_v5 = vld [vmem:[%s7310_s17 + $0x4] ss:$8 sps:$4 sm:$0xff]   ;;  %v5073_v6 = vld [vmem:[%s7310_s17] ss:$8 sps:$4 sm:$0xff]   ;;  %v5074_v8 = vld [vmem:[%s7310_s17 + $0x14] ss:$8 sps:$4 sm:$0xff]  }
  0xb5   : > { %v725_v7 = vld [vmem:[%s5927_s18 + $0x20] sm:$0xff]  ;;  %1457 = vmatprep.subr.bf16.mxu0 %v5071_v5  ;;  %v5076_v9 = vld [vmem:[%s7310_s17 + $0x10] ss:$8 sps:$4 sm:$0xff]   ;;  %v5080_v13 = vld [vmem:[%s7310_s17 + $0x34] ss:$8 sps:$4 sm:$0xff]   ;;  %7316 = vst [vmem:[#allocation20_spill] sm:$0xff] %v6109_v62  ;;  %v2801_v5 = vrot.slane %v2729_v60, %v6088_v55 }
  0xb6   : > { %1458 = vmatpush1.bf16.msra.mxu0 %v5073_v6  ;;  %v5077_v10 = vld [vmem:[%s7310_s17 + $0x24] ss:$8 sps:$4 sm:$0xff]   ;;  %v5079_v11 = vld [vmem:[%s7310_s17 + $0x20] ss:$8 sps:$4 sm:$0xff]   ;;  %v5082_v14 = vld [vmem:[%s7310_s17 + $0x30] ss:$8 sps:$4 sm:$0xff]   ;;  %v2805_v6 = vrot.slane %v2729_v60, %v6091_v56 }
  0xb7   : > { %1459 = vmatprep.subr.bf16.mxu0 %v5074_v8  ;;  %v5083_v15 = vld [vmem:[%s7310_s17 + $0x44] ss:$8 sps:$4 sm:$0xff]   ;;  %v724_v16 = vld [vmem:[%s5927_s18 + $0x18] sm:$0xff]  ;;  %v5085_v17 = vld [vmem:[%s7310_s17 + $0x40] ss:$8 sps:$4 sm:$0xff]   ;;  %s7354_s3 = sld [smem:[#allocation43_spill]] }
  0xb8   : > { %1025 = vperm.xlu0 %5044, %v723_v3   ;;  %875 = vperm.xlu1 %5043, %v722_v4   ;;  %v5086_v18 = vld [vmem:[%s7310_s17 + $0x54] ss:$8 sps:$4 sm:$0xff]   ;;  %v726_v19 = vld [vmem:[%s5927_s18 + $0x28] sm:$0xff]  ;;  %v5088_v20 = vld [vmem:[%s7310_s17 + $0x50] ss:$8 sps:$4 sm:$0xff]  }
  0xb9   : > { %v5089_v21 = vld [vmem:[%s7310_s17 + $0x64] ss:$8 sps:$4 sm:$0xff]   ;;  %v5979_v22 = vld [vmem:[%s5927_s18 + $0x38] sm:$0xff]  ;;  %v5091_v23 = vld [vmem:[%s7310_s17 + $0x60] ss:$8 sps:$4 sm:$0xff]  }
  0xba   : > { %1460 = vmatpush1.bf16.msra.mxu0 %v5076_v9  ;;  %v5092_v24 = vld [vmem:[%s7310_s17 + $0x74] ss:$8 sps:$4 sm:$0xff]   ;;  %v5989_v25 = vld [vmem:[%s5927_s18 + $0x48] sm:$0xff]  ;;  %v5094_v26 = vld [vmem:[%s7310_s17 + $0x70] ss:$8 sps:$4 sm:$0xff]   ;;  %v2751_v9 = vrot.slane %v2729_v60, %v6097_v58 }
  0xbb   : > { %1461 = vmatprep.subr.bf16.mxu0 %v5077_v10  ;;  %v5095_v27 = vld [vmem:[%s7310_s17 + $0x84] ss:$8 sps:$4 sm:$0xff]   ;;  %v6000_v28 = vld [vmem:[%s5927_s18 + $0x58] sm:$0xff]  ;;  %v5097_v29 = vld [vmem:[%s7310_s17 + $0x80] ss:$8 sps:$4 sm:$0xff]   ;;  %v2755_v10 = vrot.slane %v2729_v60, %v6100_v59 }
  0xbc   : > { %1033 = vperm.xlu0 %5044, %v725_v7   ;;  %5045 = vset.pattern.permute.xlu1 %v5607_v0  ;;  %v5098_v30 = vld [vmem:[%s7310_s17 + $0x94] ss:$8 sps:$4 sm:$0xff]   ;;  %v5100_v31 = vld [vmem:[%s7310_s17 + $0x90] ss:$8 sps:$4 sm:$0xff]   ;;  %v5101_v32 = vld [vmem:[%s7310_s17 + $0xa4] ss:$8 sps:$4 sm:$0xff]  }
  0xbd   : > { %1021 = vperm.xlu1 %5045, %v722_v4   ;;  %v727_v33 = vld [vmem:[%s5927_s18 + $0x30] sm:$0xff]  ;;  %v729_v34 = vld [vmem:[%s5927_s18 + $0x40] sm:$0xff]  ;;  %v734_v44 = vld [vmem:[%s5927_s18 + $0x68] sm:$0xff] }
  0xbe   : > { %1462 = vmatpush1.bf16.msra.mxu0 %v5079_v11  ;;  %v5103_v35 = vld [vmem:[%s7310_s17 + $0xa0] ss:$8 sps:$4 sm:$0xff]   ;;  %v5104_v36 = vld [vmem:[%s7310_s17 + $0xb4] ss:$8 sps:$4 sm:$0xff]   ;;  %v5106_v38 = vld [vmem:[%s7310_s17 + $0xb0] ss:$8 sps:$4 sm:$0xff]  }
  0xbf   : > { %1463 = vmatprep.subr.bf16.mxu0 %v5080_v13  ;;  %v731_v37 = vld [vmem:[%s5927_s18 + $0x50] sm:$0xff]  ;;  %v5107_v39 = vld [vmem:[%s7310_s17 + $0xc4] ss:$8 sps:$4 sm:$0xff]   ;;  %v5109_v41 = vld [vmem:[%s7310_s17 + $0xc0] ss:$8 sps:$4 sm:$0xff]  }
  0xc0   : > { %5051 = vset.pattern.permute.xlu0 %v5609_v12  ;;  %v733_v40 = vld [vmem:[%s5927_s18 + $0x60] sm:$0xff]  ;;  %v5110_v42 = vld [vmem:[%s7310_s17 + $0xd4] ss:$8 sps:$4 sm:$0xff]   ;;  %v5112_v43 = vld [vmem:[%s7310_s17 + $0xd0] ss:$8 sps:$4 sm:$0xff]  }
  0xc1   : > { %741 = vperm.xlu0 %5051, %v721_v2   ;;  %5046 = vset.pattern.permute.xlu1 %v5609_v12  ;;  %v5113_v45 = vld [vmem:[%s7310_s17 + $0xe4] ss:$8 sps:$4 sm:$0xff]   ;;  %v5115_v46 = vld [vmem:[%s7310_s17 + $0xe0] ss:$8 sps:$4 sm:$0xff]   ;;  %v6055_v47 = vld [vmem:[%s5927_s18 + $0x78] sm:$0xff] }
  0xc2   : > { %751 = vperm.xlu1 %5046, %v723_v3   ;;  %1464 = vmatpush1.bf16.msra.mxu0 %v5082_v14  ;;  %v5116_v48 = vld [vmem:[%s7310_s17 + $0xf4] ss:$8 sps:$4 sm:$0xff]   ;;  %v5118_v49 = vld [vmem:[%s7310_s17 + $0xf0] ss:$8 sps:$4 sm:$0xff]   ;;  %v737_v57 = vld [vmem:[%s7313_s28] sm:$0x77]  ;;  %s7056_s28 = scalar_lea.vmem %s7354_s3, %s4707_s27 }
  0xc3   : > { %1465 = vmatprep.subr.bf16.mxu0 %v5083_v15  ;;  %v735_v50 = vld [vmem:[%s5927_s18 + $0x70] sm:$0xff]  ;;  %v827_v8 = vrot.slane %v737_v57, %v6100_v59  ;;  %v1083_v11 = vrot.slane %v737_v57, %v6106_v61 }
  0xc4   : > { %v5152_v59 = vld [vmem:[#allocation2 + $0xb4] ss:$8 sps:$4 sm:$0xff]  }
  0xc5   : > { %746 = vperm.xlu0 %5051, %v722_v4   ;;  %v941_v4 = vrot.slane %v737_v57, %v6091_v56 }
  0xc6   : > { %5047 = vset.pattern.permute.xlu1 %v5608_v1  ;;  %1466 = vmatpush1.bf16.msra.mxu0 %v5085_v17  ;;  %v6140_v17 = vrot.slane %v2805_v6, %v6088_v55 }
  0xc7   : > { %879 = vperm.xlu1 %5047, %v723_v3   ;;  %1467 = vmatprep.subr.bf16.mxu0 %v5086_v18  ;;  %v937_v3 = vrot.slane %v737_v57, %v6088_v55  ;;  %v6134_v15 = vrot.slane %v941_v4, %v6088_v55 }
  0xc9   : > { %756 = vperm.xlu0 %5051, %v724_v16   ;;  %v6129_v13 = vrot.slane %v937_v3, %v6088_v55 }
  0xca   : > { %1468 = vmatpush1.bf16.msra.mxu0 %v5088_v20  ;;  %v6150_v20 = vrot.slane %v2751_v9, %v6097_v58 }
  0xcb   : > { %883 = vperm.xlu1 %5047, %v724_v16   ;;  %1469 = vmatprep.subr.bf16.mxu0 %v5089_v21  ;;  %v6153_v21 = vrot.slane %v2755_v10, %v6097_v58 }
  0xcd   : > { %766 = vperm.xlu0 %5051, %v726_v19  }
  0xce   : > { %1470 = vmatpush1.bf16.msra.mxu0 %v5091_v23  ;;  %v2887_v23 = vrot.slane %v2729_v60, %v6109_v62 }
  0xcf   : > { %5048 = vset.pattern.permute.xlu1 %v5607_v0  ;;  %1471 = vmatprep.subr.bf16.mxu0 %v5092_v24  ;;  %v6158_v24 = vrot.slane %v1083_v11, %v6106_v61 }
  0xd0   : > { %1029 = vperm.xlu1 %5048, %v724_v16   ;;  %v6137_v16 = vrot.slane %v2801_v5, %v6088_v55 }
  0xd1   : > { %776 = vperm.xlu0 %5051, %v5979_v22  }
  0xd2   : > { %1472 = vmatpush1.bf16.msra.mxu0 %v5094_v26  ;;  %v738_v26 = vld [vmem:[%s7317_s30] sm:$0x3] }
  0xd3   : > { %1473 = vmatprep.subr.bf16.mxu0 %v5095_v27 }
  0xd4   : > { %5049 = vset.pattern.permute.xlu1 %v5609_v12 }
  0xd5   : > { %786 = vperm.xlu0 %5051, %v5989_v25   ;;  %761 = vperm.xlu1 %5049, %v725_v7  }
  0xd6   : > { %1474 = vmatpush1.bf16.msra.mxu0 %v5097_v29 }
  0xd7   : > { %1475 = vmatprep.subr.bf16.mxu0 %v5098_v30 }
  0xd9   : > { %796 = vperm.xlu0 %5051, %v6000_v28   ;;  %5050 = vset.pattern.permute.xlu1 %v5608_v1 }
  0xda   : > { %887 = vperm.xlu1 %5050, %v725_v7   ;;  %1476 = vmatpush1.bf16.msra.mxu0 %v5100_v31  ;;  %v823_v7 = vrot.slane %v737_v57, %v6097_v58 }
  0xdb   : > { %1477 = vmatprep.subr.bf16.mxu0 %v5101_v32 }
  0xdc   : > { %v6144_v18 = vrot.slane %v823_v7, %v6097_v58 }
  0xdd   : > { %5060 = vset.pattern.permute.xlu0 %v5607_v0 }
  0xde   : > { %891 = vperm.xlu1 %5050, %v726_v19   ;;  %1041 = vperm.xlu0 %5060, %v727_v33  }
  0xdf   : > { %1478 = vmatpush1.bf16.msra.mxu0 %v5103_v35 }
  0xe0   : > { %1479 = vmatprep.subr.bf16.mxu0 %v5104_v36 }
  0xe2   : > { %5052 = vset.pattern.permute.xlu1 %v5607_v0  ;;  %1049 = vperm.xlu0 %5060, %v729_v34  }
  0xe3   : > { %1037 = vperm.xlu1 %5052, %v726_v19   ;;  %1480 = vmatpush1.bf16.msra.mxu0 %v5106_v38  ;;  %v6147_v19 = vrot.slane %v827_v8, %v6097_v58  ;;  %v6182_v38 = vrot.slane %v738_v26, %v6088_v55 }
  0xe4   : > { %1481 = vmatprep.subr.bf16.mxu0 %v5107_v39 }
  0xe6   : > { %1057 = vperm.xlu0 %5060, %v731_v37  }
  0xe7   : > { %5053 = vset.pattern.permute.xlu1 %v5609_v12  ;;  %1482 = vmatpush1.bf16.msra.mxu0 %v5109_v41 }
  0xe8   : > { %771 = vperm.xlu1 %5053, %v727_v33   ;;  %1483 = vmatprep.subr.bf16.mxu0 %v5110_v42 }
  0xea   : > { %1065 = vperm.xlu0 %5060, %v733_v40  }
  0xeb   : > { %1484 = vmatpush1.bf16.msra.mxu0 %v5112_v43 }
  0xec   : > { %5054 = vset.pattern.permute.xlu1 %v5608_v1  ;;  %1485 = vmatprep.subr.bf16.mxu0 %v5113_v45 }
  0xed   : > { %895 = vperm.xlu1 %5054, %v727_v33  }
  0xee   : > { %5065 = vset.pattern.permute.xlu0 %v5609_v12 }
  0xef   : > { %806 = vperm.xlu0 %5065, %v734_v44   ;;  %1486 = vmatpush1.bf16.msra.mxu0 %v5115_v46 }
  0xf0   : > { %1487 = vmatprep.subr.bf16.mxu0 %v5116_v48 }
  0xf1   : > { %899 = vperm.xlu1 %5054, %v5979_v22  }
  0xf3   : > { %816 = vperm.xlu0 %5065, %v6055_v47   ;;  %1488 = vmatpush1.bf16.msra.mxu0 %v5118_v49 }
  0xf5   : > { %5055 = vset.pattern.permute.xlu1 %v5607_v0 }
  0xf6   : > { %1045 = vperm.xlu1 %5055, %v5979_v22   ;;  %v2883_v22 = vrot.slane %v2729_v60, %v6106_v61 }
  0xf7   : > { %5069 = vset.pattern.permute.xlu0 %v5607_v0 }
  0xf8   : > { %1073 = vperm.xlu0 %5069, %v735_v50   ;;  %v6185_v39 = vrot.slane %v2883_v22, %v6106_v61 }
  0xfa   : > { %5056 = vset.pattern.permute.xlu1 %v5609_v12 }
  0xfb   : > { %781 = vperm.xlu1 %5056, %v729_v34  }
  0xff   : > { %5057 = vset.pattern.permute.xlu1 %v5608_v1 }
 0x100   : > { %903 = vperm.xlu1 %5057, %v729_v34  }
 0x104   : > { %907 = vperm.xlu1 %5057, %v5989_v25  }
 0x108   : > { %5058 = vset.pattern.permute.xlu1 %v5607_v0 }
 0x109   : > { %1053 = vperm.xlu1 %5058, %v5989_v25  }
 0x10d   : > { %5059 = vset.pattern.permute.xlu1 %v5609_v12 }
 0x10e   : > { %791 = vperm.xlu1 %5059, %v731_v37  }
 0x112   : > { %5061 = vset.pattern.permute.xlu1 %v5608_v1 }
 0x113   : > { %911 = vperm.xlu1 %5061, %v731_v37   ;;  %v6179_v37 = vrot.slane %v738_v26, %v6097_v58 }
 0x117   : > { %915 = vperm.xlu1 %5061, %v6000_v28  }
 0x11b   : > { %5062 = vset.pattern.permute.xlu1 %v5607_v0 }
 0x11c   : > { %1061 = vperm.xlu1 %5062, %v6000_v28  }
 0x120   : > { %5063 = vset.pattern.permute.xlu1 %v5609_v12 }
 0x121   : > { %801 = vperm.xlu1 %5063, %v733_v40  }
 0x125   : > { %5064 = vset.pattern.permute.xlu1 %v5608_v1 }
 0x126   : > { %919 = vperm.xlu1 %5064, %v733_v40   ;;  %v6188_v40 = vrot.slane %v2887_v23, %v6106_v61 }
 0x12a   : > { %923 = vperm.xlu1 %5064, %v734_v44  }
 0x12e   : > { %5066 = vset.pattern.permute.xlu1 %v5607_v0 }
 0x12f   : > { %1069 = vperm.xlu1 %5066, %v734_v44  }
 0x133   : > { %5067 = vset.pattern.permute.xlu1 %v5609_v12  ;;  %v872_v53 = vpop.permute.xlu1 %871  ;;  %v6085_v54 = vpop.permute.xlu0 %1017  ;;  %v1087_v12 = vrot.slane %v737_v57, %v6109_v62 }
 0x134   : > { %811 = vperm.xlu1 %5067, %v735_v50   ;;  %v952_v27 = vmul.f32 %v6129_v13, %v872_v53  ;;  %v953_v29 = vmul.f32 %v6134_v15, %v872_v53  ;;  %v2816_v30 = vmul.f32 %v6137_v16, %v872_v53  ;;  %v2817_v31 = vmul.f32 %v6140_v17, %v872_v53 }
 0x135   : > { %v6161_v25 = vrot.slane %v1087_v12, %v6106_v61  ;;  %v1098_v44 = vmul.f32 %v6158_v24, %v6085_v54  ;;  %v2899_v48 = vmul.f32 %v6188_v40, %v6085_v54 }
 0x137   : > { %v6111_v63 = vpop.permute.xlu1 %875  ;;  %v6113_v2 = vpop.permute.xlu0 %1025  ;;  %v1099_v45 = vmul.f32 %v6161_v25, %v6085_v54 }
 0x138   : > { %5068 = vset.pattern.permute.xlu1 %v5608_v1  ;;  %v954_v49 = vmul.f32 %v6129_v13, %v6111_v63  ;;  %v955_v53 = vmul.f32 %v6134_v15, %v6111_v63 }
 0x139   : > { %927 = vperm.xlu1 %5068, %v735_v50  }
 0x13b   : > { %v6126_v1 = vpop.permute.xlu0 %1033 }
 0x13c   : > { %v6131_v14 = vpop.permute.xlu1 %1021 }
 0x13d   : > { %931 = vperm.xlu1 %5068, %v6055_v47   ;;  %v1100_v9 = vmul.f32 %v6158_v24, %v6131_v14  ;;  %v1101_v10 = vmul.f32 %v6161_v25, %v6131_v14 }
 0x140   : > { %v742_v28 = vpop.permute.xlu0 %741 }
 0x141   : > { %v838_v32 = vmul.f32 %v6144_v18, %v742_v28  ;;  %v839_v33 = vmul.f32 %v6147_v19, %v742_v28  ;;  %v2766_v34 = vmul.f32 %v6150_v20, %v742_v28  ;;  %v2767_v35 = vmul.f32 %v6153_v21, %v742_v28  ;;  %5070 = vset.pattern.permute.xlu1 %v5607_v0  ;;  %v6175_v36 = vpop.permute.xlu1 %751 }
 0x142   : > { %1077 = vperm.xlu1 %5070, %v6055_v47   ;;  %v2898_v47 = vmul.f32 %v6185_v39, %v6085_v54  ;;  %v842_v12 = vmul.f32 %v6144_v18, %v6175_v36  ;;  %v843_v22 = vmul.f32 %v6147_v19, %v6175_v36 }
 0x143   : > { %v984_v41 = vadd.f32 %v952_v27, %v838_v32  ;;  %v985_v42 = vadd.f32 %v953_v29, %v839_v33  ;;  %v2848_v43 = vadd.f32 %v2816_v30, %v2766_v34  ;;  %v2849_v0 = vadd.f32 %v2817_v31, %v2767_v35 }
 0x144   : > { %v6194_v46 = vpop.permute.xlu0 %746 }
 0x145   : > { %v840_v50 = vmul.f32 %v6144_v18, %v6194_v46  ;;  %v841_v51 = vmul.f32 %v6147_v19, %v6194_v46  ;;  %v1131_v60 = vadd.f32 %v1099_v45, %v985_v42  ;;  %v1130_v3 = vadd.f32 %v1098_v44, %v984_v41  ;;  %v5119_v45 = vld [vmem:[#allocation2 + $0x4] ss:$8 sps:$4 sm:$0xff]  }
 0x146   : > { %v6208_v57 = vpop.permute.xlu1 %879  ;;  %v6210_v4 = vadd.f32 %v2898_v47, %v2848_v43  ;;  %v6212_v5 = vadd.f32 %v2899_v48, %v2849_v0  ;;  %v1103_v41 = vmul.f32 %v6161_v25, %v6113_v2  ;;  %v1102_v44 = vmul.f32 %v6158_v24, %v6113_v2  ;;  %v5121_v47 = vld [vmem:[#allocation2] ss:$8 sps:$4 sm:$0xff]   ;;  %v5122_v48 = vld [vmem:[#allocation2 + $0x14] ss:$8 sps:$4 sm:$0xff]   ;;  %1822 = vmatprep.subr.bf16.mxu1 %v5119_v45 }
 0x147   : > { %v986_v54 = vadd.f32 %v954_v49, %v840_v50  ;;  %v956_v6 = vmul.f32 %v6129_v13, %v6208_v57  ;;  %v957_v7 = vmul.f32 %v6134_v15, %v6208_v57  ;;  %v987_v8 = vadd.f32 %v955_v53, %v841_v51  ;;  %1823 = vmatpush1.bf16.msra.mxu1 %v5121_v47  ;;  %v5130_v47 = vld [vmem:[#allocation2 + $0x30] ss:$8 sps:$4 sm:$0xff]  }
 0x148   : > { %v1174_v11 = vadd.f32 %v6182_v38, %v1131_v60  ;;  %v6227_v23 = vpop.permute.xlu0 %756  ;;  %v1173_v26 = vadd.f32 %v6179_v37, %v1130_v3  ;;  %1824 = vmatprep.subr.bf16.mxu1 %v5122_v48 }
 0x149   : > { %v844_v27 = vmul.f32 %v6144_v18, %v6227_v23  ;;  %v845_v28 = vmul.f32 %v6147_v19, %v6227_v23  ;;  %v1133_v30 = vadd.f32 %v1101_v10, %v987_v8  ;;  %v1132_v31 = vadd.f32 %v1100_v9, %v986_v54 }
 0x14a   : > { %v6234_v29 = vpop.permute.xlu1 %883  ;;  %v989_v34 = vadd.f32 %v957_v7, %v843_v22  ;;  %v988_v35 = vadd.f32 %v956_v6, %v842_v12  ;;  %v1206_v43 = vmax.f32 %v1174_v11, 0.0  ;;  %v1205_v50 = vmax.f32 %v1173_v26, 0.0  ;;  %v5124_v11 = vld [vmem:[#allocation2 + $0x10] ss:$8 sps:$4 sm:$0xff]   ;;  %v5125_v12 = vld [vmem:[#allocation2 + $0x24] ss:$8 sps:$4 sm:$0xff]  }
 0x14b   : > { %v958_v32 = vmul.f32 %v6129_v13, %v6234_v29  ;;  %v959_v33 = vmul.f32 %v6134_v15, %v6234_v29  ;;  %v1176_v42 = vadd.f32 %v6182_v38, %v1133_v30  ;;  %v1175_v0 = vadd.f32 %v6179_v37, %v1132_v31  ;;  %1825 = vmatpush1.bf16.msra.mxu1 %v5124_v11 }
 0x14c   : > { %v1135_v53 = vadd.f32 %v1103_v41, %v989_v34  ;;  %v1134_v6 = vadd.f32 %v1102_v44, %v988_v35  ;;  %1826 = vmatprep.subr.bf16.mxu1 %v5125_v12  ;;  %v5128_v34 = vld [vmem:[#allocation2 + $0x34] ss:$8 sps:$4 sm:$0xff]   ;;  %v1106_v11 = vmul.f32 %v6158_v24, %v6126_v1  ;;  %v1107_v12 = vmul.f32 %v6161_v25, %v6126_v1 }
 0x14d   : > { %v1208_v49 = vmax.f32 %v1176_v42, 0.0  ;;  %v1207_v51 = vmax.f32 %v1175_v0, 0.0  ;;  %v991_v3 = vadd.f32 %v959_v33, %v845_v28  ;;  %v990_v54 = vadd.f32 %v958_v32, %v844_v27  ;;  %v5127_v33 = vld [vmem:[#allocation2 + $0x20] ss:$8 sps:$4 sm:$0xff]   ;;  %v6258_v0 = vpop.permute.xlu0 %766 }
 0x14e   : > { %v1178_v26 = vadd.f32 %v6182_v38, %v1135_v53  ;;  %v1177_v27 = vadd.f32 %v6179_v37, %v1134_v6 }
 0x14f   : > { %v6246_v60 = vpop.permute.xlu1 %1029  ;;  %v1271_v9 = vpack.c.bf16 %v1208_v49, %v1206_v43  ;;  %v1270_v10 = vpack.c.bf16 %v1207_v51, %v1205_v50  ;;  %1827 = vmatpush1.bf16.msra.mxu1 %v5127_v33  ;;  %v5131_v49 = vld [vmem:[#allocation2 + $0x44] ss:$8 sps:$4 sm:$0xff]  }
 0x150   : > { %v1104_v7 = vmul.f32 %v6158_v24, %v6246_v60  ;;  %v1105_v8 = vmul.f32 %v6161_v25, %v6246_v60  ;;  %v1210_v35 = vmax.f32 %v1178_v26, 0.0  ;;  %v1209_v42 = vmax.f32 %v1177_v27, 0.0  ;;  %1828 = vmatprep.subr.bf16.mxu1 %v5128_v34  ;;  %v5137_v34 = vld [vmem:[#allocation2 + $0x64] ss:$8 sps:$4 sm:$0xff]  }
 0x151   : > { %1489 = vmatprep.mubr.bf16.mxu0 %v1271_v9  ;;  %v6270_v6 = vpop.permute.xlu0 %776  ;;  %v848_v27 = vmul.f32 %v6144_v18, %v6258_v0 }
 0x152   : > { %v1137_v22 = vadd.f32 %v1105_v8, %v991_v3  ;;  %v1136_v28 = vadd.f32 %v1104_v7, %v990_v54  ;;  %1490 = vmatmul.mubr.bf16.vlgmr.msra.gmra.mrb[0].mxu0 %v1270_v10  ;;  %v5133_v54 = vld [vmem:[#allocation2 + $0x40] ss:$8 sps:$4 sm:$0xff]   ;;  %v5134_v10 = vld [vmem:[#allocation2 + $0x54] ss:$8 sps:$4 sm:$0xff]  }
 0x153   : > { %1829 = vmatpush1.bf16.msra.mxu1 %v5130_v47  ;;  %v5139_v47 = vld [vmem:[#allocation2 + $0x60] ss:$8 sps:$4 sm:$0xff]  }
 0x154   : > { %v6254_v30 = vpop.permute.xlu1 %761  ;;  %v1180_v31 = vadd.f32 %v6182_v38, %v1137_v22  ;;  %v1179_v32 = vadd.f32 %v6179_v37, %v1136_v28  ;;  %1830 = vmatprep.subr.bf16.mxu1 %v5131_v49  ;;  %v5136_v28 = vld [vmem:[#allocation2 + $0x50] ss:$8 sps:$4 sm:$0xff]  }
 0x155   : > { %v846_v53 = vmul.f32 %v6144_v18, %v6254_v30  ;;  %v847_v3 = vmul.f32 %v6147_v19, %v6254_v30 }
 0x156   : > { %v1212_v41 = vmax.f32 %v1180_v31, 0.0  ;;  %v1211_v43 = vmax.f32 %v1179_v32, 0.0  ;;  %v849_v31 = vmul.f32 %v6147_v19, %v6258_v0 }
 0x157   : > { %1831 = vmatpush1.bf16.msra.mxu1 %v5133_v54 }
 0x158   : > { %v1273_v44 = vpack.c.bf16 %v1212_v41, %v1210_v35  ;;  %v1272_v45 = vpack.c.bf16 %v1211_v43, %v1209_v42  ;;  %1832 = vmatprep.subr.bf16.mxu1 %v5134_v10  ;;  %v6288_v41 = vpop.permute.xlu0 %786  ;;  %v5142_v10 = vld [vmem:[#allocation2 + $0x70] ss:$8 sps:$4 sm:$0xff]  }
 0x159   : > { %v6260_v48 = vpop.permute.xlu1 %887 }
 0x15a   : > { %v960_v50 = vmul.f32 %v6129_v13, %v6260_v48  ;;  %v961_v51 = vmul.f32 %v6134_v15, %v6260_v48  ;;  %1499 = vmatprep.mubr.bf16.mxu0 %v1273_v44 }
 0x15b   : > { %1500 = vmatmul.mubr.bf16.gmra.mrb[4].mxu0 %v1272_v45  ;;  %1833 = vmatpush1.bf16.msra.mxu1 %v5136_v28 }
 0x15c   : > { %v993_v8 = vadd.f32 %v961_v51, %v847_v3  ;;  %v992_v9 = vadd.f32 %v960_v50, %v846_v53  ;;  %1834 = vmatprep.subr.bf16.mxu1 %v5137_v34  ;;  %v5140_v3 = vld [vmem:[#allocation2 + $0x74] ss:$8 sps:$4 sm:$0xff]   ;;  %v5145_v34 = vld [vmem:[#allocation2 + $0x80] ss:$8 sps:$4 sm:$0xff]  }
 0x15d   : > { %v6272_v7 = vpop.permute.xlu1 %891 }
 0x15e   : > { %v962_v22 = vmul.f32 %v6129_v13, %v6272_v7  ;;  %v963_v26 = vmul.f32 %v6134_v15, %v6272_v7  ;;  %v1139_v32 = vadd.f32 %v1107_v12, %v993_v8  ;;  %v1138_v33 = vadd.f32 %v1106_v11, %v992_v9  ;;  %v6300_v11 = vpop.permute.xlu0 %796 }
 0x15f   : > { %1835 = vmatpush1.bf16.msra.mxu1 %v5139_v47 }
 0x160   : > { %v995_v44 = vadd.f32 %v963_v26, %v849_v31  ;;  %v994_v45 = vadd.f32 %v962_v22, %v848_v27  ;;  %v1182_v50 = vadd.f32 %v6182_v38, %v1139_v32  ;;  %v1181_v53 = vadd.f32 %v6179_v37, %v1138_v33  ;;  %1836 = vmatprep.subr.bf16.mxu1 %v5140_v3  ;;  %v5143_v27 = vld [vmem:[#allocation2 + $0x84] ss:$8 sps:$4 sm:$0xff]  }
 0x162   : > { %v6286_v35 = vpop.permute.xlu1 %1037  ;;  %v1214_v12 = vmax.f32 %v1182_v50, 0.0  ;;  %v1213_v26 = vmax.f32 %v1181_v53, 0.0 }
 0x163   : > { %v1108_v42 = vmul.f32 %v6158_v24, %v6286_v35  ;;  %v1109_v43 = vmul.f32 %v6161_v25, %v6286_v35  ;;  %1837 = vmatpush1.bf16.msra.mxu1 %v5142_v10 }
 0x164   : > { %1838 = vmatprep.subr.bf16.mxu1 %v5143_v27 }
 0x165   : > { %v1141_v49 = vadd.f32 %v1109_v43, %v995_v44  ;;  %v1140_v51 = vadd.f32 %v1108_v42, %v994_v45  ;;  %v6308_v44 = vpop.permute.xlu0 %1041  ;;  %v5146_v45 = vld [vmem:[#allocation2 + $0x94] ss:$8 sps:$4 sm:$0xff]  }
 0x166   : > { %7320 = vst [vmem:[#allocation23_spill] sm:$0xff] %v6308_v44  ;;  %v1110_v53 = vmul.f32 %v6158_v24, %v6308_v44  ;;  %v1111_v3 = vmul.f32 %v6161_v25, %v6308_v44 }
 0x167   : > { %v6296_v54 = vpop.permute.xlu1 %771  ;;  %v1184_v8 = vadd.f32 %v6182_v38, %v1141_v49  ;;  %v1183_v9 = vadd.f32 %v6179_v37, %v1140_v51  ;;  %1839 = vmatpush1.bf16.msra.mxu1 %v5145_v34  ;;  %v5151_v34 = vld [vmem:[#allocation2 + $0xa0] ss:$8 sps:$4 sm:$0xff]  }
 0x168   : > { %7318 = vst [vmem:[#allocation21_spill] sm:$0xff] %v6296_v54  ;;  %v850_v47 = vmul.f32 %v6144_v18, %v6296_v54  ;;  %v851_v49 = vmul.f32 %v6147_v19, %v6296_v54  ;;  %1840 = vmatprep.subr.bf16.mxu1 %v5146_v45  ;;  %v2781_v45 = vmul.f32 %v6153_v21, %v6270_v6 }
 0x169   : > { %v1216_v22 = vmax.f32 %v1184_v8, 0.0  ;;  %v1215_v28 = vmax.f32 %v1183_v9, 0.0  ;;  %v5148_v9 = vld [vmem:[#allocation2 + $0x90] ss:$8 sps:$4 sm:$0xff]  }
 0x16b   : > { %v1275_v31 = vpack.c.bf16 %v1216_v22, %v1214_v12  ;;  %v1274_v32 = vpack.c.bf16 %v1215_v28, %v1213_v26  ;;  %v5149_v22 = vld [vmem:[#allocation2 + $0xa4] ss:$8 sps:$4 sm:$0xff]   ;;  %v852_v26 = vmul.f32 %v6144_v18, %v6270_v6  ;;  %v853_v28 = vmul.f32 %v6147_v19, %v6270_v6  ;;  %1841 = vmatpush1.bf16.msra.mxu1 %v5148_v9 }
 0x16c   : > { %v6302_v33 = vpop.permute.xlu1 %895  ;;  %1842 = vmatprep.subr.bf16.mxu1 %v5149_v22 }
 0x16d   : > { %7319 = vst [vmem:[#allocation22_spill] sm:$0xff] %v6302_v33  ;;  %v964_v42 = vmul.f32 %v6129_v13, %v6302_v33  ;;  %v965_v43 = vmul.f32 %v6134_v15, %v6302_v33  ;;  %1509 = vmatprep.mubr.bf16.mxu0 %v1275_v31 }
 0x16e   : > { %1510 = vmatmul.mubr.bf16.gmra.mrb[8].mxu0 %v1274_v32 }
 0x16f   : > { %v996_v50 = vadd.f32 %v964_v42, %v850_v47  ;;  %v997_v51 = vadd.f32 %v965_v43, %v851_v49  ;;  %v2780_v43 = vmul.f32 %v6150_v20, %v6270_v6  ;;  %1843 = vmatpush1.bf16.msra.mxu1 %v5151_v34 }
 0x170   : > { %v900_v8 = vpop.permute.xlu1 %899  ;;  %1844 = vmatprep.subr.bf16.mxu1 %v5152_v59 }
 0x171   : > { %v966_v10 = vmul.f32 %v6129_v13, %v900_v8  ;;  %v967_v12 = vmul.f32 %v6134_v15, %v900_v8  ;;  %v2830_v27 = vmul.f32 %v6137_v16, %v900_v8  ;;  %v2831_v31 = vmul.f32 %v6140_v17, %v900_v8 }
 0x172   : > { %v1142_v32 = vadd.f32 %v1110_v53, %v996_v50  ;;  %v1143_v42 = vadd.f32 %v1111_v3, %v997_v51 }
 0x173   : > { %v998_v47 = vadd.f32 %v966_v10, %v852_v26  ;;  %v999_v49 = vadd.f32 %v967_v12, %v853_v28  ;;  %v2862_v53 = vadd.f32 %v2830_v27, %v2780_v43  ;;  %v2863_v3 = vadd.f32 %v2831_v31, %v2781_v45  ;;  %v5154_v10 = vld [vmem:[#allocation2 + $0xb0] ss:$8 sps:$4 sm:$0xff]   ;;  %v5155_v12 = vld [vmem:[#allocation2 + $0xc4] ss:$8 sps:$4 sm:$0xff]   ;;  %v5158_v43 = vld [vmem:[#allocation2 + $0xd4] ss:$8 sps:$4 sm:$0xff]  }
 0x174   : > { %v1186_v52 = vadd.f32 %v6182_v38, %v1143_v42  ;;  %v1185_v6 = vadd.f32 %v6179_v37, %v1142_v32  ;;  %1845 = vmatpush1.bf16.msra.mxu1 %v5154_v10  ;;  %v5157_v32 = vld [vmem:[#allocation2 + $0xc0] ss:$8 sps:$4 sm:$0xff]   ;;  %v1050_v42 = vpop.permute.xlu0 %1049 }
 0x175   : > { %v1046_v62 = vpop.permute.xlu1 %1045  ;;  %1846 = vmatprep.subr.bf16.mxu1 %v5155_v12  ;;  %v1114_v12 = vmul.f32 %v6158_v24, %v1050_v42 }
 0x176   : > { %v1112_v56 = vmul.f32 %v6158_v24, %v1046_v62  ;;  %v1113_v61 = vmul.f32 %v6161_v25, %v1046_v62  ;;  %v2912_v50 = vmul.f32 %v6185_v39, %v1046_v62  ;;  %v2913_v51 = vmul.f32 %v6188_v40, %v1046_v62 }
 0x177   : > { %v1218_v27 = vmax.f32 %v1186_v52, 0.0 }
 0x178   : > { %v1144_v8 = vadd.f32 %v1112_v56, %v998_v47  ;;  %v1145_v9 = vadd.f32 %v1113_v61, %v999_v49  ;;  %v6336_v22 = vadd.f32 %v2912_v50, %v2862_v53  ;;  %v6338_v26 = vadd.f32 %v2913_v51, %v2863_v3  ;;  %1847 = vmatpush1.bf16.msra.mxu1 %v5157_v32 }
 0x179   : > { %v1217_v61 = vmax.f32 %v1185_v6, 0.0  ;;  %v2914_v50 = vmul.f32 %v6185_v39, %v1050_v42  ;;  %1848 = vmatprep.subr.bf16.mxu1 %v5158_v43 }
 0x17a   : > { %7321 = vst [vmem:[#allocation24_spill] sm:$0xff] %v6336_v22  ;;  %7322 = vst [vmem:[#allocation25_spill] sm:$0xff] %v6338_v26  ;;  %v782_v28 = vpop.permute.xlu1 %781  ;;  %v1188_v44 = vadd.f32 %v6182_v38, %v1145_v9  ;;  %v1187_v62 = vadd.f32 %v6179_v37, %v1144_v8  ;;  %v2915_v9 = vmul.f32 %v6188_v40, %v1050_v42 }
 0x17b   : > { %v2782_v45 = vmul.f32 %v6150_v20, %v782_v28  ;;  %v2783_v47 = vmul.f32 %v6153_v21, %v782_v28  ;;  %v854_v3 = vmul.f32 %v6144_v18, %v782_v28  ;;  %v855_v8 = vmul.f32 %v6147_v19, %v782_v28 }
 0x17c   : > { %v1220_v56 = vmax.f32 %v1188_v44, 0.0  ;;  %v1219_v31 = vmax.f32 %v1187_v62, 0.0  ;;  %v1115_v62 = vmul.f32 %v6161_v25, %v1050_v42  ;;  %v2785_v28 = vmul.f32 %v6153_v21, %v6288_v41 }
 0x17e   : > { %v1277_v34 = vpack.c.bf16 %v1220_v56, %v1218_v27  ;;  %v1276_v59 = vpack.c.bf16 %v1219_v31, %v1217_v61  ;;  %v2784_v31 = vmul.f32 %v6150_v20, %v6288_v41 }
 0x17f   : > { %v904_v49 = vpop.permute.xlu1 %903 }
 0x180   : > { %v968_v51 = vmul.f32 %v6129_v13, %v904_v49  ;;  %v969_v52 = vmul.f32 %v6134_v15, %v904_v49  ;;  %v2832_v44 = vmul.f32 %v6137_v16, %v904_v49  ;;  %v2833_v53 = vmul.f32 %v6140_v17, %v904_v49  ;;  %1519 = vmatprep.mubr.bf16.mxu0 %v1277_v34 }
 0x181   : > { %1520 = vmatmul.mubr.bf16.gmra.mrb[12].mxu0 %v1276_v59 }
 0x182   : > { %v2864_v6 = vadd.f32 %v2832_v44, %v2782_v45  ;;  %v2865_v10 = vadd.f32 %v2833_v53, %v2783_v47  ;;  %v1000_v27 = vadd.f32 %v968_v51, %v854_v3  ;;  %v1001_v56 = vadd.f32 %v969_v52, %v855_v8 }
 0x183   : > { %v908_v61 = vpop.permute.xlu1 %907  ;;  %v856_v51 = vmul.f32 %v6144_v18, %v6288_v41  ;;  %v857_v52 = vmul.f32 %v6147_v19, %v6288_v41 }
 0x184   : > { %v2834_v32 = vmul.f32 %v6137_v16, %v908_v61  ;;  %v2835_v34 = vmul.f32 %v6140_v17, %v908_v61  ;;  %v970_v59 = vmul.f32 %v6129_v13, %v908_v61  ;;  %v971_v43 = vmul.f32 %v6134_v15, %v908_v61 }
 0x185   : > { %v6362_v45 = vadd.f32 %v2914_v50, %v2864_v6  ;;  %v6364_v42 = vadd.f32 %v2915_v9, %v2865_v10  ;;  %v1147_v44 = vadd.f32 %v1115_v62, %v1001_v56  ;;  %v1146_v53 = vadd.f32 %v1114_v12, %v1000_v27 }
 0x186   : > { %v2866_v47 = vadd.f32 %v2834_v32, %v2784_v31  ;;  %v2867_v49 = vadd.f32 %v2835_v34, %v2785_v28  ;;  %v1002_v8 = vadd.f32 %v970_v59, %v856_v51  ;;  %v1003_v26 = vadd.f32 %v971_v43, %v857_v52 }
 0x187   : > { %7323 = vst [vmem:[#allocation26_spill] sm:$0xff] %v6362_v45  ;;  %7324 = vst [vmem:[#allocation27_spill] sm:$0xff] %v6364_v42  ;;  %v1190_v31 = vadd.f32 %v6182_v38, %v1147_v44  ;;  %v1189_v28 = vadd.f32 %v6179_v37, %v1146_v53  ;;  %v5166_v45 = vld [vmem:[#allocation2 + $0xf0] ss:$8 sps:$4 sm:$0xff]  }
 0x188   : > { %v1054_v3 = vpop.permute.xlu1 %1053 }
 0x189   : > { %v1116_v22 = vmul.f32 %v6158_v24, %v1054_v3  ;;  %v1117_v50 = vmul.f32 %v6161_v25, %v1054_v3  ;;  %v2916_v9 = vmul.f32 %v6185_v39, %v1054_v3  ;;  %v2917_v6 = vmul.f32 %v6188_v40, %v1054_v3 }
 0x18a   : > { %v1222_v32 = vmax.f32 %v1190_v31, 0.0  ;;  %v1221_v59 = vmax.f32 %v1189_v28, 0.0 }
 0x18b   : > { %v1148_v10 = vadd.f32 %v1116_v22, %v1002_v8  ;;  %v1149_v61 = vadd.f32 %v1117_v50, %v1003_v26  ;;  %v6376_v41 = vadd.f32 %v2916_v9, %v2866_v47  ;;  %v6378_v12 = vadd.f32 %v2917_v6, %v2867_v49 }
 0x18c   : > { %v2788_v9 = vmul.f32 %v6150_v20, %v6300_v11  ;;  %v2789_v6 = vmul.f32 %v6153_v21, %v6300_v11 }
 0x18d   : > { %7325 = vst [vmem:[#allocation28_spill] sm:$0xff] %v6376_v41  ;;  %7326 = vst [vmem:[#allocation29_spill] sm:$0xff] %v6378_v12  ;;  %v792_v62 = vpop.permute.xlu1 %791  ;;  %v1192_v27 = vadd.f32 %v6182_v38, %v1149_v61  ;;  %v1191_v56 = vadd.f32 %v6179_v37, %v1148_v10  ;;  %v1058_v10 = vpop.permute.xlu0 %1057 }
 0x18e   : > { %v2786_v26 = vmul.f32 %v6150_v20, %v792_v62  ;;  %v2787_v52 = vmul.f32 %v6153_v21, %v792_v62  ;;  %v858_v8 = vmul.f32 %v6144_v18, %v792_v62  ;;  %v859_v50 = vmul.f32 %v6147_v19, %v792_v62 }
 0x18f   : > { %v1224_v34 = vmax.f32 %v1192_v27, 0.0  ;;  %v1223_v43 = vmax.f32 %v1191_v56, 0.0  ;;  %v1119_v62 = vmul.f32 %v6161_v25, %v1058_v10 }
 0x191   : > { %v1279_v51 = vpack.c.bf16 %v1224_v34, %v1222_v32  ;;  %v1278_v22 = vpack.c.bf16 %v1223_v43, %v1221_v59  ;;  %v2918_v32 = vmul.f32 %v6185_v39, %v1058_v10  ;;  %v2919_v34 = vmul.f32 %v6188_v40, %v1058_v10 }
 0x192   : > { %v912_v44 = vpop.permute.xlu1 %911  ;;  %v1118_v59 = vmul.f32 %v6158_v24, %v1058_v10 }
 0x193   : > { %v972_v47 = vmul.f32 %v6129_v13, %v912_v44  ;;  %v973_v49 = vmul.f32 %v6134_v15, %v912_v44  ;;  %v2836_v53 = vmul.f32 %v6137_v16, %v912_v44  ;;  %v2837_v3 = vmul.f32 %v6140_v17, %v912_v44  ;;  %1529 = vmatprep.mubr.bf16.mxu0 %v1279_v51 }
 0x194   : > { %1530 = vmatmul.mubr.bf16.gmra.mrb[16].mxu0 %v1278_v22 }
 0x195   : > { %v2868_v61 = vadd.f32 %v2836_v53, %v2786_v26  ;;  %v2869_v31 = vadd.f32 %v2837_v3, %v2787_v52  ;;  %v1004_v28 = vadd.f32 %v972_v47, %v858_v8  ;;  %v1005_v27 = vadd.f32 %v973_v49, %v859_v50 }
 0x196   : > { %v916_v56 = vpop.permute.xlu1 %915  ;;  %v860_v53 = vmul.f32 %v6144_v18, %v6300_v11  ;;  %v861_v3 = vmul.f32 %v6147_v19, %v6300_v11 }
 0x197   : > { %v2838_v43 = vmul.f32 %v6137_v16, %v916_v56  ;;  %v2839_v51 = vmul.f32 %v6140_v17, %v916_v56  ;;  %v974_v22 = vmul.f32 %v6129_v13, %v916_v56  ;;  %v975_v26 = vmul.f32 %v6134_v15, %v916_v56 }
 0x198   : > { %v6402_v52 = vadd.f32 %v2918_v32, %v2868_v61  ;;  %v6404_v44 = vadd.f32 %v2919_v34, %v2869_v31  ;;  %v1151_v8 = vadd.f32 %v1119_v62, %v1005_v27  ;;  %v1150_v50 = vadd.f32 %v1118_v59, %v1004_v28 }
 0x199   : > { %v2870_v47 = vadd.f32 %v2838_v43, %v2788_v9  ;;  %v2871_v49 = vadd.f32 %v2839_v51, %v2789_v6  ;;  %v1006_v12 = vadd.f32 %v974_v22, %v860_v53  ;;  %v1007_v41 = vadd.f32 %v975_v26, %v861_v3  ;;  %v1066_v43 = vpop.permute.xlu0 %1065 }
 0x19a   : > { %7327 = vst [vmem:[#allocation30_spill] sm:$0xff] %v6402_v52  ;;  %7328 = vst [vmem:[#allocation31_spill] sm:$0xff] %v6404_v44  ;;  %v1194_v32 = vadd.f32 %v6182_v38, %v1151_v8  ;;  %v1193_v34 = vadd.f32 %v6179_v37, %v1150_v50 }
 0x19b   : > { %v1062_v10 = vpop.permute.xlu1 %1061 }
 0x19c   : > { %v1120_v42 = vmul.f32 %v6158_v24, %v1062_v10  ;;  %v1121_v61 = vmul.f32 %v6161_v25, %v1062_v10  ;;  %v2920_v31 = vmul.f32 %v6185_v39, %v1062_v10  ;;  %v2921_v9 = vmul.f32 %v6188_v40, %v1062_v10 }
 0x19d   : > { %v1226_v51 = vmax.f32 %v1194_v32, 0.0  ;;  %v1225_v26 = vmax.f32 %v1193_v34, 0.0  ;;  %v807_v8 = vpop.permute.xlu0 %806 }
 0x19e   : > { %v1152_v6 = vadd.f32 %v1120_v42, %v1006_v12  ;;  %v1153_v56 = vadd.f32 %v1121_v61, %v1007_v41  ;;  %v6416_v11 = vadd.f32 %v2920_v31, %v2870_v47  ;;  %v6418_v28 = vadd.f32 %v2921_v9, %v2871_v49 }
 0x19f   : > { %v1122_v31 = vmul.f32 %v6158_v24, %v1066_v43  ;;  %v1123_v9 = vmul.f32 %v6161_v25, %v1066_v43  ;;  %v2792_v32 = vmul.f32 %v6150_v20, %v807_v8  ;;  %v2793_v34 = vmul.f32 %v6153_v21, %v807_v8 }
 0x1a0   : > { %7329 = vst [vmem:[#allocation32_spill] sm:$0xff] %v6416_v11  ;;  %7330 = vst [vmem:[#allocation33_spill] sm:$0xff] %v6418_v28  ;;  %v802_v27 = vpop.permute.xlu1 %801  ;;  %v1196_v59 = vadd.f32 %v6182_v38, %v1153_v56  ;;  %v1195_v62 = vadd.f32 %v6179_v37, %v1152_v6  ;;  %v864_v28 = vmul.f32 %v6144_v18, %v807_v8 }
 0x1a1   : > { %v2790_v12 = vmul.f32 %v6150_v20, %v802_v27  ;;  %v2791_v3 = vmul.f32 %v6153_v21, %v802_v27  ;;  %v862_v6 = vmul.f32 %v6144_v18, %v802_v27  ;;  %v863_v56 = vmul.f32 %v6147_v19, %v802_v27 }
 0x1a2   : > { %v1228_v22 = vmax.f32 %v1196_v59, 0.0  ;;  %v1227_v53 = vmax.f32 %v1195_v62, 0.0  ;;  %v5160_v59 = vld [vmem:[#allocation2 + $0xd0] ss:$8 sps:$4 sm:$0xff]   ;;  %v865_v11 = vmul.f32 %v6147_v19, %v807_v8  ;;  %v5164_v8 = vld [vmem:[#allocation2 + $0xf4] ss:$8 sps:$4 sm:$0xff]  }
 0x1a3   : > { %1849 = vmatpush1.bf16.msra.mxu1 %v5160_v59 }
 0x1a4   : > { %v1281_v42 = vpack.c.bf16 %v1228_v22, %v1226_v51  ;;  %v1280_v41 = vpack.c.bf16 %v1227_v53, %v1225_v26 }
 0x1a5   : > { %v920_v47 = vpop.permute.xlu1 %919 }
 0x1a6   : > { %v976_v49 = vmul.f32 %v6129_v13, %v920_v47  ;;  %v977_v50 = vmul.f32 %v6134_v15, %v920_v47  ;;  %v2840_v10 = vmul.f32 %v6137_v16, %v920_v47  ;;  %v2841_v61 = vmul.f32 %v6140_v17, %v920_v47  ;;  %1539 = vmatprep.mubr.bf16.mxu0 %v1281_v42 }
 0x1a7   : > { %1540 = vmatmul.mubr.bf16.gmra.mrb[20].mxu0 %v1280_v41  ;;  %v2922_v42 = vmul.f32 %v6185_v39, %v1066_v43  ;;  %v2923_v47 = vmul.f32 %v6188_v40, %v1066_v43 }
 0x1a8   : > { %v2872_v62 = vadd.f32 %v2840_v10, %v2790_v12  ;;  %v2873_v51 = vadd.f32 %v2841_v61, %v2791_v3  ;;  %v1008_v22 = vadd.f32 %v976_v49, %v862_v6  ;;  %v1009_v26 = vadd.f32 %v977_v50, %v863_v56  ;;  %v5161_v3 = vld [vmem:[#allocation2 + $0xe4] ss:$8 sps:$4 sm:$0xff]   ;;  %v5163_v10 = vld [vmem:[#allocation2 + $0xe0] ss:$8 sps:$4 sm:$0xff]  }
 0x1a9   : > { %v924_v53 = vpop.permute.xlu1 %923  ;;  %1850 = vmatprep.subr.bf16.mxu1 %v5161_v3 }
 0x1aa   : > { %v2842_v27 = vmul.f32 %v6137_v16, %v924_v53  ;;  %v2843_v41 = vmul.f32 %v6140_v17, %v924_v53  ;;  %v978_v44 = vmul.f32 %v6129_v13, %v924_v53  ;;  %v979_v12 = vmul.f32 %v6134_v15, %v924_v53  ;;  %1851 = vmatpush1.bf16.msra.mxu1 %v5163_v10 }
 0x1ab   : > { %v6442_v49 = vadd.f32 %v2922_v42, %v2872_v62  ;;  %v6444_v50 = vadd.f32 %v2923_v47, %v2873_v51  ;;  %v1155_v6 = vadd.f32 %v1123_v9, %v1009_v26  ;;  %v1154_v56 = vadd.f32 %v1122_v31, %v1008_v22  ;;  %1852 = vmatprep.subr.bf16.mxu1 %v5164_v8  ;;  %v817_v42 = vpop.permute.xlu0 %816 }
 0x1ac   : > { %v2874_v43 = vadd.f32 %v2842_v27, %v2792_v32  ;;  %v2875_v61 = vadd.f32 %v2843_v41, %v2793_v34  ;;  %v1010_v59 = vadd.f32 %v978_v44, %v864_v28  ;;  %v1011_v54 = vadd.f32 %v979_v12, %v865_v11 }
 0x1ad   : > { %v1198_v31 = vadd.f32 %v6182_v38, %v1155_v6  ;;  %v1197_v9 = vadd.f32 %v6179_v37, %v1154_v56 }
 0x1ae   : > { %v1070_v52 = vpop.permute.xlu1 %1069  ;;  %1853 = vmatpush1.bf16.msra.mxu1 %v5166_v45 }
 0x1af   : > { %v1124_v33 = vmul.f32 %v6158_v24, %v1070_v52  ;;  %v1125_v53 = vmul.f32 %v6161_v25, %v1070_v52  ;;  %v2924_v62 = vmul.f32 %v6185_v39, %v1070_v52  ;;  %v2925_v51 = vmul.f32 %v6188_v40, %v1070_v52  ;;  %v6464_v56 = vpop.permute.xlu0 %1073 }
 0x1b0   : > { %v1230_v47 = vmax.f32 %v1198_v31, 0.0  ;;  %v1229_v52 = vmax.f32 %v1197_v9, 0.0  ;;  %v1127_v31 = vmul.f32 %v6161_v25, %v6464_v56 }
 0x1b1   : > { %v1156_v32 = vadd.f32 %v1124_v33, %v1010_v59  ;;  %v1157_v34 = vadd.f32 %v1125_v53, %v1011_v54  ;;  %v6452_v22 = vadd.f32 %v2924_v62, %v2874_v43  ;;  %v6454_v44 = vadd.f32 %v2925_v51, %v2875_v61 }
 0x1b3   : > { %v812_v11 = vpop.permute.xlu1 %811  ;;  %v1200_v28 = vadd.f32 %v6182_v38, %v1157_v34  ;;  %v1199_v26 = vadd.f32 %v6179_v37, %v1156_v32  ;;  %v1126_v34 = vmul.f32 %v6158_v24, %v6464_v56 }
 0x1b4   : > { %v2794_v12 = vmul.f32 %v6150_v20, %v812_v11  ;;  %v2795_v45 = vmul.f32 %v6153_v21, %v812_v11  ;;  %v866_v8 = vmul.f32 %v6144_v18, %v812_v11  ;;  %v867_v59 = vmul.f32 %v6147_v19, %v812_v11 }
 0x1b5   : > { %v1232_v27 = vmax.f32 %v1200_v28, 0.0  ;;  %v1231_v33 = vmax.f32 %v1199_v26, 0.0  ;;  %v2796_v28 = vmul.f32 %v6150_v20, %v817_v42  ;;  %v2797_v26 = vmul.f32 %v6153_v21, %v817_v42 }
 0x1b7   : > { %v1283_v54 = vpack.c.bf16 %v1232_v27, %v1230_v47  ;;  %v1282_v41 = vpack.c.bf16 %v1231_v33, %v1229_v52  ;;  %v868_v33 = vmul.f32 %v6144_v18, %v817_v42 }
 0x1b8   : > { %v928_v3 = vpop.permute.xlu1 %927 }
 0x1b9   : > { %v980_v10 = vmul.f32 %v6129_v13, %v928_v3  ;;  %v981_v43 = vmul.f32 %v6134_v15, %v928_v3  ;;  %v2844_v61 = vmul.f32 %v6137_v16, %v928_v3  ;;  %v2845_v6 = vmul.f32 %v6140_v17, %v928_v3  ;;  %1549 = vmatprep.mubr.bf16.mxu0 %v1283_v54 }
 0x1ba   : > { %1550 = vmatmul.mubr.bf16.gmra.mrb[24].mxu0 %v1282_v41  ;;  %v869_v54 = vmul.f32 %v6147_v19, %v817_v42 }
 0x1bb   : > { %v6468_v53 = vadd.f32 %v2844_v61, %v2794_v12  ;;  %v6470_v62 = vadd.f32 %v2845_v6, %v2795_v45  ;;  %v1012_v51 = vadd.f32 %v980_v10, %v866_v8  ;;  %v1013_v32 = vadd.f32 %v981_v43, %v867_v59 }
 0x1bc   : > { %v932_v9 = vpop.permute.xlu1 %931 }
 0x1bd   : > { %v982_v11 = vmul.f32 %v6129_v13, %v932_v9  ;;  %v983_v47 = vmul.f32 %v6134_v15, %v932_v9  ;;  %v2846_v27 = vmul.f32 %v6137_v16, %v932_v9  ;;  %v2847_v52 = vmul.f32 %v6140_v17, %v932_v9 }
 0x1be   : > { %v1158_v41 = vadd.f32 %v1126_v34, %v1012_v51  ;;  %v1159_v12 = vadd.f32 %v1127_v31, %v1013_v32 }
 0x1bf   : > { %v6484_v45 = vadd.f32 %v2846_v27, %v2796_v28  ;;  %v6486_v3 = vadd.f32 %v2847_v52, %v2797_v26  ;;  %v1014_v43 = vadd.f32 %v982_v11, %v868_v33  ;;  %v1015_v13 = vadd.f32 %v983_v47, %v869_v54 }
 0x1c0   : > { %v1202_v19 = vadd.f32 %v6182_v38, %v1159_v12  ;;  %v1201_v42 = vadd.f32 %v6179_v37, %v1158_v41 }
 0x1c1   : > { %v6488_v10 = vpop.permute.xlu1 %1077 }
 0x1c2   : > { %v1128_v15 = vmul.f32 %v6158_v24, %v6488_v10  ;;  %v1129_v61 = vmul.f32 %v6161_v25, %v6488_v10  ;;  %v1234_v51 = vmax.f32 %v1202_v19, 0.0  ;;  %v1233_v34 = vmax.f32 %v1201_v42, 0.0  ;;  %v1269_v24 = vld [vmem:[%s7331_s21] sm:$0x3] }
 0x1c3   : > { %v6502_v25 = vrot.slane %v1269_v24, %v6097_v58  ;;  %v6505_v26 = vrot.slane %v1269_v24, %v6088_v55 }
 0x1c4   : > { %v1160_v6 = vadd.f32 %v1128_v15, %v1014_v43  ;;  %v1161_v18 = vadd.f32 %v1129_v61, %v1015_v13  ;;  %v5167_v43 = vld [vmem:[#allocation4] ss:$8 sps:$4 sm:$0xff]   ;;  %v5169_v13 = vld [vmem:[#allocation4 + $0x4] ss:$8 sps:$4 sm:$0xff]  }
 0x1c5   : > { %2187 = vmatprep.subr.bf16.mxu0 %v5169_v13  ;;  %v5184_v13 = vld [vmem:[#allocation4 + $0x54] ss:$8 sps:$4 sm:$0xff]  }
 0x1c6   : > { %v1204_v8 = vadd.f32 %v6182_v38, %v1161_v18  ;;  %v1203_v59 = vadd.f32 %v6179_v37, %v1160_v6  ;;  %v5172_v6 = vld [vmem:[#allocation4 + $0x14] ss:$8 sps:$4 sm:$0xff]   ;;  %2188 = vmatpush1.bf16.msra.mxu0 %v5167_v43  ;;  %v5179_v43 = vld [vmem:[#allocation4 + $0x40] ss:$8 sps:$4 sm:$0xff]  }
 0x1c7   : > { %2189 = vmatprep.subr.bf16.mxu0 %v5172_v6 }
 0x1c8   : > { %v1236_v32 = vmax.f32 %v1204_v8, 0.0  ;;  %v1235_v31 = vmax.f32 %v1203_v59, 0.0  ;;  %v5170_v8 = vld [vmem:[#allocation4 + $0x10] ss:$8 sps:$4 sm:$0xff]  }
 0x1ca   : > { %v1285_v9 = vpack.c.bf16 %v1236_v32, %v1234_v51  ;;  %v1284_v28 = vpack.c.bf16 %v1235_v31, %v1233_v34  ;;  %v5175_v32 = vld [vmem:[#allocation4 + $0x24] ss:$8 sps:$4 sm:$0xff]   ;;  %2190 = vmatpush1.bf16.msra.mxu0 %v5170_v8 }
 0x1cb   : > { %2191 = vmatprep.subr.bf16.mxu0 %v5175_v32 }
 0x1cc   : > { %1559 = vmatprep.mubr.bf16.mxu0 %v1285_v9 }
 0x1cd   : > { %1560 = vmatmul.mubr.bf16.gmra.mrb[28].mxu0 %v1284_v28 }
 0x225   : > { %v1491_v38 = vpop.f32.mrb[0].mxu0 }
 0x226   : > { %v1492_v37 = vadd.f32 %v1491_v38, %v6502_v25  ;;  %v1493_v11 = vpop.f32.mrb[1].mxu0  ;;  %v5173_v38 = vld [vmem:[#allocation4 + $0x20] ss:$8 sps:$4 sm:$0xff]  }
 0x227   : > { %v1494_v47 = vadd.f32 %v1493_v11, %v6505_v26  ;;  %v1495_v27 = vpop.f32.mrb[2].mxu0  ;;  %2192 = vmatpush1.bf16.msra.mxu0 %v5173_v38 }
 0x228   : > { %v1496_v52 = vadd.f32 %v1495_v27, %v6502_v25  ;;  %v1497_v33 = vpop.f32.mrb[3].mxu0  ;;  %v1570_v41 = vmax.f32 %v1492_v37, 0.0 }
 0x229   : > { %v1498_v54 = vadd.f32 %v1497_v33, %v6505_v26  ;;  %v1571_v15 = vmax.f32 %v1494_v47, 0.0  ;;  %v5178_v47 = vld [vmem:[#allocation4 + $0x34] ss:$8 sps:$4 sm:$0xff]  }
 0x22a   : > { %v1572_v12 = vmax.f32 %v1496_v52, 0.0  ;;  %2193 = vmatprep.subr.bf16.mxu0 %v5178_v47 }
 0x22b   : > { %v1573_v61 = vmax.f32 %v1498_v54, 0.0 }
 0x22c   : > { %v1635_v18 = vpack.c.bf16 %v1572_v12, %v1570_v41  ;;  %v5176_v41 = vld [vmem:[#allocation4 + $0x30] ss:$8 sps:$4 sm:$0xff]   ;;  %v5181_v12 = vld [vmem:[#allocation4 + $0x44] ss:$8 sps:$4 sm:$0xff]  }
 0x22d   : > { %v1636_v42 = vpack.c.bf16 %v1573_v61, %v1571_v15  ;;  %2194 = vmatpush1.bf16.msra.mxu0 %v5176_v41  ;;  %v5182_v15 = vld [vmem:[#allocation4 + $0x50] ss:$8 sps:$4 sm:$0xff]   ;;  %v5187_v61 = vld [vmem:[#allocation4 + $0x64] ss:$8 sps:$4 sm:$0xff]  }
 0x22e   : > { %v1501_v19 = vpop.f32.mrb[4].mxu0  ;;  %2195 = vmatprep.subr.bf16.mxu0 %v5181_v12  ;;  %v5199_v41 = vld [vmem:[#allocation4 + $0xa4] ss:$8 sps:$4 sm:$0xff]   ;;  %v5197_v12 = vld [vmem:[#allocation4 + $0xa0] ss:$8 sps:$4 sm:$0xff]  }
 0x22f   : > { %v1502_v59 = vadd.f32 %v1501_v19, %v6502_v25  ;;  %v1503_v51 = vpop.f32.mrb[5].mxu0  ;;  %1854 = vmatprep.mubr.bf16.mxu1 %v1636_v42  ;;  %v5185_v42 = vld [vmem:[#allocation4 + $0x60] ss:$8 sps:$4 sm:$0xff]  }
 0x230   : > { %v1504_v34 = vadd.f32 %v1503_v51, %v6505_v26  ;;  %v1505_v31 = vpop.f32.mrb[6].mxu0  ;;  %1855 = vmatmul.mubr.bf16.vlgmr.msra.gmra.mrb[0].mxu1 %v1635_v18  ;;  %v5190_v51 = vld [vmem:[#allocation4 + $0x74] ss:$8 sps:$4 sm:$0xff]  }
 0x231   : > { %v1506_v9 = vadd.f32 %v1505_v31, %v6502_v25  ;;  %v1507_v28 = vpop.f32.mrb[7].mxu0  ;;  %v1574_v37 = vmax.f32 %v1502_v59, 0.0  ;;  %2196 = vmatpush1.bf16.msra.mxu0 %v5179_v43  ;;  %v5202_v43 = vld [vmem:[#allocation4 + $0xb4] ss:$8 sps:$4 sm:$0xff]  }
 0x232   : > { %v1508_v24 = vadd.f32 %v1507_v28, %v6505_v26  ;;  %v1575_v27 = vmax.f32 %v1504_v34, 0.0  ;;  %2197 = vmatprep.subr.bf16.mxu0 %v5184_v13 }
 0x233   : > { %v1576_v11 = vmax.f32 %v1506_v9, 0.0 }
 0x234   : > { %v1577_v52 = vmax.f32 %v1508_v24, 0.0  ;;  %v5188_v24 = vld [vmem:[#allocation4 + $0x70] ss:$8 sps:$4 sm:$0xff]  }
 0x235   : > { %v1637_v33 = vpack.c.bf16 %v1576_v11, %v1574_v37  ;;  %2198 = vmatpush1.bf16.msra.mxu0 %v5182_v15  ;;  %v5193_v11 = vld [vmem:[#allocation4 + $0x84] ss:$8 sps:$4 sm:$0xff]  }
 0x236   : > { %v1638_v54 = vpack.c.bf16 %v1577_v52, %v1575_v27  ;;  %2199 = vmatprep.subr.bf16.mxu0 %v5187_v61  ;;  %v5191_v52 = vld [vmem:[#allocation4 + $0x80] ss:$8 sps:$4 sm:$0xff]  }
 0x238   : > { %1864 = vmatprep.mubr.bf16.mxu1 %v1638_v54  ;;  %v5194_v54 = vld [vmem:[#allocation4 + $0x90] ss:$8 sps:$4 sm:$0xff]  }
 0x239   : > { %1865 = vmatmul.mubr.bf16.gmra.mrb[4].mxu1 %v1637_v33  ;;  %2200 = vmatpush1.bf16.msra.mxu0 %v5185_v42  ;;  %v5196_v33 = vld [vmem:[#allocation4 + $0x94] ss:$8 sps:$4 sm:$0xff]  }
 0x23a   : > { %2201 = vmatprep.subr.bf16.mxu0 %v5190_v51 }
 0x23d   : > { %2202 = vmatpush1.bf16.msra.mxu0 %v5188_v24 }
 0x23e   : > { %2203 = vmatprep.subr.bf16.mxu0 %v5193_v11  ;;  %v5206_v11 = vld [vmem:[#allocation4 + $0xd0] ss:$8 sps:$4 sm:$0xff]  }
 0x241   : > { %v1511_v6 = vpop.f32.mrb[8].mxu0  ;;  %2204 = vmatpush1.bf16.msra.mxu0 %v5191_v52 }
 0x242   : > { %v1512_v18 = vadd.f32 %v1511_v6, %v6502_v25  ;;  %v1513_v19 = vpop.f32.mrb[9].mxu0  ;;  %2205 = vmatprep.subr.bf16.mxu0 %v5196_v33 }
 0x243   : > { %v1514_v8 = vadd.f32 %v1513_v19, %v6505_v26  ;;  %v1515_v59 = vpop.f32.mrb[10].mxu0  ;;  %v5200_v19 = vld [vmem:[#allocation4 + $0xb0] ss:$8 sps:$4 sm:$0xff]  }
 0x244   : > { %v1516_v32 = vadd.f32 %v1515_v59, %v6502_v25  ;;  %v1517_v34 = vpop.f32.mrb[11].mxu0  ;;  %v1578_v9 = vmax.f32 %v1512_v18, 0.0  ;;  %v5205_v59 = vld [vmem:[#allocation4 + $0xc4] ss:$8 sps:$4 sm:$0xff]  }
 0x245   : > { %v1518_v31 = vadd.f32 %v1517_v34, %v6505_v26  ;;  %v1579_v38 = vmax.f32 %v1514_v8, 0.0  ;;  %2206 = vmatpush1.bf16.msra.mxu0 %v5194_v54 }
 0x246   : > { %v1580_v28 = vmax.f32 %v1516_v32, 0.0  ;;  %2207 = vmatprep.subr.bf16.mxu0 %v5199_v41 }
 0x247   : > { %v1581_v37 = vmax.f32 %v1518_v31, 0.0 }
 0x248   : > { %v1639_v47 = vpack.c.bf16 %v1580_v28, %v1578_v9  ;;  %v5203_v28 = vld [vmem:[#allocation4 + $0xc0] ss:$8 sps:$4 sm:$0xff]  }
 0x249   : > { %v1640_v27 = vpack.c.bf16 %v1581_v37, %v1579_v38  ;;  %2208 = vmatpush1.bf16.msra.mxu0 %v5197_v12  ;;  %v5208_v38 = vld [vmem:[#allocation4 + $0xd4] ss:$8 sps:$4 sm:$0xff]  }
 0x24a   : > { %2209 = vmatprep.subr.bf16.mxu0 %v5202_v43 }
 0x24b   : > { %1874 = vmatprep.mubr.bf16.mxu1 %v1640_v27 }
 0x24c   : > { %1875 = vmatmul.mubr.bf16.gmra.mrb[8].mxu1 %v1639_v47 }
 0x24d   : > { %2210 = vmatpush1.bf16.msra.mxu0 %v5200_v19 }
 0x24e   : > { %2211 = vmatprep.subr.bf16.mxu0 %v5205_v59 }
 0x251   : > { %2212 = vmatpush1.bf16.msra.mxu0 %v5203_v28 }
 0x252   : > { %2213 = vmatprep.subr.bf16.mxu0 %v5208_v38 }
 0x254   : > { %v1521_v13 = vpop.f32.mrb[12].mxu0 }
 0x255   : > { %v1522_v15 = vadd.f32 %v1521_v13, %v6502_v25  ;;  %v1523_v61 = vpop.f32.mrb[13].mxu0  ;;  %2214 = vmatpush1.bf16.msra.mxu0 %v5206_v11 }
 0x256   : > { %v1524_v6 = vadd.f32 %v1523_v61, %v6505_v26  ;;  %v1525_v18 = vpop.f32.mrb[14].mxu0 }
 0x257   : > { %v1526_v42 = vadd.f32 %v1525_v18, %v6502_v25  ;;  %v1527_v8 = vpop.f32.mrb[15].mxu0  ;;  %v1582_v32 = vmax.f32 %v1522_v15, 0.0 }
 0x258   : > { %v1528_v51 = vadd.f32 %v1527_v8, %v6505_v26  ;;  %v1583_v31 = vmax.f32 %v1524_v6, 0.0 }
 0x259   : > { %v1584_v34 = vmax.f32 %v1526_v42, 0.0 }
 0x25a   : > { %v1585_v9 = vmax.f32 %v1528_v51, 0.0 }
 0x25b   : > { %v1641_v24 = vpack.c.bf16 %v1584_v34, %v1582_v32 }
 0x25c   : > { %v1642_v37 = vpack.c.bf16 %v1585_v9, %v1583_v31 }
 0x25e   : > { %1884 = vmatprep.mubr.bf16.mxu1 %v1642_v37 }
 0x25f   : > { %1885 = vmatmul.mubr.bf16.gmra.mrb[12].mxu1 %v1641_v24 }
 0x267   : > { %v1531_v47 = vpop.f32.mrb[16].mxu0 }
 0x268   : > { %v1532_v27 = vadd.f32 %v1531_v47, %v6502_v25  ;;  %v1533_v52 = vpop.f32.mrb[17].mxu0 }
 0x269   : > { %v1534_v33 = vadd.f32 %v1533_v52, %v6505_v26  ;;  %v1535_v54 = vpop.f32.mrb[18].mxu0  ;;  %v5209_v52 = vld [vmem:[#allocation4 + $0xe0] ss:$8 sps:$4 sm:$0xff]  }
 0x26a   : > { %v1536_v41 = vadd.f32 %v1535_v54, %v6502_v25  ;;  %v1537_v12 = vpop.f32.mrb[19].mxu0  ;;  %v1586_v13 = vmax.f32 %v1532_v27, 0.0  ;;  %v5211_v27 = vld [vmem:[#allocation4 + $0xe4] ss:$8 sps:$4 sm:$0xff]   ;;  %v5214_v54 = vld [vmem:[#allocation4 + $0xf4] ss:$8 sps:$4 sm:$0xff]  }
 0x26b   : > { %v1538_v43 = vadd.f32 %v1537_v12, %v6505_v26  ;;  %v1587_v61 = vmax.f32 %v1534_v33, 0.0  ;;  %2215 = vmatprep.subr.bf16.mxu0 %v5211_v27  ;;  %v5212_v33 = vld [vmem:[#allocation4 + $0xf0] ss:$8 sps:$4 sm:$0xff]  }
 0x26c   : > { %v1588_v15 = vmax.f32 %v1536_v41, 0.0  ;;  %2216 = vmatpush1.bf16.msra.mxu0 %v5209_v52 }
 0x26d   : > { %v1589_v6 = vmax.f32 %v1538_v43, 0.0  ;;  %2217 = vmatprep.subr.bf16.mxu0 %v5214_v54 }
 0x26e   : > { %v1643_v18 = vpack.c.bf16 %v1588_v15, %v1586_v13 }
 0x26f   : > { %v1644_v19 = vpack.c.bf16 %v1589_v6, %v1587_v61 }
 0x270   : > { %2218 = vmatpush1.bf16.msra.mxu0 %v5212_v33 }
 0x271   : > { %1894 = vmatprep.mubr.bf16.mxu1 %v1644_v19 }
 0x272   : > { %1895 = vmatmul.mubr.bf16.gmra.mrb[16].mxu1 %v1643_v18 }
 0x27a   : > { %v1541_v42 = vpop.f32.mrb[20].mxu0 }
 0x27b   : > { %v1542_v8 = vadd.f32 %v1541_v42, %v6502_v25  ;;  %v1543_v59 = vpop.f32.mrb[21].mxu0 }
 0x27c   : > { %v1544_v51 = vadd.f32 %v1543_v59, %v6505_v26  ;;  %v1545_v32 = vpop.f32.mrb[22].mxu0 }
 0x27d   : > { %v1546_v34 = vadd.f32 %v1545_v32, %v6502_v25  ;;  %v1547_v31 = vpop.f32.mrb[23].mxu0  ;;  %v1590_v28 = vmax.f32 %v1542_v8, 0.0 }
 0x27e   : > { %v1548_v9 = vadd.f32 %v1547_v31, %v6505_v26  ;;  %v1591_v38 = vmax.f32 %v1544_v51, 0.0 }
 0x27f   : > { %v1592_v24 = vmax.f32 %v1546_v34, 0.0 }
 0x280   : > { %v1593_v37 = vmax.f32 %v1548_v9, 0.0 }
 0x281   : > { %v1645_v11 = vpack.c.bf16 %v1592_v24, %v1590_v28 }
 0x282   : > { %v1646_v47 = vpack.c.bf16 %v1593_v37, %v1591_v38 }
 0x284   : > { %1904 = vmatprep.mubr.bf16.mxu1 %v1646_v47 }
 0x285   : > { %1905 = vmatmul.mubr.bf16.gmra.mrb[20].mxu1 %v1645_v11 }
 0x28d   : > { %v1551_v41 = vpop.f32.mrb[24].mxu0 }
 0x28e   : > { %v1552_v12 = vadd.f32 %v1551_v41, %v6502_v25  ;;  %v1553_v43 = vpop.f32.mrb[25].mxu0 }
 0x28f   : > { %v1554_v13 = vadd.f32 %v1553_v43, %v6505_v26  ;;  %v1555_v15 = vpop.f32.mrb[26].mxu0 }
 0x290   : > { %v1556_v61 = vadd.f32 %v1555_v15, %v6502_v25  ;;  %v1557_v6 = vpop.f32.mrb[27].mxu0  ;;  %v1594_v19 = vmax.f32 %v1552_v12, 0.0  ;;  %v1634_v12 = vld [vmem:[%s7259_s6] sm:$0x3] }
 0x291   : > { %v1558_v18 = vadd.f32 %v1557_v6, %v6505_v26  ;;  %v1595_v8 = vmax.f32 %v1554_v13, 0.0  ;;  %v6543_v43 = vrot.slane %v1634_v12, %v6097_v58 }
 0x292   : > { %v1596_v42 = vmax.f32 %v1556_v61, 0.0 }
 0x293   : > { %v1597_v59 = vmax.f32 %v1558_v18, 0.0 }
 0x294   : > { %v1647_v51 = vpack.c.bf16 %v1596_v42, %v1594_v19 }
 0x295   : > { %v1648_v32 = vpack.c.bf16 %v1597_v59, %v1595_v8 }
 0x297   : > { %1914 = vmatprep.mubr.bf16.mxu1 %v1648_v32  ;;  %v5217_v32 = vld [vmem:[#allocation6 + $0x4] ss:$8 sps:$4 sm:$0xff]  }
 0x298   : > { %1915 = vmatmul.mubr.bf16.gmra.mrb[24].mxu1 %v1647_v51  ;;  %v5215_v51 = vld [vmem:[#allocation6] ss:$8 sps:$4 sm:$0xff]   ;;  %2552 = vmatprep.subr.bf16.mxu1 %v5217_v32  ;;  %v5232_v32 = vld [vmem:[#allocation6 + $0x54] ss:$8 sps:$4 sm:$0xff]  }
 0x299   : > { %2553 = vmatpush1.bf16.msra.mxu1 %v5215_v51  ;;  %v5227_v51 = vld [vmem:[#allocation6 + $0x40] ss:$8 sps:$4 sm:$0xff]  }
 0x2a0   : > { %v1561_v34 = vpop.f32.mrb[28].mxu0 }
 0x2a1   : > { %v1562_v31 = vadd.f32 %v1561_v34, %v6502_v25  ;;  %v1563_v9 = vpop.f32.mrb[29].mxu0 }
 0x2a2   : > { %v1564_v28 = vadd.f32 %v1563_v9, %v6505_v26  ;;  %v1565_v24 = vpop.f32.mrb[30].mxu0  ;;  %v5220_v9 = vld [vmem:[#allocation6 + $0x14] ss:$8 sps:$4 sm:$0xff]  }
 0x2a3   : > { %v1566_v38 = vadd.f32 %v1565_v24, %v6502_v25  ;;  %v1567_v37 = vpop.f32.mrb[31].mxu0  ;;  %v1598_v47 = vmax.f32 %v1562_v31, 0.0  ;;  %v6546_v25 = vrot.slane %v1634_v12, %v6088_v55  ;;  %2554 = vmatprep.subr.bf16.mxu1 %v5220_v9 }
 0x2a4   : > { %v1568_v11 = vadd.f32 %v1567_v37, %v6505_v26  ;;  %v1599_v52 = vmax.f32 %v1564_v28, 0.0  ;;  %v5218_v37 = vld [vmem:[#allocation6 + $0x10] ss:$8 sps:$4 sm:$0xff]  }
 0x2a5   : > { %v1600_v27 = vmax.f32 %v1566_v38, 0.0  ;;  %2555 = vmatpush1.bf16.msra.mxu1 %v5218_v37 }
 0x2a6   : > { %v1601_v33 = vmax.f32 %v1568_v11, 0.0 }
 0x2a7   : > { %v1649_v54 = vpack.c.bf16 %v1600_v27, %v1598_v47  ;;  %v5223_v27 = vld [vmem:[#allocation6 + $0x24] ss:$8 sps:$4 sm:$0xff]  }
 0x2a8   : > { %v1650_v41 = vpack.c.bf16 %v1601_v33, %v1599_v52  ;;  %2556 = vmatprep.subr.bf16.mxu1 %v5223_v27 }
 0x2aa   : > { %1924 = vmatprep.mubr.bf16.mxu1 %v1650_v41 }
 0x2ab   : > { %1925 = vmatmul.mubr.bf16.gmra.mrb[28].mxu1 %v1649_v54 }
 0x303   : > { %v1856_v13 = vpop.f32.mrb[0].mxu1 }
 0x304   : > { %v1857_v26 = vadd.f32 %v1856_v13, %v6543_v43  ;;  %v1858_v15 = vpop.f32.mrb[1].mxu1  ;;  %v5221_v13 = vld [vmem:[#allocation6 + $0x20] ss:$8 sps:$4 sm:$0xff]  }
 0x305   : > { %v1859_v61 = vadd.f32 %v1858_v15, %v6546_v25  ;;  %v1860_v6 = vpop.f32.mrb[2].mxu1  ;;  %2557 = vmatpush1.bf16.msra.mxu1 %v5221_v13 }
 0x306   : > { %v1861_v18 = vadd.f32 %v1860_v6, %v6543_v43  ;;  %v1862_v19 = vpop.f32.mrb[3].mxu1  ;;  %v1935_v8 = vmax.f32 %v1857_v26, 0.0 }
 0x307   : > { %v1863_v42 = vadd.f32 %v1862_v19, %v6546_v25  ;;  %v1936_v34 = vmax.f32 %v1859_v61, 0.0  ;;  %v5226_v61 = vld [vmem:[#allocation6 + $0x34] ss:$8 sps:$4 sm:$0xff]  }
 0x308   : > { %v1937_v59 = vmax.f32 %v1861_v18, 0.0  ;;  %2558 = vmatprep.subr.bf16.mxu1 %v5226_v61 }
 0x309   : > { %v1938_v31 = vmax.f32 %v1863_v42, 0.0 }
 0x30a   : > { %v2000_v28 = vpack.c.bf16 %v1937_v59, %v1935_v8  ;;  %v5224_v8 = vld [vmem:[#allocation6 + $0x30] ss:$8 sps:$4 sm:$0xff]   ;;  %v5229_v59 = vld [vmem:[#allocation6 + $0x44] ss:$8 sps:$4 sm:$0xff]  }
 0x30b   : > { %v2001_v24 = vpack.c.bf16 %v1938_v31, %v1936_v34  ;;  %2559 = vmatpush1.bf16.msra.mxu1 %v5224_v8  ;;  %v5230_v34 = vld [vmem:[#allocation6 + $0x50] ss:$8 sps:$4 sm:$0xff]   ;;  %v5235_v31 = vld [vmem:[#allocation6 + $0x64] ss:$8 sps:$4 sm:$0xff]  }
 0x30c   : > { %v1866_v38 = vpop.f32.mrb[4].mxu1  ;;  %2560 = vmatprep.subr.bf16.mxu1 %v5229_v59  ;;  %v5247_v8 = vld [vmem:[#allocation6 + $0xa4] ss:$8 sps:$4 sm:$0xff]   ;;  %v5245_v59 = vld [vmem:[#allocation6 + $0xa0] ss:$8 sps:$4 sm:$0xff]  }
 0x30d   : > { %v1867_v11 = vadd.f32 %v1866_v38, %v6543_v43  ;;  %v1868_v47 = vpop.f32.mrb[5].mxu1  ;;  %2219 = vmatprep.mubr.bf16.mxu0 %v2001_v24  ;;  %v5233_v38 = vld [vmem:[#allocation6 + $0x60] ss:$8 sps:$4 sm:$0xff]  }
 0x30e   : > { %v1869_v52 = vadd.f32 %v1868_v47, %v6546_v25  ;;  %v1870_v33 = vpop.f32.mrb[6].mxu1  ;;  %2220 = vmatmul.mubr.bf16.vlgmr.msra.gmra.mrb[32].mxu0 %v2000_v28  ;;  %v5238_v47 = vld [vmem:[#allocation6 + $0x74] ss:$8 sps:$4 sm:$0xff]  }
 0x30f   : > { %v1871_v54 = vadd.f32 %v1870_v33, %v6543_v43  ;;  %v1872_v41 = vpop.f32.mrb[7].mxu1  ;;  %v1939_v26 = vmax.f32 %v1867_v11, 0.0  ;;  %2561 = vmatpush1.bf16.msra.mxu1 %v5227_v51  ;;  %v5250_v51 = vld [vmem:[#allocation6 + $0xb4] ss:$8 sps:$4 sm:$0xff]  }
 0x310   : > { %v1873_v12 = vadd.f32 %v1872_v41, %v6546_v25  ;;  %v1940_v6 = vmax.f32 %v1869_v52, 0.0  ;;  %2562 = vmatprep.subr.bf16.mxu1 %v5232_v32 }
 0x311   : > { %v1941_v15 = vmax.f32 %v1871_v54, 0.0 }
 0x312   : > { %v1942_v18 = vmax.f32 %v1873_v12, 0.0  ;;  %v5236_v12 = vld [vmem:[#allocation6 + $0x70] ss:$8 sps:$4 sm:$0xff]  }
 0x313   : > { %v2002_v19 = vpack.c.bf16 %v1941_v15, %v1939_v26  ;;  %2563 = vmatpush1.bf16.msra.mxu1 %v5230_v34  ;;  %v5241_v15 = vld [vmem:[#allocation6 + $0x84] ss:$8 sps:$4 sm:$0xff]  }
 0x314   : > { %v2003_v42 = vpack.c.bf16 %v1942_v18, %v1940_v6  ;;  %2564 = vmatprep.subr.bf16.mxu1 %v5235_v31  ;;  %v5239_v18 = vld [vmem:[#allocation6 + $0x80] ss:$8 sps:$4 sm:$0xff]  }
 0x316   : > { %2229 = vmatprep.mubr.bf16.mxu0 %v2003_v42  ;;  %v5242_v42 = vld [vmem:[#allocation6 + $0x90] ss:$8 sps:$4 sm:$0xff]  }
 0x317   : > { %2230 = vmatmul.mubr.bf16.gmra.mrb[36].mxu0 %v2002_v19  ;;  %2565 = vmatpush1.bf16.msra.mxu1 %v5233_v38  ;;  %v5244_v19 = vld [vmem:[#allocation6 + $0x94] ss:$8 sps:$4 sm:$0xff]  }
 0x318   : > { %2566 = vmatprep.subr.bf16.mxu1 %v5238_v47 }
 0x31b   : > { %2567 = vmatpush1.bf16.msra.mxu1 %v5236_v12 }
 0x31c   : > { %2568 = vmatprep.subr.bf16.mxu1 %v5241_v15  ;;  %v5254_v15 = vld [vmem:[#allocation6 + $0xd0] ss:$8 sps:$4 sm:$0xff]  }
 0x31f   : > { %v1876_v9 = vpop.f32.mrb[8].mxu1  ;;  %2569 = vmatpush1.bf16.msra.mxu1 %v5239_v18 }
 0x320   : > { %v1877_v28 = vadd.f32 %v1876_v9, %v6543_v43  ;;  %v1878_v24 = vpop.f32.mrb[9].mxu1  ;;  %2570 = vmatprep.subr.bf16.mxu1 %v5244_v19 }
 0x321   : > { %v1879_v37 = vadd.f32 %v1878_v24, %v6546_v25  ;;  %v1880_v11 = vpop.f32.mrb[10].mxu1  ;;  %v5248_v24 = vld [vmem:[#allocation6 + $0xb0] ss:$8 sps:$4 sm:$0xff]  }
 0x322   : > { %v1881_v27 = vadd.f32 %v1880_v11, %v6543_v43  ;;  %v1882_v52 = vpop.f32.mrb[11].mxu1  ;;  %v1943_v54 = vmax.f32 %v1877_v28, 0.0  ;;  %v5253_v11 = vld [vmem:[#allocation6 + $0xc4] ss:$8 sps:$4 sm:$0xff]  }
 0x323   : > { %v1883_v33 = vadd.f32 %v1882_v52, %v6546_v25  ;;  %v1944_v13 = vmax.f32 %v1879_v37, 0.0  ;;  %2571 = vmatpush1.bf16.msra.mxu1 %v5242_v42 }
 0x324   : > { %v1945_v41 = vmax.f32 %v1881_v27, 0.0  ;;  %2572 = vmatprep.subr.bf16.mxu1 %v5247_v8 }
 0x325   : > { %v1946_v26 = vmax.f32 %v1883_v33, 0.0 }
 0x326   : > { %v2004_v61 = vpack.c.bf16 %v1945_v41, %v1943_v54  ;;  %v5251_v41 = vld [vmem:[#allocation6 + $0xc0] ss:$8 sps:$4 sm:$0xff]  }
 0x327   : > { %v2005_v6 = vpack.c.bf16 %v1946_v26, %v1944_v13  ;;  %2573 = vmatpush1.bf16.msra.mxu1 %v5245_v59  ;;  %v5256_v13 = vld [vmem:[#allocation6 + $0xd4] ss:$8 sps:$4 sm:$0xff]  }
 0x328   : > { %2574 = vmatprep.subr.bf16.mxu1 %v5250_v51 }
 0x329   : > { %2239 = vmatprep.mubr.bf16.mxu0 %v2005_v6 }
 0x32a   : > { %2240 = vmatmul.mubr.bf16.gmra.mrb[40].mxu0 %v2004_v61 }
 0x32b   : > { %2575 = vmatpush1.bf16.msra.mxu1 %v5248_v24 }
 0x32c   : > { %2576 = vmatprep.subr.bf16.mxu1 %v5253_v11 }
 0x32f   : > { %2577 = vmatpush1.bf16.msra.mxu1 %v5251_v41 }
 0x330   : > { %2578 = vmatprep.subr.bf16.mxu1 %v5256_v13 }
 0x332   : > { %v1886_v32 = vpop.f32.mrb[12].mxu1 }
 0x333   : > { %v1887_v34 = vadd.f32 %v1886_v32, %v6543_v43  ;;  %v1888_v31 = vpop.f32.mrb[13].mxu1  ;;  %2579 = vmatpush1.bf16.msra.mxu1 %v5254_v15 }
 0x334   : > { %v1889_v9 = vadd.f32 %v1888_v31, %v6546_v25  ;;  %v1890_v28 = vpop.f32.mrb[14].mxu1 }
 0x335   : > { %v1891_v38 = vadd.f32 %v1890_v28, %v6543_v43  ;;  %v1892_v37 = vpop.f32.mrb[15].mxu1  ;;  %v1947_v27 = vmax.f32 %v1887_v34, 0.0 }
 0x336   : > { %v1893_v47 = vadd.f32 %v1892_v37, %v6546_v25  ;;  %v1948_v33 = vmax.f32 %v1889_v9, 0.0 }
 0x337   : > { %v1949_v52 = vmax.f32 %v1891_v38, 0.0 }
 0x338   : > { %v1950_v54 = vmax.f32 %v1893_v47, 0.0 }
 0x339   : > { %v2006_v12 = vpack.c.bf16 %v1949_v52, %v1947_v27 }
 0x33a   : > { %v2007_v26 = vpack.c.bf16 %v1950_v54, %v1948_v33 }
 0x33c   : > { %2249 = vmatprep.mubr.bf16.mxu0 %v2007_v26 }
 0x33d   : > { %2250 = vmatmul.mubr.bf16.gmra.mrb[44].mxu0 %v2006_v12 }
 0x345   : > { %v1896_v61 = vpop.f32.mrb[16].mxu1 }
 0x346   : > { %v1897_v6 = vadd.f32 %v1896_v61, %v6543_v43  ;;  %v1898_v18 = vpop.f32.mrb[17].mxu1 }
 0x347   : > { %v1899_v19 = vadd.f32 %v1898_v18, %v6546_v25  ;;  %v1900_v42 = vpop.f32.mrb[18].mxu1  ;;  %v5257_v18 = vld [vmem:[#allocation6 + $0xe0] ss:$8 sps:$4 sm:$0xff]  }
 0x348   : > { %v1901_v8 = vadd.f32 %v1900_v42, %v6543_v43  ;;  %v1902_v59 = vpop.f32.mrb[19].mxu1  ;;  %v1951_v32 = vmax.f32 %v1897_v6, 0.0  ;;  %v5259_v6 = vld [vmem:[#allocation6 + $0xe4] ss:$8 sps:$4 sm:$0xff]   ;;  %v5262_v42 = vld [vmem:[#allocation6 + $0xf4] ss:$8 sps:$4 sm:$0xff]  }
 0x349   : > { %v1903_v51 = vadd.f32 %v1902_v59, %v6546_v25  ;;  %v1952_v31 = vmax.f32 %v1899_v19, 0.0  ;;  %2580 = vmatprep.subr.bf16.mxu1 %v5259_v6  ;;  %v5260_v19 = vld [vmem:[#allocation6 + $0xf0] ss:$8 sps:$4 sm:$0xff]  }
 0x34a   : > { %v1953_v34 = vmax.f32 %v1901_v8, 0.0  ;;  %2581 = vmatpush1.bf16.msra.mxu1 %v5257_v18 }
 0x34b   : > { %v1954_v9 = vmax.f32 %v1903_v51, 0.0  ;;  %2582 = vmatprep.subr.bf16.mxu1 %v5262_v42 }
 0x34c   : > { %v2008_v28 = vpack.c.bf16 %v1953_v34, %v1951_v32 }
 0x34d   : > { %v2009_v24 = vpack.c.bf16 %v1954_v9, %v1952_v31 }
 0x34e   : > { %2583 = vmatpush1.bf16.msra.mxu1 %v5260_v19 }
 0x34f   : > { %2259 = vmatprep.mubr.bf16.mxu0 %v2009_v24 }
 0x350   : > { %2260 = vmatmul.mubr.bf16.gmra.mrb[48].mxu0 %v2008_v28 }
 0x358   : > { %v1906_v38 = vpop.f32.mrb[20].mxu1 }
 0x359   : > { %v1907_v37 = vadd.f32 %v1906_v38, %v6543_v43  ;;  %v1908_v11 = vpop.f32.mrb[21].mxu1 }
 0x35a   : > { %v1909_v47 = vadd.f32 %v1908_v11, %v6546_v25  ;;  %v1910_v27 = vpop.f32.mrb[22].mxu1 }
 0x35b   : > { %v1911_v52 = vadd.f32 %v1910_v27, %v6543_v43  ;;  %v1912_v33 = vpop.f32.mrb[23].mxu1  ;;  %v1955_v41 = vmax.f32 %v1907_v37, 0.0 }
 0x35c   : > { %v1913_v54 = vadd.f32 %v1912_v33, %v6546_v25  ;;  %v1956_v13 = vmax.f32 %v1909_v47, 0.0 }
 0x35d   : > { %v1957_v12 = vmax.f32 %v1911_v52, 0.0 }
 0x35e   : > { %v1958_v26 = vmax.f32 %v1913_v54, 0.0 }
 0x35f   : > { %v2010_v15 = vpack.c.bf16 %v1957_v12, %v1955_v41 }
 0x360   : > { %v2011_v61 = vpack.c.bf16 %v1958_v26, %v1956_v13 }
 0x362   : > { %2269 = vmatprep.mubr.bf16.mxu0 %v2011_v61 }
 0x363   : > { %2270 = vmatmul.mubr.bf16.gmra.mrb[52].mxu0 %v2010_v15 }
 0x36b   : > { %v1916_v8 = vpop.f32.mrb[24].mxu1 }
 0x36c   : > { %v1917_v59 = vadd.f32 %v1916_v8, %v6543_v43  ;;  %v1918_v51 = vpop.f32.mrb[25].mxu1 }
 0x36d   : > { %v1919_v32 = vadd.f32 %v1918_v51, %v6546_v25  ;;  %v1920_v34 = vpop.f32.mrb[26].mxu1 }
 0x36e   : > { %v1921_v31 = vadd.f32 %v1920_v34, %v6543_v43  ;;  %v1922_v9 = vpop.f32.mrb[27].mxu1  ;;  %v1959_v24 = vmax.f32 %v1917_v59, 0.0  ;;  %v1999_v59 = vld [vmem:[%s7261_s8] sm:$0x3] }
 0x36f   : > { %v1923_v28 = vadd.f32 %v1922_v9, %v6546_v25  ;;  %v1960_v37 = vmax.f32 %v1919_v32, 0.0  ;;  %v6584_v51 = vrot.slane %v1999_v59, %v6097_v58 }
 0x370   : > { %v1961_v38 = vmax.f32 %v1921_v31, 0.0 }
 0x371   : > { %v1962_v11 = vmax.f32 %v1923_v28, 0.0 }
 0x372   : > { %v2012_v47 = vpack.c.bf16 %v1961_v38, %v1959_v24 }
 0x373   : > { %v2013_v27 = vpack.c.bf16 %v1962_v11, %v1960_v37 }
 0x375   : > { %2279 = vmatprep.mubr.bf16.mxu0 %v2013_v27  ;;  %v5265_v27 = vld [vmem:[#allocation7 + $0x4] ss:$8 sps:$4 sm:$0xff]  }
 0x376   : > { %2280 = vmatmul.mubr.bf16.gmra.mrb[56].mxu0 %v2012_v47  ;;  %v5263_v47 = vld [vmem:[#allocation7] ss:$8 sps:$4 sm:$0xff]   ;;  %3122 = vmatprep.subr.bf16.mxu0 %v5265_v27  ;;  %v5280_v27 = vld [vmem:[#allocation7 + $0x54] ss:$8 sps:$4 sm:$0xff]  }
 0x377   : > { %3123 = vmatpush1.bf16.msra.mxu0 %v5263_v47  ;;  %v5275_v47 = vld [vmem:[#allocation7 + $0x40] ss:$8 sps:$4 sm:$0xff]  }
 0x37e   : > { %v1926_v52 = vpop.f32.mrb[28].mxu1 }
 0x37f   : > { %v1927_v33 = vadd.f32 %v1926_v52, %v6543_v43  ;;  %v1928_v54 = vpop.f32.mrb[29].mxu1 }
 0x380   : > { %v1929_v41 = vadd.f32 %v1928_v54, %v6546_v25  ;;  %v1930_v12 = vpop.f32.mrb[30].mxu1  ;;  %v5268_v54 = vld [vmem:[#allocation7 + $0x14] ss:$8 sps:$4 sm:$0xff]  }
 0x381   : > { %v1931_v13 = vadd.f32 %v1930_v12, %v6543_v43  ;;  %v1932_v26 = vpop.f32.mrb[31].mxu1  ;;  %v1963_v61 = vmax.f32 %v1927_v33, 0.0  ;;  %v6587_v43 = vrot.slane %v1999_v59, %v6088_v55  ;;  %3124 = vmatprep.subr.bf16.mxu0 %v5268_v54 }
 0x382   : > { %v1933_v15 = vadd.f32 %v1932_v26, %v6546_v25  ;;  %v1964_v18 = vmax.f32 %v1929_v41, 0.0  ;;  %v5266_v26 = vld [vmem:[#allocation7 + $0x10] ss:$8 sps:$4 sm:$0xff]  }
 0x383   : > { %v1965_v6 = vmax.f32 %v1931_v13, 0.0  ;;  %3125 = vmatpush1.bf16.msra.mxu0 %v5266_v26 }
 0x384   : > { %v1966_v19 = vmax.f32 %v1933_v15, 0.0 }
 0x385   : > { %v2014_v42 = vpack.c.bf16 %v1965_v6, %v1963_v61  ;;  %v5271_v6 = vld [vmem:[#allocation7 + $0x24] ss:$8 sps:$4 sm:$0xff]  }
 0x386   : > { %v2015_v8 = vpack.c.bf16 %v1966_v19, %v1964_v18  ;;  %3126 = vmatprep.subr.bf16.mxu0 %v5271_v6 }
 0x388   : > { %2289 = vmatprep.mubr.bf16.mxu0 %v2015_v8 }
 0x389   : > { %2290 = vmatmul.mubr.bf16.gmra.mrb[60].mxu0 %v2014_v42 }
 0x3e1   : > { %v2221_v32 = vpop.f32.mrb[32].mxu0 }
 0x3e2   : > { %v2222_v25 = vadd.f32 %v2221_v32, %v6584_v51  ;;  %v2223_v34 = vpop.f32.mrb[33].mxu0  ;;  %v5269_v32 = vld [vmem:[#allocation7 + $0x20] ss:$8 sps:$4 sm:$0xff]  }
 0x3e3   : > { %v2224_v31 = vadd.f32 %v2223_v34, %v6587_v43  ;;  %v2225_v9 = vpop.f32.mrb[34].mxu0  ;;  %3127 = vmatpush1.bf16.msra.mxu0 %v5269_v32 }
 0x3e4   : > { %v2226_v28 = vadd.f32 %v2225_v9, %v6584_v51  ;;  %v2227_v24 = vpop.f32.mrb[35].mxu0  ;;  %v2300_v37 = vmax.f32 %v2222_v25, 0.0 }
 0x3e5   : > { %v2228_v38 = vadd.f32 %v2227_v24, %v6587_v43  ;;  %v2301_v52 = vmax.f32 %v2224_v31, 0.0  ;;  %v5274_v31 = vld [vmem:[#allocation7 + $0x34] ss:$8 sps:$4 sm:$0xff]  }
 0x3e6   : > { %v2302_v11 = vmax.f32 %v2226_v28, 0.0  ;;  %3128 = vmatprep.subr.bf16.mxu0 %v5274_v31 }
 0x3e7   : > { %v2303_v33 = vmax.f32 %v2228_v38, 0.0 }
 0x3e8   : > { %v2365_v41 = vpack.c.bf16 %v2302_v11, %v2300_v37  ;;  %v5272_v37 = vld [vmem:[#allocation7 + $0x30] ss:$8 sps:$4 sm:$0xff]   ;;  %v5277_v11 = vld [vmem:[#allocation7 + $0x44] ss:$8 sps:$4 sm:$0xff]  }
 0x3e9   : > { %v2366_v12 = vpack.c.bf16 %v2303_v33, %v2301_v52  ;;  %3129 = vmatpush1.bf16.msra.mxu0 %v5272_v37  ;;  %v5278_v52 = vld [vmem:[#allocation7 + $0x50] ss:$8 sps:$4 sm:$0xff]   ;;  %v5283_v33 = vld [vmem:[#allocation7 + $0x64] ss:$8 sps:$4 sm:$0xff]  }
 0x3ea   : > { %v2231_v13 = vpop.f32.mrb[36].mxu0  ;;  %3130 = vmatprep.subr.bf16.mxu0 %v5277_v11  ;;  %v5295_v37 = vld [vmem:[#allocation7 + $0xa4] ss:$8 sps:$4 sm:$0xff]   ;;  %v5293_v11 = vld [vmem:[#allocation7 + $0xa0] ss:$8 sps:$4 sm:$0xff]  }
 0x3eb   : > { %v2232_v15 = vadd.f32 %v2231_v13, %v6584_v51  ;;  %v2233_v61 = vpop.f32.mrb[37].mxu0  ;;  %2584 = vmatprep.mubr.bf16.mxu1 %v2366_v12  ;;  %v5281_v13 = vld [vmem:[#allocation7 + $0x60] ss:$8 sps:$4 sm:$0xff]  }
 0x3ec   : > { %v2234_v18 = vadd.f32 %v2233_v61, %v6587_v43  ;;  %v2235_v19 = vpop.f32.mrb[38].mxu0  ;;  %2585 = vmatmul.mubr.bf16.vlgmr.msra.gmra.mrb[32].mxu1 %v2365_v41  ;;  %v5286_v61 = vld [vmem:[#allocation7 + $0x74] ss:$8 sps:$4 sm:$0xff]  }
 0x3ed   : > { %v2236_v42 = vadd.f32 %v2235_v19, %v6584_v51  ;;  %v2237_v8 = vpop.f32.mrb[39].mxu0  ;;  %v2304_v25 = vmax.f32 %v2232_v15, 0.0  ;;  %3131 = vmatpush1.bf16.msra.mxu0 %v5275_v47  ;;  %v5298_v47 = vld [vmem:[#allocation7 + $0xb4] ss:$8 sps:$4 sm:$0xff]  }
 0x3ee   : > { %v2238_v59 = vadd.f32 %v2237_v8, %v6587_v43  ;;  %v2305_v9 = vmax.f32 %v2234_v18, 0.0  ;;  %3132 = vmatprep.subr.bf16.mxu0 %v5280_v27 }
 0x3ef   : > { %v2306_v34 = vmax.f32 %v2236_v42, 0.0 }
 0x3f0   : > { %v2307_v28 = vmax.f32 %v2238_v59, 0.0  ;;  %v5284_v59 = vld [vmem:[#allocation7 + $0x70] ss:$8 sps:$4 sm:$0xff]  }
 0x3f1   : > { %v2367_v24 = vpack.c.bf16 %v2306_v34, %v2304_v25  ;;  %3133 = vmatpush1.bf16.msra.mxu0 %v5278_v52  ;;  %v5289_v34 = vld [vmem:[#allocation7 + $0x84] ss:$8 sps:$4 sm:$0xff]  }
 0x3f2   : > { %v2368_v38 = vpack.c.bf16 %v2307_v28, %v2305_v9  ;;  %3134 = vmatprep.subr.bf16.mxu0 %v5283_v33  ;;  %v5287_v28 = vld [vmem:[#allocation7 + $0x80] ss:$8 sps:$4 sm:$0xff]  }
 0x3f4   : > { %2594 = vmatprep.mubr.bf16.mxu1 %v2368_v38  ;;  %v5290_v38 = vld [vmem:[#allocation7 + $0x90] ss:$8 sps:$4 sm:$0xff]  }
 0x3f5   : > { %2595 = vmatmul.mubr.bf16.gmra.mrb[36].mxu1 %v2367_v24  ;;  %3135 = vmatpush1.bf16.msra.mxu0 %v5281_v13  ;;  %v5292_v24 = vld [vmem:[#allocation7 + $0x94] ss:$8 sps:$4 sm:$0xff]  }
 0x3f6   : > { %3136 = vmatprep.subr.bf16.mxu0 %v5286_v61 }
 0x3f9   : > { %3137 = vmatpush1.bf16.msra.mxu0 %v5284_v59 }
 0x3fa   : > { %3138 = vmatprep.subr.bf16.mxu0 %v5289_v34  ;;  %v5302_v34 = vld [vmem:[#allocation7 + $0xd0] ss:$8 sps:$4 sm:$0xff]  }
 0x3fd   : > { %v2241_v54 = vpop.f32.mrb[40].mxu0  ;;  %3139 = vmatpush1.bf16.msra.mxu0 %v5287_v28 }
 0x3fe   : > { %v2242_v41 = vadd.f32 %v2241_v54, %v6584_v51  ;;  %v2243_v12 = vpop.f32.mrb[41].mxu0  ;;  %3140 = vmatprep.subr.bf16.mxu0 %v5292_v24 }
 0x3ff   : > { %v2244_v26 = vadd.f32 %v2243_v12, %v6587_v43  ;;  %v2245_v15 = vpop.f32.mrb[42].mxu0  ;;  %v5296_v12 = vld [vmem:[#allocation7 + $0xb0] ss:$8 sps:$4 sm:$0xff]  }
 0x400   : > { %v2246_v6 = vadd.f32 %v2245_v15, %v6584_v51  ;;  %v2247_v18 = vpop.f32.mrb[43].mxu0  ;;  %v2308_v42 = vmax.f32 %v2242_v41, 0.0  ;;  %v5301_v15 = vld [vmem:[#allocation7 + $0xc4] ss:$8 sps:$4 sm:$0xff]  }
 0x401   : > { %v2248_v19 = vadd.f32 %v2247_v18, %v6587_v43  ;;  %v2309_v32 = vmax.f32 %v2244_v26, 0.0  ;;  %3141 = vmatpush1.bf16.msra.mxu0 %v5290_v38 }
 0x402   : > { %v2310_v8 = vmax.f32 %v2246_v6, 0.0  ;;  %3142 = vmatprep.subr.bf16.mxu0 %v5295_v37 }
 0x403   : > { %v2311_v25 = vmax.f32 %v2248_v19, 0.0 }
 0x404   : > { %v2369_v31 = vpack.c.bf16 %v2310_v8, %v2308_v42  ;;  %v5299_v8 = vld [vmem:[#allocation7 + $0xc0] ss:$8 sps:$4 sm:$0xff]  }
 0x405   : > { %v2370_v9 = vpack.c.bf16 %v2311_v25, %v2309_v32  ;;  %3143 = vmatpush1.bf16.msra.mxu0 %v5293_v11  ;;  %v5304_v32 = vld [vmem:[#allocation7 + $0xd4] ss:$8 sps:$4 sm:$0xff]  }
 0x406   : > { %3144 = vmatprep.subr.bf16.mxu0 %v5298_v47 }
 0x407   : > { %2604 = vmatprep.mubr.bf16.mxu1 %v2370_v9 }
 0x408   : > { %2605 = vmatmul.mubr.bf16.gmra.mrb[40].mxu1 %v2369_v31 }
 0x409   : > { %3145 = vmatpush1.bf16.msra.mxu0 %v5296_v12 }
 0x40a   : > { %3146 = vmatprep.subr.bf16.mxu0 %v5301_v15 }
 0x40d   : > { %3147 = vmatpush1.bf16.msra.mxu0 %v5299_v8 }
 0x40e   : > { %3148 = vmatprep.subr.bf16.mxu0 %v5304_v32 }
 0x410   : > { %v2251_v27 = vpop.f32.mrb[44].mxu0 }
 0x411   : > { %v2252_v52 = vadd.f32 %v2251_v27, %v6584_v51  ;;  %v2253_v33 = vpop.f32.mrb[45].mxu0  ;;  %3149 = vmatpush1.bf16.msra.mxu0 %v5302_v34 }
 0x412   : > { %v2254_v54 = vadd.f32 %v2253_v33, %v6587_v43  ;;  %v2255_v41 = vpop.f32.mrb[46].mxu0 }
 0x413   : > { %v2256_v13 = vadd.f32 %v2255_v41, %v6584_v51  ;;  %v2257_v26 = vpop.f32.mrb[47].mxu0  ;;  %v2312_v6 = vmax.f32 %v2252_v52, 0.0 }
 0x414   : > { %v2258_v61 = vadd.f32 %v2257_v26, %v6587_v43  ;;  %v2313_v19 = vmax.f32 %v2254_v54, 0.0 }
 0x415   : > { %v2314_v18 = vmax.f32 %v2256_v13, 0.0 }
 0x416   : > { %v2315_v42 = vmax.f32 %v2258_v61, 0.0 }
 0x417   : > { %v2371_v59 = vpack.c.bf16 %v2314_v18, %v2312_v6 }
 0x418   : > { %v2372_v25 = vpack.c.bf16 %v2315_v42, %v2313_v19 }
 0x41a   : > { %2614 = vmatprep.mubr.bf16.mxu1 %v2372_v25 }
 0x41b   : > { %2615 = vmatmul.mubr.bf16.gmra.mrb[44].mxu1 %v2371_v59 }
 0x423   : > { %v2261_v31 = vpop.f32.mrb[48].mxu0 }
 0x424   : > { %v2262_v9 = vadd.f32 %v2261_v31, %v6584_v51  ;;  %v2263_v28 = vpop.f32.mrb[49].mxu0 }
 0x425   : > { %v2264_v24 = vadd.f32 %v2263_v28, %v6587_v43  ;;  %v2265_v38 = vpop.f32.mrb[50].mxu0  ;;  %v5305_v28 = vld [vmem:[#allocation7 + $0xe0] ss:$8 sps:$4 sm:$0xff]  }
 0x426   : > { %v2266_v37 = vadd.f32 %v2265_v38, %v6584_v51  ;;  %v2267_v11 = vpop.f32.mrb[51].mxu0  ;;  %v2316_v27 = vmax.f32 %v2262_v9, 0.0  ;;  %v5307_v9 = vld [vmem:[#allocation7 + $0xe4] ss:$8 sps:$4 sm:$0xff]   ;;  %v5310_v38 = vld [vmem:[#allocation7 + $0xf4] ss:$8 sps:$4 sm:$0xff]  }
 0x427   : > { %v2268_v47 = vadd.f32 %v2267_v11, %v6587_v43  ;;  %v2317_v33 = vmax.f32 %v2264_v24, 0.0  ;;  %3150 = vmatprep.subr.bf16.mxu0 %v5307_v9  ;;  %v5308_v24 = vld [vmem:[#allocation7 + $0xf0] ss:$8 sps:$4 sm:$0xff]  }
 0x428   : > { %v2318_v52 = vmax.f32 %v2266_v37, 0.0  ;;  %3151 = vmatpush1.bf16.msra.mxu0 %v5305_v28 }
 0x429   : > { %v2319_v54 = vmax.f32 %v2268_v47, 0.0  ;;  %3152 = vmatprep.subr.bf16.mxu0 %v5310_v38 }
 0x42a   : > { %v2373_v41 = vpack.c.bf16 %v2318_v52, %v2316_v27 }
 0x42b   : > { %v2374_v12 = vpack.c.bf16 %v2319_v54, %v2317_v33 }
 0x42c   : > { %3153 = vmatpush1.bf16.msra.mxu0 %v5308_v24 }
 0x42d   : > { %2624 = vmatprep.mubr.bf16.mxu1 %v2374_v12 }
 0x42e   : > { %2625 = vmatmul.mubr.bf16.gmra.mrb[48].mxu1 %v2373_v41 }
 0x436   : > { %v2271_v13 = vpop.f32.mrb[52].mxu0 }
 0x437   : > { %v2272_v26 = vadd.f32 %v2271_v13, %v6584_v51  ;;  %v2273_v15 = vpop.f32.mrb[53].mxu0 }
 0x438   : > { %v2274_v61 = vadd.f32 %v2273_v15, %v6587_v43  ;;  %v2275_v6 = vpop.f32.mrb[54].mxu0 }
 0x439   : > { %v2276_v18 = vadd.f32 %v2275_v6, %v6584_v51  ;;  %v2277_v19 = vpop.f32.mrb[55].mxu0  ;;  %v2320_v8 = vmax.f32 %v2272_v26, 0.0 }
 0x43a   : > { %v2278_v42 = vadd.f32 %v2277_v19, %v6587_v43  ;;  %v2321_v32 = vmax.f32 %v2274_v61, 0.0 }
 0x43b   : > { %v2322_v59 = vmax.f32 %v2276_v18, 0.0 }
 0x43c   : > { %v2323_v25 = vmax.f32 %v2278_v42, 0.0 }
 0x43d   : > { %v2375_v34 = vpack.c.bf16 %v2322_v59, %v2320_v8 }
 0x43e   : > { %v2376_v31 = vpack.c.bf16 %v2323_v25, %v2321_v32 }
 0x440   : > { %2634 = vmatprep.mubr.bf16.mxu1 %v2376_v31 }
 0x441   : > { %2635 = vmatmul.mubr.bf16.gmra.mrb[52].mxu1 %v2375_v34 }
 0x449   : > { %v2281_v37 = vpop.f32.mrb[56].mxu0 }
 0x44a   : > { %v2282_v11 = vadd.f32 %v2281_v37, %v6584_v51  ;;  %v2283_v47 = vpop.f32.mrb[57].mxu0 }
 0x44b   : > { %v2284_v27 = vadd.f32 %v2283_v47, %v6587_v43  ;;  %v2285_v52 = vpop.f32.mrb[58].mxu0 }
 0x44c   : > { %v2286_v33 = vadd.f32 %v2285_v52, %v6584_v51  ;;  %v2287_v54 = vpop.f32.mrb[59].mxu0  ;;  %v2324_v12 = vmax.f32 %v2282_v11, 0.0  ;;  %v2364_v11 = vld [vmem:[%s7263_s10] sm:$0x3] }
 0x44d   : > { %v2288_v41 = vadd.f32 %v2287_v54, %v6587_v43  ;;  %v2325_v26 = vmax.f32 %v2284_v27, 0.0  ;;  %v6625_v47 = vrot.slane %v2364_v11, %v6097_v58 }
 0x44e   : > { %v2326_v13 = vmax.f32 %v2286_v33, 0.0 }
 0x44f   : > { %v2327_v15 = vmax.f32 %v2288_v41, 0.0 }
 0x450   : > { %v2377_v61 = vpack.c.bf16 %v2326_v13, %v2324_v12 }
 0x451   : > { %v2378_v6 = vpack.c.bf16 %v2327_v15, %v2325_v26 }
 0x453   : > { %2644 = vmatprep.mubr.bf16.mxu1 %v2378_v6  ;;  %v5313_v6 = vld [vmem:[#allocation9 + $0x4] ss:$8 sps:$4 sm:$0xff]  }
 0x454   : > { %2645 = vmatmul.mubr.bf16.gmra.mrb[56].mxu1 %v2377_v61  ;;  %v5311_v61 = vld [vmem:[#allocation9] ss:$8 sps:$4 sm:$0xff]   ;;  %3530 = vmatprep.subr.bf16.mxu1 %v5313_v6  ;;  %v5328_v6 = vld [vmem:[#allocation9 + $0x54] ss:$8 sps:$4 sm:$0xff]  }
 0x455   : > { %3531 = vmatpush1.bf16.msra.mxu1 %v5311_v61  ;;  %v5323_v61 = vld [vmem:[#allocation9 + $0x40] ss:$8 sps:$4 sm:$0xff]  }
 0x45c   : > { %v2291_v18 = vpop.f32.mrb[60].mxu0 }
 0x45d   : > { %v2292_v19 = vadd.f32 %v2291_v18, %v6584_v51  ;;  %v2293_v42 = vpop.f32.mrb[61].mxu0 }
 0x45e   : > { %v2294_v8 = vadd.f32 %v2293_v42, %v6587_v43  ;;  %v2295_v59 = vpop.f32.mrb[62].mxu0  ;;  %v5316_v42 = vld [vmem:[#allocation9 + $0x14] ss:$8 sps:$4 sm:$0xff]  }
 0x45f   : > { %v2296_v32 = vadd.f32 %v2295_v59, %v6584_v51  ;;  %v2297_v25 = vpop.f32.mrb[63].mxu0  ;;  %v2328_v31 = vmax.f32 %v2292_v19, 0.0  ;;  %v6628_v51 = vrot.slane %v2364_v11, %v6088_v55  ;;  %3532 = vmatprep.subr.bf16.mxu1 %v5316_v42 }
 0x460   : > { %v2298_v34 = vadd.f32 %v2297_v25, %v6587_v43  ;;  %v2329_v28 = vmax.f32 %v2294_v8, 0.0  ;;  %v5314_v25 = vld [vmem:[#allocation9 + $0x10] ss:$8 sps:$4 sm:$0xff]  }
 0x461   : > { %v2330_v9 = vmax.f32 %v2296_v32, 0.0  ;;  %3533 = vmatpush1.bf16.msra.mxu1 %v5314_v25 }
 0x462   : > { %v2331_v24 = vmax.f32 %v2298_v34, 0.0 }
 0x463   : > { %v2379_v38 = vpack.c.bf16 %v2330_v9, %v2328_v31  ;;  %v5319_v9 = vld [vmem:[#allocation9 + $0x24] ss:$8 sps:$4 sm:$0xff]  }
 0x464   : > { %v2380_v37 = vpack.c.bf16 %v2331_v24, %v2329_v28  ;;  %3534 = vmatprep.subr.bf16.mxu1 %v5319_v9 }
 0x466   : > { %2654 = vmatprep.mubr.bf16.mxu1 %v2380_v37 }
 0x467   : > { %2655 = vmatmul.mubr.bf16.gmra.mrb[60].mxu1 %v2379_v38 }
 0x4bf   : > { %v2586_v27 = vpop.f32.mrb[32].mxu1 }
 0x4c0   : > { %v2587_v43 = vadd.f32 %v2586_v27, %v6625_v47  ;;  %v2588_v52 = vpop.f32.mrb[33].mxu1  ;;  %v5317_v27 = vld [vmem:[#allocation9 + $0x20] ss:$8 sps:$4 sm:$0xff]  }
 0x4c1   : > { %v2589_v33 = vadd.f32 %v2588_v52, %v6628_v51  ;;  %v2590_v54 = vpop.f32.mrb[34].mxu1  ;;  %3535 = vmatpush1.bf16.msra.mxu1 %v5317_v27 }
 0x4c2   : > { %v2591_v41 = vadd.f32 %v2590_v54, %v6625_v47  ;;  %v2592_v12 = vpop.f32.mrb[35].mxu1  ;;  %v2665_v26 = vmax.f32 %v2587_v43, 0.0 }
 0x4c3   : > { %v2593_v13 = vadd.f32 %v2592_v12, %v6628_v51  ;;  %v2666_v18 = vmax.f32 %v2589_v33, 0.0  ;;  %v5322_v33 = vld [vmem:[#allocation9 + $0x34] ss:$8 sps:$4 sm:$0xff]  }
 0x4c4   : > { %v2667_v15 = vmax.f32 %v2591_v41, 0.0  ;;  %3536 = vmatprep.subr.bf16.mxu1 %v5322_v33 }
 0x4c5   : > { %v2668_v19 = vmax.f32 %v2593_v13, 0.0 }
 0x4c6   : > { %v2731_v8 = vpack.c.bf16 %v2667_v15, %v2665_v26  ;;  %v5320_v26 = vld [vmem:[#allocation9 + $0x30] ss:$8 sps:$4 sm:$0xff]   ;;  %v5325_v15 = vld [vmem:[#allocation9 + $0x44] ss:$8 sps:$4 sm:$0xff]  }
 0x4c7   : > { %v2732_v59 = vpack.c.bf16 %v2668_v19, %v2666_v18  ;;  %3537 = vmatpush1.bf16.msra.mxu1 %v5320_v26  ;;  %v5326_v18 = vld [vmem:[#allocation9 + $0x50] ss:$8 sps:$4 sm:$0xff]   ;;  %v5331_v19 = vld [vmem:[#allocation9 + $0x64] ss:$8 sps:$4 sm:$0xff]  }
 0x4c8   : > { %v2596_v32 = vpop.f32.mrb[36].mxu1  ;;  %3538 = vmatprep.subr.bf16.mxu1 %v5325_v15  ;;  %v5343_v26 = vld [vmem:[#allocation9 + $0xa4] ss:$8 sps:$4 sm:$0xff]   ;;  %v5341_v15 = vld [vmem:[#allocation9 + $0xa0] ss:$8 sps:$4 sm:$0xff]  }
 0x4c9   : > { %v2597_v34 = vadd.f32 %v2596_v32, %v6625_v47  ;;  %v2598_v31 = vpop.f32.mrb[37].mxu1  ;;  %3154 = vmatprep.mubr.bf16.mxu0 %v2732_v59  ;;  %v5329_v32 = vld [vmem:[#allocation9 + $0x60] ss:$8 sps:$4 sm:$0xff]  }
 0x4ca   : > { %v2599_v28 = vadd.f32 %v2598_v31, %v6628_v51  ;;  %v2600_v24 = vpop.f32.mrb[38].mxu1  ;;  %3155 = vmatmul.mubr.bf16.vlgmr.msra.gmra.mrb[64].mxu0 %v2731_v8  ;;  %v5334_v31 = vld [vmem:[#allocation9 + $0x74] ss:$8 sps:$4 sm:$0xff]  }
 0x4cb   : > { %v2601_v38 = vadd.f32 %v2600_v24, %v6625_v47  ;;  %v2602_v37 = vpop.f32.mrb[39].mxu1  ;;  %v2669_v43 = vmax.f32 %v2597_v34, 0.0  ;;  %3539 = vmatpush1.bf16.msra.mxu1 %v5323_v61  ;;  %v5346_v61 = vld [vmem:[#allocation9 + $0xb4] ss:$8 sps:$4 sm:$0xff]  }
 0x4cc   : > { %v2603_v11 = vadd.f32 %v2602_v37, %v6628_v51  ;;  %v2670_v54 = vmax.f32 %v2599_v28, 0.0  ;;  %3540 = vmatprep.subr.bf16.mxu1 %v5328_v6 }
 0x4cd   : > { %v2671_v52 = vmax.f32 %v2601_v38, 0.0 }
 0x4ce   : > { %v2672_v41 = vmax.f32 %v2603_v11, 0.0  ;;  %v5332_v11 = vld [vmem:[#allocation9 + $0x70] ss:$8 sps:$4 sm:$0xff]  }
 0x4cf   : > { %v2733_v12 = vpack.c.bf16 %v2671_v52, %v2669_v43  ;;  %3541 = vmatpush1.bf16.msra.mxu1 %v5326_v18  ;;  %v5337_v52 = vld [vmem:[#allocation9 + $0x84] ss:$8 sps:$4 sm:$0xff]  }
 0x4d0   : > { %v2734_v13 = vpack.c.bf16 %v2672_v41, %v2670_v54  ;;  %3542 = vmatprep.subr.bf16.mxu1 %v5331_v19  ;;  %v5335_v41 = vld [vmem:[#allocation9 + $0x80] ss:$8 sps:$4 sm:$0xff]  }
 0x4d2   : > { %3164 = vmatprep.mubr.bf16.mxu0 %v2734_v13  ;;  %v5338_v13 = vld [vmem:[#allocation9 + $0x90] ss:$8 sps:$4 sm:$0xff]  }
 0x4d3   : > { %3165 = vmatmul.mubr.bf16.gmra.mrb[68].mxu0 %v2733_v12  ;;  %3543 = vmatpush1.bf16.msra.mxu1 %v5329_v32  ;;  %v5340_v12 = vld [vmem:[#allocation9 + $0x94] ss:$8 sps:$4 sm:$0xff]  }
 0x4d4   : > { %3544 = vmatprep.subr.bf16.mxu1 %v5334_v31 }
 0x4d7   : > { %3545 = vmatpush1.bf16.msra.mxu1 %v5332_v11 }
 0x4d8   : > { %3546 = vmatprep.subr.bf16.mxu1 %v5337_v52 }
 0x4db   : > { %v2606_v42 = vpop.f32.mrb[40].mxu1  ;;  %3547 = vmatpush1.bf16.msra.mxu1 %v5335_v41 }
 0x4dc   : > { %v2607_v8 = vadd.f32 %v2606_v42, %v6625_v47  ;;  %v2608_v59 = vpop.f32.mrb[41].mxu1  ;;  %3548 = vmatprep.subr.bf16.mxu1 %v5340_v12 }
 0x4dd   : > { %v2609_v25 = vadd.f32 %v2608_v59, %v6628_v51  ;;  %v2610_v34 = vpop.f32.mrb[42].mxu1  ;;  %v5344_v59 = vld [vmem:[#allocation9 + $0xb0] ss:$8 sps:$4 sm:$0xff]  }
 0x4de   : > { %v2611_v9 = vadd.f32 %v2610_v34, %v6625_v47  ;;  %v2612_v28 = vpop.f32.mrb[43].mxu1  ;;  %v2673_v38 = vmax.f32 %v2607_v8, 0.0  ;;  %v5349_v34 = vld [vmem:[#allocation9 + $0xc4] ss:$8 sps:$4 sm:$0xff]  }
 0x4df   : > { %v2613_v24 = vadd.f32 %v2612_v28, %v6628_v51  ;;  %v2674_v27 = vmax.f32 %v2609_v25, 0.0  ;;  %3549 = vmatpush1.bf16.msra.mxu1 %v5338_v13 }
 0x4e0   : > { %v2675_v37 = vmax.f32 %v2611_v9, 0.0  ;;  %3550 = vmatprep.subr.bf16.mxu1 %v5343_v26 }
 0x4e1   : > { %v2676_v43 = vmax.f32 %v2613_v24, 0.0 }
 0x4e2   : > { %v2735_v33 = vpack.c.bf16 %v2675_v37, %v2673_v38  ;;  %v5347_v37 = vld [vmem:[#allocation9 + $0xc0] ss:$8 sps:$4 sm:$0xff]  }
 0x4e3   : > { %v2736_v54 = vpack.c.bf16 %v2676_v43, %v2674_v27  ;;  %3551 = vmatpush1.bf16.msra.mxu1 %v5341_v15 }
 0x4e4   : > { %3552 = vmatprep.subr.bf16.mxu1 %v5346_v61 }
 0x4e5   : > { %3174 = vmatprep.mubr.bf16.mxu0 %v2736_v54 }
 0x4e6   : > { %3175 = vmatmul.mubr.bf16.gmra.mrb[72].mxu0 %v2735_v33 }
 0x4e7   : > { %3553 = vmatpush1.bf16.msra.mxu1 %v5344_v59 }
 0x4e8   : > { %3554 = vmatprep.subr.bf16.mxu1 %v5349_v34 }
 0x4eb   : > { %3555 = vmatpush1.bf16.msra.mxu1 %v5347_v37 }
 0x4ee   : > { %v2616_v6 = vpop.f32.mrb[44].mxu1 }
 0x4ef   : > { %v2617_v18 = vadd.f32 %v2616_v6, %v6625_v47  ;;  %v2618_v19 = vpop.f32.mrb[45].mxu1 }
 0x4f0   : > { %v2619_v42 = vadd.f32 %v2618_v19, %v6628_v51  ;;  %v2620_v8 = vpop.f32.mrb[46].mxu1 }
 0x4f1   : > { %v2621_v32 = vadd.f32 %v2620_v8, %v6625_v47  ;;  %v2622_v25 = vpop.f32.mrb[47].mxu1  ;;  %v2677_v9 = vmax.f32 %v2617_v18, 0.0 }
 0x4f2   : > { %v2623_v31 = vadd.f32 %v2622_v25, %v6628_v51  ;;  %v2678_v24 = vmax.f32 %v2619_v42, 0.0 }
 0x4f3   : > { %v2679_v28 = vmax.f32 %v2621_v32, 0.0 }
 0x4f4   : > { %v2680_v38 = vmax.f32 %v2623_v31, 0.0 }
 0x4f5   : > { %v2737_v11 = vpack.c.bf16 %v2679_v28, %v2677_v9 }
 0x4f6   : > { %v2738_v27 = vpack.c.bf16 %v2680_v38, %v2678_v24 }
 0x4f8   : > { %3184 = vmatprep.mubr.bf16.mxu0 %v2738_v27 }
 0x4f9   : > { %3185 = vmatmul.mubr.bf16.gmra.mrb[76].mxu0 %v2737_v11 }
 0x501   : > { %v2626_v43 = vpop.f32.mrb[48].mxu1 }
 0x502   : > { %v2627_v52 = vadd.f32 %v2626_v43, %v6625_v47  ;;  %v2628_v33 = vpop.f32.mrb[49].mxu1 }
 0x503   : > { %v2629_v54 = vadd.f32 %v2628_v33, %v6628_v51  ;;  %v2630_v41 = vpop.f32.mrb[50].mxu1  ;;  %v5350_v33 = vld [vmem:[#allocation9 + $0xd0] ss:$8 sps:$4 sm:$0xff]  }
 0x504   : > { %v2631_v12 = vadd.f32 %v2630_v41, %v6625_v47  ;;  %v2632_v13 = vpop.f32.mrb[51].mxu1  ;;  %v2681_v15 = vmax.f32 %v2627_v52, 0.0  ;;  %v5352_v52 = vld [vmem:[#allocation9 + $0xd4] ss:$8 sps:$4 sm:$0xff]   ;;  %v5353_v41 = vld [vmem:[#allocation9 + $0xe0] ss:$8 sps:$4 sm:$0xff]  }
 0x505   : > { %v2633_v26 = vadd.f32 %v2632_v13, %v6628_v51  ;;  %v2682_v6 = vmax.f32 %v2629_v54, 0.0  ;;  %3556 = vmatprep.subr.bf16.mxu1 %v5352_v52  ;;  %v5355_v54 = vld [vmem:[#allocation9 + $0xe4] ss:$8 sps:$4 sm:$0xff]  }
 0x506   : > { %v2683_v61 = vmax.f32 %v2631_v12, 0.0  ;;  %3557 = vmatpush1.bf16.msra.mxu1 %v5350_v33 }
 0x507   : > { %v2684_v18 = vmax.f32 %v2633_v26, 0.0  ;;  %3558 = vmatprep.subr.bf16.mxu1 %v5355_v54 }
 0x508   : > { %v2739_v19 = vpack.c.bf16 %v2683_v61, %v2681_v15 }
 0x509   : > { %v2740_v42 = vpack.c.bf16 %v2684_v18, %v2682_v6 }
 0x50a   : > { %3559 = vmatpush1.bf16.msra.mxu1 %v5353_v41 }
 0x50b   : > { %3194 = vmatprep.mubr.bf16.mxu0 %v2740_v42  ;;  %v5356_v42 = vld [vmem:[#allocation9 + $0xf0] ss:$8 sps:$4 sm:$0xff]  }
 0x50c   : > { %3195 = vmatmul.mubr.bf16.gmra.mrb[80].mxu0 %v2739_v19 }
 0x514   : > { %v2636_v8 = vpop.f32.mrb[52].mxu1 }
 0x515   : > { %v2637_v59 = vadd.f32 %v2636_v8, %v6625_v47  ;;  %v2638_v32 = vpop.f32.mrb[53].mxu1  ;;  %v5358_v8 = vld [vmem:[#allocation9 + $0xf4] ss:$8 sps:$4 sm:$0xff]  }
 0x516   : > { %v2639_v25 = vadd.f32 %v2638_v32, %v6628_v51  ;;  %v2640_v34 = vpop.f32.mrb[54].mxu1  ;;  %3560 = vmatprep.subr.bf16.mxu1 %v5358_v8  ;;  %v2900_v8 = vmul.f32 %v6185_v39, %v6131_v14 }
 0x517   : > { %v2641_v31 = vadd.f32 %v2640_v34, %v6625_v47  ;;  %v2642_v9 = vpop.f32.mrb[55].mxu1  ;;  %v2685_v24 = vmax.f32 %v2637_v59, 0.0  ;;  %3561 = vmatpush1.bf16.msra.mxu1 %v5356_v42 }
 0x518   : > { %v2643_v28 = vadd.f32 %v2642_v9, %v6628_v51  ;;  %v2686_v37 = vmax.f32 %v2639_v25, 0.0 }
 0x519   : > { %v2687_v38 = vmax.f32 %v2641_v31, 0.0 }
 0x51a   : > { %v2688_v11 = vmax.f32 %v2643_v28, 0.0 }
 0x51b   : > { %v2741_v27 = vpack.c.bf16 %v2687_v38, %v2685_v24 }
 0x51c   : > { %v2742_v43 = vpack.c.bf16 %v2688_v11, %v2686_v37 }
 0x51e   : > { %3204 = vmatprep.mubr.bf16.mxu0 %v2742_v43 }
 0x51f   : > { %3205 = vmatmul.mubr.bf16.gmra.mrb[84].mxu0 %v2741_v27 }
 0x527   : > { %v2646_v12 = vpop.f32.mrb[56].mxu1 }
 0x528   : > { %v2647_v13 = vadd.f32 %v2646_v12, %v6625_v47  ;;  %v2648_v26 = vpop.f32.mrb[57].mxu1 }
 0x529   : > { %v2649_v15 = vadd.f32 %v2648_v26, %v6628_v51  ;;  %v2650_v61 = vpop.f32.mrb[58].mxu1 }
 0x52a   : > { %v2651_v6 = vadd.f32 %v2650_v61, %v6625_v47  ;;  %v2652_v18 = vpop.f32.mrb[59].mxu1  ;;  %v2689_v59 = vmax.f32 %v2647_v13, 0.0  ;;  %v2769_v61 = vmul.f32 %v6153_v21, %v6194_v46 }
 0x52b   : > { %v2653_v19 = vadd.f32 %v2652_v18, %v6628_v51  ;;  %v2690_v25 = vmax.f32 %v2649_v15, 0.0  ;;  %v2768_v15 = vmul.f32 %v6150_v20, %v6194_v46  ;;  %v2820_v46 = vmul.f32 %v6137_v16, %v6208_v57 }
 0x52c   : > { %v2691_v32 = vmax.f32 %v2651_v6, 0.0  ;;  %v2819_v6 = vmul.f32 %v6140_v17, %v6111_v63 }
 0x52d   : > { %v2692_v34 = vmax.f32 %v2653_v19, 0.0 }
 0x52e   : > { %v2743_v31 = vpack.c.bf16 %v2691_v32, %v2689_v59  ;;  %v2851_v19 = vadd.f32 %v2819_v6, %v2769_v61  ;;  %v2905_v61 = vmul.f32 %v6188_v40, %v6246_v60 }
 0x52f   : > { %v2744_v9 = vpack.c.bf16 %v2692_v34, %v2690_v25  ;;  %v2901_v25 = vmul.f32 %v6188_v40, %v6131_v14 }
 0x531   : > { %3214 = vmatprep.mubr.bf16.mxu0 %v2744_v9 }
 0x532   : > { %3215 = vmatmul.mubr.bf16.gmra.mrb[88].mxu0 %v2743_v31 }
 0x53a   : > { %v2656_v28 = vpop.f32.mrb[60].mxu1 }
 0x53b   : > { %v2657_v24 = vadd.f32 %v2656_v28, %v6625_v47  ;;  %v2658_v38 = vpop.f32.mrb[61].mxu1  ;;  %v2770_v28 = vmul.f32 %v6150_v20, %v6175_v36 }
 0x53c   : > { %v2659_v37 = vadd.f32 %v2658_v38, %v6628_v51  ;;  %v2660_v11 = vpop.f32.mrb[62].mxu1  ;;  %v2772_v38 = vmul.f32 %v6150_v20, %v6227_v23 }
 0x53d   : > { %v2661_v27 = vadd.f32 %v2660_v11, %v6625_v47  ;;  %v2662_v43 = vpop.f32.mrb[63].mxu1  ;;  %v2693_v33 = vmax.f32 %v2657_v24, 0.0  ;;  %v2818_v47 = vmul.f32 %v6137_v16, %v6111_v63  ;;  %v2821_v63 = vmul.f32 %v6140_v17, %v6208_v57 }
 0x53e   : > { %v2663_v52 = vadd.f32 %v2662_v43, %v6628_v51  ;;  %v2694_v41 = vmax.f32 %v2659_v37, 0.0  ;;  %v2730_v51 = vld [vmem:[%s7266_s13] sm:$0x3]  ;;  %v2771_v24 = vmul.f32 %v6153_v21, %v6175_v36  ;;  %v2773_v37 = vmul.f32 %v6153_v21, %v6227_v23 }
 0x53f   : > { %v2695_v54 = vmax.f32 %v2661_v27, 0.0  ;;  %v2850_v18 = vadd.f32 %v2818_v47, %v2768_v15  ;;  %v6674_v42 = vrot.slane %v2730_v51, %v6097_v58  ;;  %v6681_v32 = vrot.slane %v2730_v51, %v6088_v55 }
 0x540   : > { %v2696_v12 = vmax.f32 %v2663_v52, 0.0  ;;  %v2933_v57 = vadd.f32 %v2901_v25, %v2851_v19  ;;  %v2852_v52 = vadd.f32 %v2820_v46, %v2770_v28  ;;  %v2903_v15 = vmul.f32 %v6188_v40, %v6113_v2  ;;  %v5361_v19 = vld [vmem:[#allocation10 + $0x4] ss:$8 sps:$4 sm:$0xff]  }
 0x541   : > { %v2745_v13 = vpack.c.bf16 %v2695_v54, %v2693_v33  ;;  %v2932_v9 = vadd.f32 %v2900_v8, %v2850_v18  ;;  %v2822_v33 = vmul.f32 %v6137_v16, %v6234_v29  ;;  %v5359_v18 = vld [vmem:[#allocation10] ss:$8 sps:$4 sm:$0xff]   ;;  %3895 = vmatprep.subr.bf16.mxu0 %v5361_v19  ;;  %4937 = vmatprep.subr.bf16.mxu1 %v5361_v19 }
 0x542   : > { %v2746_v26 = vpack.c.bf16 %v2696_v12, %v2694_v41  ;;  %v2853_v41 = vadd.f32 %v2821_v63, %v2771_v24  ;;  %v2823_v12 = vmul.f32 %v6140_v17, %v6234_v29  ;;  %3896 = vmatpush1.bf16.msra.mxu0 %v5359_v18 }
 0x543   : > { %v2854_v29 = vadd.f32 %v2822_v33, %v2772_v38  ;;  %v5362_v38 = vld [vmem:[#allocation10 + $0x10] ss:$8 sps:$4 sm:$0xff]  }
 0x544   : > { %3224 = vmatprep.mubr.bf16.mxu0 %v2746_v26  ;;  %v2935_v25 = vadd.f32 %v2903_v15, %v2853_v41  ;;  %v2855_v63 = vadd.f32 %v2823_v12, %v2773_v37 }
 0x545   : > { %3225 = vmatmul.mubr.bf16.gmra.mrb[92].mxu0 %v2745_v13  ;;  %v2904_v13 = vmul.f32 %v6185_v39, %v6246_v60 }
 0x547   : > { %v2936_v24 = vadd.f32 %v2904_v13, %v2854_v29  ;;  %v2774_v29 = vmul.f32 %v6150_v20, %v6254_v30 }
 0x59d   : > { %v3156_v59 = vpop.f32.mrb[64].mxu0 }
 0x59e   : > { %v3157_v34 = vadd.f32 %v3156_v59, %v6210_v4  ;;  %v3158_v31 = vpop.f32.mrb[65].mxu0 }
 0x59f   : > { %v3159_v14 = vadd.f32 %v3158_v31, %v6212_v5  ;;  %v3160_v11 = vpop.f32.mrb[66].mxu0  ;;  %v2902_v5 = vmul.f32 %v6185_v39, %v6113_v2 }
 0x5a0   : > { %v3246_v4 = vadd.f32 %v6674_v42, %v3157_v34  ;;  %v3161_v27 = vadd.f32 %v3160_v11, %v2932_v9  ;;  %v3162_v43 = vpop.f32.mrb[67].mxu0  ;;  %v5364_v34 = vld [vmem:[#allocation10 + $0x14] ss:$8 sps:$4 sm:$0xff]  }
 0x5a1   : > { %v3247_v36 = vadd.f32 %v6681_v32, %v3159_v14  ;;  %v3163_v54 = vadd.f32 %v3162_v43, %v2933_v57  ;;  %v2934_v6 = vadd.f32 %v2902_v5, %v2852_v52  ;;  %v2937_v14 = vadd.f32 %v2905_v61, %v2855_v63  ;;  %3897 = vmatprep.subr.bf16.mxu0 %v5364_v34  ;;  %v5367_v43 = vld [vmem:[#allocation10 + $0x24] ss:$8 sps:$4 sm:$0xff]  }
 0x5a2   : > { %v3248_v23 = vadd.f32 %v6674_v42, %v3161_v27  ;;  %v3278_v47 = vmax.f32 %v3246_v4, 0.0  ;;  %3898 = vmatpush1.bf16.msra.mxu0 %v5362_v38  ;;  %v2824_v61 = vmul.f32 %v6137_v16, %v6260_v48  ;;  %v2776_v63 = vmul.f32 %v6150_v20, %v6258_v0 }
 0x5a3   : > { %v3249_v26 = vadd.f32 %v6681_v32, %v3163_v54  ;;  %v3279_v8 = vmax.f32 %v3247_v36, 0.0  ;;  %v5365_v54 = vld [vmem:[#allocation10 + $0x20] ss:$8 sps:$4 sm:$0xff]   ;;  %3899 = vmatprep.subr.bf16.mxu0 %v5367_v43 }
 0x5a4   : > { %v3280_v51 = vmax.f32 %v3248_v23, 0.0  ;;  %v5370_v23 = vld [vmem:[#allocation10 + $0x34] ss:$8 sps:$4 sm:$0xff]   ;;  %v2856_v19 = vadd.f32 %v2824_v61, %v2774_v29 }
 0x5a5   : > { %v3281_v46 = vmax.f32 %v3249_v26, 0.0  ;;  %v7332_v29 = vld [vmem:[#allocation22_spill] sm:$0xff] }
 0x5a6   : > { %v3166_v59 = vpop.f32.mrb[68].mxu0  ;;  %v3343_v31 = vpack.c.bf16 %v3280_v51, %v3278_v47  ;;  %3900 = vmatpush1.bf16.msra.mxu0 %v5365_v54  ;;  %v5368_v47 = vld [vmem:[#allocation10 + $0x30] ss:$8 sps:$4 sm:$0xff]   ;;  %v2825_v51 = vmul.f32 %v6140_v17, %v6260_v48  ;;  %v2827_v48 = vmul.f32 %v6140_v17, %v6272_v7 }
 0x5a7   : > { %v3167_v9 = vadd.f32 %v3166_v59, %v2934_v6  ;;  %v3168_v28 = vpop.f32.mrb[69].mxu0  ;;  %v3344_v11 = vpack.c.bf16 %v3281_v46, %v3279_v8  ;;  %3901 = vmatprep.subr.bf16.mxu0 %v5370_v23  ;;  %v5373_v6 = vld [vmem:[#allocation10 + $0x44] ss:$8 sps:$4 sm:$0xff]   ;;  %v2826_v8 = vmul.f32 %v6137_v16, %v6272_v7  ;;  %v5371_v46 = vld [vmem:[#allocation10 + $0x40] ss:$8 sps:$4 sm:$0xff]   ;;  %v2909_v7 = vmul.f32 %v6188_v40, %v6286_v35 }
 0x5a8   : > { %v3169_v2 = vadd.f32 %v3168_v28, %v2935_v25  ;;  %v3170_v60 = vpop.f32.mrb[70].mxu0  ;;  %v5376_v25 = vld [vmem:[#allocation10 + $0x54] ss:$8 sps:$4 sm:$0xff]  }
 0x5a9   : > { %v3250_v57 = vadd.f32 %v6674_v42, %v3167_v9  ;;  %v3171_v4 = vadd.f32 %v3170_v60, %v2936_v24  ;;  %v3172_v27 = vpop.f32.mrb[71].mxu0  ;;  %3562 = vmatprep.mubr.bf16.mxu1 %v3344_v11  ;;  %v2907_v9 = vmul.f32 %v6188_v40, %v6126_v1  ;;  %v2858_v24 = vadd.f32 %v2826_v8, %v2776_v63  ;;  %v5383_v8 = vld [vmem:[#allocation10 + $0x80] ss:$8 sps:$4 sm:$0xff]  }
 0x5aa   : > { %v3251_v37 = vadd.f32 %v6681_v32, %v3169_v2  ;;  %v3173_v52 = vadd.f32 %v3172_v27, %v2937_v14  ;;  %3563 = vmatmul.mubr.bf16.vlgmr.msra.gmra.mrb[64].mxu1 %v3343_v31  ;;  %3902 = vmatpush1.bf16.msra.mxu0 %v5368_v47  ;;  %v2777_v31 = vmul.f32 %v6153_v21, %v6258_v0  ;;  %v5374_v2 = vld [vmem:[#allocation10 + $0x50] ss:$8 sps:$4 sm:$0xff]  }
 0x5ab   : > { %v3252_v33 = vadd.f32 %v6674_v42, %v3171_v4  ;;  %4953 = vmatpush1.bf16.msra.mxu1 %v5359_v18  ;;  %v3282_v41 = vmax.f32 %v3250_v57, 0.0  ;;  %v2775_v18 = vmul.f32 %v6153_v21, %v6254_v30  ;;  %3903 = vmatprep.subr.bf16.mxu0 %v5373_v6  ;;  %v2906_v30 = vmul.f32 %v6185_v39, %v6126_v1 }
 0x5ac   : > { %v3253_v36 = vadd.f32 %v6681_v32, %v3173_v52  ;;  %4938 = vmatprep.subr.bf16.mxu1 %v5364_v34  ;;  %v3283_v5 = vmax.f32 %v3251_v37, 0.0  ;;  %v2908_v34 = vmul.f32 %v6185_v39, %v6286_v35  ;;  %v2859_v11 = vadd.f32 %v2827_v48, %v2777_v31  ;;  %v5388_v48 = vld [vmem:[#allocation10 + $0x94] ss:$8 sps:$4 sm:$0xff]   ;;  %v5386_v31 = vld [vmem:[#allocation10 + $0x90] ss:$8 sps:$4 sm:$0xff]  }
 0x5ad   : > { %v3284_v12 = vmax.f32 %v3252_v33, 0.0  ;;  %v2857_v59 = vadd.f32 %v2825_v51, %v2775_v18  ;;  %v2938_v28 = vadd.f32 %v2906_v30, %v2856_v19  ;;  %v5377_v33 = vld [vmem:[#allocation10 + $0x60] ss:$8 sps:$4 sm:$0xff]   ;;  %v2828_v18 = vmul.f32 %v6137_v16, %v7332_v29  ;;  %v7334_v30 = vld [vmem:[#allocation23_spill] sm:$0xff] }
 0x5ae   : > { %v3285_v13 = vmax.f32 %v3253_v36, 0.0  ;;  %3904 = vmatpush1.bf16.msra.mxu0 %v5371_v46  ;;  %v2940_v0 = vadd.f32 %v2908_v34, %v2858_v24  ;;  %v2941_v1 = vadd.f32 %v2909_v7, %v2859_v11  ;;  %v2829_v19 = vmul.f32 %v6140_v17, %v7332_v29  ;;  %v7338_v29 = vld [vmem:[#allocation27_spill] sm:$0xff] }
 0x5af   : > { %v3345_v26 = vpack.c.bf16 %v3284_v12, %v3282_v41  ;;  %4954 = vmatpush1.bf16.msra.mxu1 %v5362_v38  ;;  %v2939_v14 = vadd.f32 %v2907_v9, %v2857_v59  ;;  %3905 = vmatprep.subr.bf16.mxu0 %v5376_v25  ;;  %v5379_v38 = vld [vmem:[#allocation10 + $0x64] ss:$8 sps:$4 sm:$0xff]   ;;  %v5382_v41 = vld [vmem:[#allocation10 + $0x74] ss:$8 sps:$4 sm:$0xff]   ;;  %v2910_v16 = vmul.f32 %v6185_v39, %v7334_v30 }
 0x5b0   : > { %v3346_v15 = vpack.c.bf16 %v3285_v13, %v3283_v5  ;;  %4939 = vmatprep.subr.bf16.mxu1 %v5367_v43  ;;  %v2911_v17 = vmul.f32 %v6188_v40, %v7334_v30 }
 0x5b2   : > { %3572 = vmatprep.mubr.bf16.mxu1 %v3346_v15  ;;  %3906 = vmatpush1.bf16.msra.mxu0 %v5374_v2 }
 0x5b3   : > { %3573 = vmatmul.mubr.bf16.gmra.mrb[68].mxu1 %v3345_v26  ;;  %3907 = vmatprep.subr.bf16.mxu0 %v5379_v38  ;;  %v5380_v26 = vld [vmem:[#allocation10 + $0x70] ss:$8 sps:$4 sm:$0xff]  }
 0x5b4   : > { %4955 = vmatpush1.bf16.msra.mxu1 %v5365_v54 }
 0x5b5   : > { %4940 = vmatprep.subr.bf16.mxu1 %v5370_v23 }
 0x5b6   : > { %3908 = vmatpush1.bf16.msra.mxu0 %v5377_v33 }
 0x5b7   : > { %3909 = vmatprep.subr.bf16.mxu0 %v5382_v41 }
 0x5b8   : > { %4956 = vmatpush1.bf16.msra.mxu1 %v5368_v47  ;;  %v5385_v47 = vld [vmem:[#allocation10 + $0x84] ss:$8 sps:$4 sm:$0xff]  }
 0x5b9   : > { %v3176_v60 = vpop.f32.mrb[72].mxu0  ;;  %4941 = vmatprep.subr.bf16.mxu1 %v5373_v6 }
 0x5ba   : > { %v3177_v57 = vadd.f32 %v3176_v60, %v2938_v28  ;;  %v3178_v4 = vpop.f32.mrb[73].mxu0  ;;  %3910 = vmatpush1.bf16.msra.mxu0 %v5380_v26  ;;  %v5394_v60 = vld [vmem:[#allocation10 + $0xb4] ss:$8 sps:$4 sm:$0xff]  }
 0x5bb   : > { %v3179_v27 = vadd.f32 %v3178_v4, %v2939_v14  ;;  %v3180_v43 = vpop.f32.mrb[74].mxu0  ;;  %3911 = vmatprep.subr.bf16.mxu0 %v5385_v47 }
 0x5bc   : > { %v3254_v37 = vadd.f32 %v6674_v42, %v3177_v57  ;;  %v3181_v35 = vadd.f32 %v3180_v43, %v2940_v0  ;;  %v3182_v52 = vpop.f32.mrb[75].mxu0  ;;  %4957 = vmatpush1.bf16.msra.mxu1 %v5371_v46  ;;  %v7333_v46 = vld [vmem:[#allocation21_spill] sm:$0xff]  ;;  %v7335_v57 = vld [vmem:[#allocation24_spill] sm:$0xff] }
 0x5bd   : > { %v3255_v36 = vadd.f32 %v6681_v32, %v3179_v27  ;;  %v3183_v54 = vadd.f32 %v3182_v52, %v2941_v1  ;;  %4942 = vmatprep.subr.bf16.mxu1 %v5376_v25  ;;  %v2778_v59 = vmul.f32 %v6150_v20, %v7333_v46  ;;  %v2779_v25 = vmul.f32 %v6153_v21, %v7333_v46  ;;  %v5391_v20 = vld [vmem:[#allocation10 + $0xa4] ss:$8 sps:$4 sm:$0xff]   ;;  %v5389_v21 = vld [vmem:[#allocation10 + $0xa0] ss:$8 sps:$4 sm:$0xff]  }
 0x5be   : > { %v3256_v12 = vadd.f32 %v6674_v42, %v3181_v35  ;;  %v3286_v5 = vmax.f32 %v3254_v37, 0.0  ;;  %3912 = vmatpush1.bf16.msra.mxu0 %v5383_v8  ;;  %v7336_v43 = vld [vmem:[#allocation25_spill] sm:$0xff]  ;;  %v5392_v37 = vld [vmem:[#allocation10 + $0xb0] ss:$8 sps:$4 sm:$0xff]   ;;  %v7339_v46 = vld [vmem:[#allocation28_spill] sm:$0xff] }
 0x5bf   : > { %v3257_v23 = vadd.f32 %v6681_v32, %v3183_v54  ;;  %v3287_v15 = vmax.f32 %v3255_v36, 0.0  ;;  %v2860_v63 = vadd.f32 %v2828_v18, %v2778_v59  ;;  %v2861_v34 = vadd.f32 %v2829_v19, %v2779_v25  ;;  %3913 = vmatprep.subr.bf16.mxu0 %v5388_v48  ;;  %v5397_v52 = vld [vmem:[#allocation10 + $0xc4] ss:$8 sps:$4 sm:$0xff]  }
 0x5c0   : > { %v3288_v13 = vmax.f32 %v3256_v12, 0.0  ;;  %4958 = vmatpush1.bf16.msra.mxu1 %v5374_v2 }
 0x5c1   : > { %v3289_v61 = vmax.f32 %v3257_v23, 0.0  ;;  %4943 = vmatprep.subr.bf16.mxu1 %v5379_v38  ;;  %v2942_v9 = vadd.f32 %v2910_v16, %v2860_v63  ;;  %v2943_v28 = vadd.f32 %v2911_v17, %v2861_v34  ;;  %v5395_v23 = vld [vmem:[#allocation10 + $0xc0] ss:$8 sps:$4 sm:$0xff]  }
 0x5c2   : > { %v3347_v51 = vpack.c.bf16 %v3288_v13, %v3286_v5  ;;  %3914 = vmatpush1.bf16.msra.mxu0 %v5386_v31  ;;  %v5400_v13 = vld [vmem:[#allocation10 + $0xd4] ss:$8 sps:$4 sm:$0xff]   ;;  %v7340_v63 = vld [vmem:[#allocation29_spill] sm:$0xff] }
 0x5c3   : > { %v3348_v6 = vpack.c.bf16 %v3289_v61, %v3287_v15  ;;  %3915 = vmatprep.subr.bf16.mxu0 %v5391_v20  ;;  %v5398_v15 = vld [vmem:[#allocation10 + $0xd0] ss:$8 sps:$4 sm:$0xff]  }
 0x5c4   : > { %4959 = vmatpush1.bf16.msra.mxu1 %v5377_v33 }
 0x5c5   : > { %3582 = vmatprep.mubr.bf16.mxu1 %v3348_v6  ;;  %4944 = vmatprep.subr.bf16.mxu1 %v5382_v41 }
 0x5c6   : > { %3583 = vmatmul.mubr.bf16.gmra.mrb[72].mxu1 %v3347_v51  ;;  %3916 = vmatpush1.bf16.msra.mxu0 %v5389_v21 }
 0x5c7   : > { %3917 = vmatprep.subr.bf16.mxu0 %v5394_v60 }
 0x5c8   : > { %4960 = vmatpush1.bf16.msra.mxu1 %v5380_v26 }
 0x5c9   : > { %4945 = vmatprep.subr.bf16.mxu1 %v5385_v47  ;;  %v7337_v47 = vld [vmem:[#allocation26_spill] sm:$0xff] }
 0x5ca   : > { %3918 = vmatpush1.bf16.msra.mxu0 %v5392_v37 }
 0x5cb   : > { %3919 = vmatprep.subr.bf16.mxu0 %v5397_v52 }
 0x5cc   : > { %v3186_v7 = vpop.f32.mrb[76].mxu0  ;;  %4961 = vmatpush1.bf16.msra.mxu1 %v5383_v8 }
 0x5cd   : > { %v3187_v24 = vadd.f32 %v3186_v7, %v2942_v9  ;;  %v3188_v2 = vpop.f32.mrb[77].mxu0  ;;  %4946 = vmatprep.subr.bf16.mxu1 %v5388_v48 }
 0x5ce   : > { %v3189_v14 = vadd.f32 %v3188_v2, %v2943_v28  ;;  %v3190_v11 = vpop.f32.mrb[78].mxu0  ;;  %3920 = vmatpush1.bf16.msra.mxu0 %v5395_v23 }
 0x5cf   : > { %v3258_v38 = vadd.f32 %v6674_v42, %v3187_v24  ;;  %v3191_v4 = vadd.f32 %v3190_v11, %v7335_v57  ;;  %v3192_v0 = vpop.f32.mrb[79].mxu0  ;;  %3921 = vmatprep.subr.bf16.mxu0 %v5400_v13  ;;  %v7341_v24 = vld [vmem:[#allocation30_spill] sm:$0xff] }
 0x5d0   : > { %v3259_v27 = vadd.f32 %v6681_v32, %v3189_v14  ;;  %v3193_v1 = vadd.f32 %v3192_v0, %v7336_v43  ;;  %4962 = vmatpush1.bf16.msra.mxu1 %v5386_v31  ;;  %v7342_v14 = vld [vmem:[#allocation31_spill] sm:$0xff] }
 0x5d1   : > { %v3260_v35 = vadd.f32 %v6674_v42, %v3191_v4  ;;  %4947 = vmatprep.subr.bf16.mxu1 %v5391_v20  ;;  %v3290_v36 = vmax.f32 %v3258_v38, 0.0  ;;  %v7343_v4 = vld [vmem:[#allocation32_spill] sm:$0xff] }
 0x5d2   : > { %v3261_v33 = vadd.f32 %v6681_v32, %v3193_v1  ;;  %v3291_v41 = vmax.f32 %v3259_v27, 0.0  ;;  %3922 = vmatpush1.bf16.msra.mxu0 %v5398_v15  ;;  %v7344_v1 = vld [vmem:[#allocation33_spill] sm:$0xff] }
 0x5d3   : > { %v3292_v54 = vmax.f32 %v3260_v35, 0.0 }
 0x5d4   : > { %v3293_v12 = vmax.f32 %v3261_v33, 0.0  ;;  %4963 = vmatpush1.bf16.msra.mxu1 %v5389_v21 }
 0x5d5   : > { %v3349_v5 = vpack.c.bf16 %v3292_v54, %v3290_v36  ;;  %4948 = vmatprep.subr.bf16.mxu1 %v5394_v60 }
 0x5d6   : > { %v3350_v26 = vpack.c.bf16 %v3293_v12, %v3291_v41 }
 0x5d8   : > { %3592 = vmatprep.mubr.bf16.mxu1 %v3350_v26  ;;  %4964 = vmatpush1.bf16.msra.mxu1 %v5392_v37 }
 0x5d9   : > { %3593 = vmatmul.mubr.bf16.gmra.mrb[76].mxu1 %v3349_v5  ;;  %4949 = vmatprep.subr.bf16.mxu1 %v5397_v52 }
 0x5dc   : > { %4965 = vmatpush1.bf16.msra.mxu1 %v5395_v23 }
 0x5dd   : > { %4950 = vmatprep.subr.bf16.mxu1 %v5400_v13 }
 0x5df   : > { %v3196_v61 = vpop.f32.mrb[80].mxu0 }
 0x5e0   : > { %v3197_v51 = vadd.f32 %v3196_v61, %v7337_v47  ;;  %v3198_v6 = vpop.f32.mrb[81].mxu0  ;;  %4966 = vmatpush1.bf16.msra.mxu1 %v5398_v15  ;;  %v5401_v15 = vld [vmem:[#allocation10 + $0xe0] ss:$8 sps:$4 sm:$0xff]   ;;  %v5403_v61 = vld [vmem:[#allocation10 + $0xe4] ss:$8 sps:$4 sm:$0xff]  }
 0x5e1   : > { %v3199_v18 = vadd.f32 %v3198_v6, %v7338_v29  ;;  %v3200_v19 = vpop.f32.mrb[82].mxu0  ;;  %v5406_v6 = vld [vmem:[#allocation10 + $0xf4] ss:$8 sps:$4 sm:$0xff]   ;;  %3923 = vmatprep.subr.bf16.mxu0 %v5403_v61  ;;  %4951 = vmatprep.subr.bf16.mxu1 %v5403_v61 }
 0x5e2   : > { %v3262_v8 = vadd.f32 %v6674_v42, %v3197_v51  ;;  %v3201_v59 = vadd.f32 %v3200_v19, %v7339_v46  ;;  %v3202_v48 = vpop.f32.mrb[83].mxu0  ;;  %3924 = vmatpush1.bf16.msra.mxu0 %v5401_v15 }
 0x5e3   : > { %v3263_v25 = vadd.f32 %v6681_v32, %v3199_v18  ;;  %v3203_v30 = vadd.f32 %v3202_v48, %v7340_v63  ;;  %3925 = vmatprep.subr.bf16.mxu0 %v5406_v6 }
 0x5e4   : > { %v3264_v16 = vadd.f32 %v6674_v42, %v3201_v59  ;;  %v3294_v17 = vmax.f32 %v3262_v8, 0.0  ;;  %4967 = vmatpush1.bf16.msra.mxu1 %v5401_v15 }
 0x5e5   : > { %v3265_v34 = vadd.f32 %v6681_v32, %v3203_v30  ;;  %v3295_v20 = vmax.f32 %v3263_v25, 0.0  ;;  %4952 = vmatprep.subr.bf16.mxu1 %v5406_v6 }
 0x5e6   : > { %v3296_v31 = vmax.f32 %v3264_v16, 0.0 }
 0x5e7   : > { %v3297_v9 = vmax.f32 %v3265_v34, 0.0  ;;  %v2927_v34 = vmul.f32 %v6188_v40, %v6464_v56 }
 0x5e8   : > { %v3351_v7 = vpack.c.bf16 %v3296_v31, %v3294_v17  ;;  %v2928_v17 = vmul.f32 %v6185_v39, %v6488_v10  ;;  %v2929_v31 = vmul.f32 %v6188_v40, %v6488_v10 }
 0x5e9   : > { %v3352_v28 = vpack.c.bf16 %v3297_v9, %v3295_v20 }
 0x5eb   : > { %3602 = vmatprep.mubr.bf16.mxu1 %v3352_v28 }
 0x5ec   : > { %3603 = vmatmul.mubr.bf16.gmra.mrb[80].mxu1 %v3351_v7  ;;  %v2959_v7 = vadd.f32 %v2927_v34, %v6470_v62 }
 0x5f2   : > { %v3206_v21 = vpop.f32.mrb[84].mxu0 }
 0x5f3   : > { %v3207_v2 = vadd.f32 %v3206_v21, %v7341_v24  ;;  %v3208_v60 = vpop.f32.mrb[85].mxu0  ;;  %v2960_v24 = vadd.f32 %v2928_v17, %v6484_v45 }
 0x5f4   : > { %v3209_v11 = vadd.f32 %v3208_v60, %v7342_v14  ;;  %v3210_v38 = vpop.f32.mrb[86].mxu0  ;;  %v2961_v14 = vadd.f32 %v2929_v31, %v6486_v3  ;;  %v3342_v3 = vld [vmem:[%s7345_s4] sm:$0x3] }
 0x5f5   : > { %v3266_v57 = vadd.f32 %v6674_v42, %v3207_v2  ;;  %v3211_v0 = vadd.f32 %v3210_v38, %v7343_v4  ;;  %v3212_v27 = vpop.f32.mrb[87].mxu0 }
 0x5f6   : > { %v3267_v43 = vadd.f32 %v6681_v32, %v3209_v11  ;;  %v3213_v37 = vadd.f32 %v3212_v27, %v7344_v1  ;;  %v6810_v1 = vrot.slane %v3342_v3, %v6088_v55 }
 0x5f7   : > { %v3268_v35 = vadd.f32 %v6674_v42, %v3211_v0  ;;  %v3298_v33 = vmax.f32 %v3266_v57, 0.0 }
 0x5f8   : > { %v3269_v52 = vadd.f32 %v6681_v32, %v3213_v37  ;;  %v3299_v54 = vmax.f32 %v3267_v43, 0.0  ;;  %v6807_v43 = vrot.slane %v3342_v3, %v6097_v58 }
 0x5f9   : > { %v3300_v36 = vmax.f32 %v3268_v35, 0.0 }
 0x5fa   : > { %v3301_v41 = vmax.f32 %v3269_v52, 0.0 }
 0x5fb   : > { %v3353_v12 = vpack.c.bf16 %v3300_v36, %v3298_v33 }
 0x5fc   : > { %v3354_v23 = vpack.c.bf16 %v3301_v41, %v3299_v54 }
 0x5fe   : > { %3612 = vmatprep.mubr.bf16.mxu1 %v3354_v23 }
 0x5ff   : > { %3613 = vmatmul.mubr.bf16.gmra.mrb[84].mxu1 %v3353_v12 }
 0x605   : > { %v3216_v5 = vpop.f32.mrb[88].mxu0 }
 0x606   : > { %v3217_v13 = vadd.f32 %v3216_v5, %v6442_v49  ;;  %v3218_v26 = vpop.f32.mrb[89].mxu0  ;;  %v5404_v49 = vld [vmem:[#allocation10 + $0xf0] ss:$8 sps:$4 sm:$0xff]  }
 0x607   : > { %v3219_v47 = vadd.f32 %v3218_v26, %v6444_v50  ;;  %v3220_v51 = vpop.f32.mrb[90].mxu0  ;;  %3926 = vmatpush1.bf16.msra.mxu0 %v5404_v49  ;;  %4968 = vmatpush1.bf16.msra.mxu1 %v5404_v49 }
 0x608   : > { %v3270_v29 = vadd.f32 %v6674_v42, %v3217_v13  ;;  %v3221_v18 = vadd.f32 %v3220_v51, %v6452_v22  ;;  %v3222_v19 = vpop.f32.mrb[91].mxu0 }
 0x609   : > { %v3271_v8 = vadd.f32 %v6681_v32, %v3219_v47  ;;  %v3223_v46 = vadd.f32 %v3222_v19, %v6454_v44  ;;  %v2926_v44 = vmul.f32 %v6185_v39, %v6464_v56 }
 0x60a   : > { %v3272_v59 = vadd.f32 %v6674_v42, %v3221_v18  ;;  %v3302_v48 = vmax.f32 %v3270_v29, 0.0 }
 0x60b   : > { %v3273_v50 = vadd.f32 %v6681_v32, %v3223_v46  ;;  %v3303_v63 = vmax.f32 %v3271_v8, 0.0  ;;  %v2958_v20 = vadd.f32 %v2926_v44, %v6468_v53 }
 0x60c   : > { %v3304_v25 = vmax.f32 %v3272_v59, 0.0 }
 0x60d   : > { %v3305_v22 = vmax.f32 %v3273_v50, 0.0 }
 0x60e   : > { %v3355_v30 = vpack.c.bf16 %v3304_v25, %v3302_v48 }
 0x60f   : > { %v3356_v16 = vpack.c.bf16 %v3305_v22, %v3303_v63 }
 0x611   : > { %3622 = vmatprep.mubr.bf16.mxu1 %v3356_v16 }
 0x612   : > { %3623 = vmatmul.mubr.bf16.gmra.mrb[88].mxu1 %v3355_v30 }
 0x618   : > { %v3226_v9 = vpop.f32.mrb[92].mxu0 }
 0x619   : > { %v3227_v28 = vadd.f32 %v3226_v9, %v2958_v20  ;;  %v3228_v21 = vpop.f32.mrb[93].mxu0 }
 0x61a   : > { %v3229_v2 = vadd.f32 %v3228_v21, %v2959_v7  ;;  %v3230_v60 = vpop.f32.mrb[94].mxu0 }
 0x61b   : > { %v3274_v56 = vadd.f32 %v6674_v42, %v3227_v28  ;;  %v3231_v11 = vadd.f32 %v3230_v60, %v2960_v24  ;;  %v3232_v39 = vpop.f32.mrb[95].mxu0 }
 0x61c   : > { %v3275_v38 = vadd.f32 %v6681_v32, %v3229_v2  ;;  %v3233_v40 = vadd.f32 %v3232_v39, %v2961_v14 }
 0x61d   : > { %v3276_v53 = vadd.f32 %v6674_v42, %v3231_v11  ;;  %v3306_v62 = vmax.f32 %v3274_v56, 0.0 }
 0x61e   : > { %v3277_v10 = vadd.f32 %v6681_v32, %v3233_v40  ;;  %v3307_v4 = vmax.f32 %v3275_v38, 0.0 }
 0x61f   : > { %v3308_v57 = vmax.f32 %v3276_v53, 0.0 }
 0x620   : > { %v3309_v0 = vmax.f32 %v3277_v10, 0.0 }
 0x621   : > { %v3357_v45 = vpack.c.bf16 %v3308_v57, %v3306_v62 }
 0x622   : > { %v3358_v27 = vpack.c.bf16 %v3309_v0, %v3307_v4 }
 0x624   : > { %3632 = vmatprep.mubr.bf16.mxu1 %v3358_v27 }
 0x625   : > { %3633 = vmatmul.mubr.bf16.gmra.mrb[92].mxu1 %v3357_v45 }
 0x67d   : > { %v3564_v42 = vpop.f32.mrb[64].mxu1 }
 0x67e   : > { %v3565_v32 = vadd.f32 %v3564_v42, %v6807_v43  ;;  %v3566_v37 = vpop.f32.mrb[65].mxu1 }
 0x67f   : > { %v3567_v35 = vadd.f32 %v3566_v37, %v6810_v1  ;;  %v3568_v52 = vpop.f32.mrb[66].mxu1 }
 0x680   : > { %v3569_v33 = vadd.f32 %v3568_v52, %v6807_v43  ;;  %v3570_v36 = vpop.f32.mrb[67].mxu1  ;;  %v3643_v41 = vmax.f32 %v3565_v32, 0.0 }
 0x681   : > { %v3571_v54 = vadd.f32 %v3570_v36, %v6810_v1  ;;  %v3644_v23 = vmax.f32 %v3567_v35, 0.0 }
 0x682   : > { %v3645_v12 = vmax.f32 %v3569_v33, 0.0 }
 0x683   : > { %v3646_v5 = vmax.f32 %v3571_v54, 0.0 }
 0x684   : > { %v3708_v13 = vpack.c.bf16 %v3645_v12, %v3643_v41 }
 0x685   : > { %v3709_v26 = vpack.c.bf16 %v3646_v5, %v3644_v23 }
 0x686   : > { %v3574_v15 = vpop.f32.mrb[68].mxu1 }
 0x687   : > { %v3575_v61 = vadd.f32 %v3574_v15, %v6807_v43  ;;  %v3576_v47 = vpop.f32.mrb[69].mxu1  ;;  %3927 = vmatprep.mubr.bf16.mxu0 %v3709_v26 }
 0x688   : > { %v3577_v51 = vadd.f32 %v3576_v47, %v6810_v1  ;;  %v3578_v6 = vpop.f32.mrb[70].mxu1  ;;  %3928 = vmatmul.mubr.bf16.vlgmr.msra.gmra.mrb[96].mxu0 %v3708_v13 }
 0x689   : > { %v3579_v29 = vadd.f32 %v3578_v6, %v6807_v43  ;;  %v3580_v18 = vpop.f32.mrb[71].mxu1  ;;  %v3647_v8 = vmax.f32 %v3575_v61, 0.0 }
 0x68a   : > { %v3581_v19 = vadd.f32 %v3580_v18, %v6810_v1  ;;  %v3648_v49 = vmax.f32 %v3577_v51, 0.0 }
 0x68b   : > { %v3649_v46 = vmax.f32 %v3579_v29, 0.0 }
 0x68c   : > { %v3650_v59 = vmax.f32 %v3581_v19, 0.0 }
 0x68d   : > { %v3710_v50 = vpack.c.bf16 %v3649_v46, %v3647_v8 }
 0x68e   : > { %v3711_v48 = vpack.c.bf16 %v3650_v59, %v3648_v49 }
 0x690   : > { %3937 = vmatprep.mubr.bf16.mxu0 %v3711_v48 }
 0x691   : > { %3938 = vmatmul.mubr.bf16.gmra.mrb[100].mxu0 %v3710_v50 }
 0x699   : > { %v3584_v25 = vpop.f32.mrb[72].mxu1 }
 0x69a   : > { %v3585_v63 = vadd.f32 %v3584_v25, %v6807_v43  ;;  %v3586_v22 = vpop.f32.mrb[73].mxu1 }
 0x69b   : > { %v3587_v30 = vadd.f32 %v3586_v22, %v6810_v1  ;;  %v3588_v16 = vpop.f32.mrb[74].mxu1 }
 0x69c   : > { %v3589_v44 = vadd.f32 %v3588_v16, %v6807_v43  ;;  %v3590_v34 = vpop.f32.mrb[75].mxu1  ;;  %v3651_v31 = vmax.f32 %v3585_v63, 0.0 }
 0x69d   : > { %v3591_v17 = vadd.f32 %v3590_v34, %v6810_v1  ;;  %v3652_v9 = vmax.f32 %v3587_v30, 0.0 }
 0x69e   : > { %v3653_v20 = vmax.f32 %v3589_v44, 0.0 }
 0x69f   : > { %v3654_v7 = vmax.f32 %v3591_v17, 0.0 }
 0x6a0   : > { %v3712_v28 = vpack.c.bf16 %v3653_v20, %v3651_v31 }
 0x6a1   : > { %v3713_v21 = vpack.c.bf16 %v3654_v7, %v3652_v9 }
 0x6a3   : > { %3947 = vmatprep.mubr.bf16.mxu0 %v3713_v21 }
 0x6a4   : > { %3948 = vmatmul.mubr.bf16.gmra.mrb[104].mxu0 %v3712_v28 }
 0x6ac   : > { %v3594_v24 = vpop.f32.mrb[76].mxu1 }
 0x6ad   : > { %v3595_v2 = vadd.f32 %v3594_v24, %v6807_v43  ;;  %v3596_v60 = vpop.f32.mrb[77].mxu1 }
 0x6ae   : > { %v3597_v14 = vadd.f32 %v3596_v60, %v6810_v1  ;;  %v3598_v56 = vpop.f32.mrb[78].mxu1 }
 0x6af   : > { %v3599_v11 = vadd.f32 %v3598_v56, %v6807_v43  ;;  %v3600_v39 = vpop.f32.mrb[79].mxu1  ;;  %v3655_v40 = vmax.f32 %v3595_v2, 0.0 }
 0x6b0   : > { %v3601_v38 = vadd.f32 %v3600_v39, %v6810_v1  ;;  %v3656_v10 = vmax.f32 %v3597_v14, 0.0 }
 0x6b1   : > { %v3657_v53 = vmax.f32 %v3599_v11, 0.0 }
 0x6b2   : > { %v3658_v62 = vmax.f32 %v3601_v38, 0.0 }
 0x6b3   : > { %v3714_v57 = vpack.c.bf16 %v3657_v53, %v3655_v40 }
 0x6b4   : > { %v3715_v4 = vpack.c.bf16 %v3658_v62, %v3656_v10  ;;  %v3707_v10 = vld [vmem:[%s7346_s20] sm:$0x3] }
 0x6b5   : > { %v4040_v62 = vld [vmem:[%s7347_s23] sm:$0xff] }
 0x6b6   : > { %3957 = vmatprep.mubr.bf16.mxu0 %v3715_v4  ;;  %v6853_v4 = vrot.slane %v3707_v10, %v6097_v58 }
 0x6b7   : > { %3958 = vmatmul.mubr.bf16.gmra.mrb[108].mxu0 %v3714_v57 }
 0x6bf   : > { %v3604_v0 = vpop.f32.mrb[80].mxu1 }
 0x6c0   : > { %v3605_v45 = vadd.f32 %v3604_v0, %v6807_v43  ;;  %v3606_v27 = vpop.f32.mrb[81].mxu1  ;;  %v4183_v0 = vrot.slane %v4040_v62, %v6088_v55 }
 0x6c1   : > { %v3607_v3 = vadd.f32 %v3606_v27, %v6810_v1  ;;  %v3608_v42 = vpop.f32.mrb[82].mxu1  ;;  %v7349_v27 = vld [vmem:[#allocation19_spill] sm:$0xff] }
 0x6c2   : > { %v3609_v32 = vadd.f32 %v3608_v42, %v6807_v43  ;;  %v3610_v37 = vpop.f32.mrb[83].mxu1  ;;  %v3659_v52 = vmax.f32 %v3605_v45, 0.0  ;;  %v4046_v45 = vrot.slane %v4040_v62, %v6097_v58  ;;  %v6859_v42 = vrot.slane %v3707_v10, %v6088_v55 }
 0x6c3   : > { %v3611_v35 = vadd.f32 %v3610_v37, %v6810_v1  ;;  %v3660_v36 = vmax.f32 %v3607_v3, 0.0  ;;  %v4314_v3 = vrot.slane %v4040_v62, %v7349_v27 }
 0x6c4   : > { %v3661_v33 = vmax.f32 %v3609_v32, 0.0  ;;  %v7350_v32 = vld [vmem:[#allocation17_spill] sm:$0xff] }
 0x6c5   : > { %v3662_v54 = vmax.f32 %v3611_v35, 0.0  ;;  %v4187_v37 = vrot.slane %v4040_v62, %v7350_v32  ;;  %v7351_v35 = vld [vmem:[#allocation18_spill] sm:$0xff] }
 0x6c6   : > { %v3716_v41 = vpack.c.bf16 %v3661_v33, %v3659_v52  ;;  %v4050_v52 = vrot.slane %v4040_v62, %v7351_v35  ;;  %v7352_v33 = vld [vmem:[#allocation20_spill] sm:$0xff] }
 0x6c7   : > { %v3717_v12 = vpack.c.bf16 %v3662_v54, %v3660_v36  ;;  %v4318_v36 = vrot.slane %v4040_v62, %v7352_v33 }
 0x6c9   : > { %3967 = vmatprep.mubr.bf16.mxu1 %v3717_v12 }
 0x6ca   : > { %3968 = vmatmul.mubr.bf16.vlgmr.msra.gmra.mrb[96].mxu1 %v3716_v41 }
 0x6d2   : > { %v3614_v23 = vpop.f32.mrb[84].mxu1 }
 0x6d3   : > { %v3615_v5 = vadd.f32 %v3614_v23, %v6807_v43  ;;  %v3616_v13 = vpop.f32.mrb[85].mxu1 }
 0x6d4   : > { %v3617_v26 = vadd.f32 %v3616_v13, %v6810_v1  ;;  %v3618_v15 = vpop.f32.mrb[86].mxu1  ;;  %v6866_v13 = vrot.slane %v4183_v0, %v6088_v55 }
 0x6d5   : > { %v3619_v61 = vadd.f32 %v3618_v15, %v6807_v43  ;;  %v3620_v47 = vpop.f32.mrb[87].mxu1  ;;  %v3663_v6 = vmax.f32 %v3615_v5, 0.0  ;;  %v6872_v15 = vrot.slane %v4314_v3, %v7349_v27 }
 0x6d6   : > { %v3621_v51 = vadd.f32 %v3620_v47, %v6810_v1  ;;  %v3664_v18 = vmax.f32 %v3617_v26, 0.0  ;;  %v6869_v26 = vrot.slane %v4046_v45, %v6097_v58 }
 0x6d7   : > { %v3665_v29 = vmax.f32 %v3619_v61, 0.0 }
 0x6d8   : > { %v3666_v19 = vmax.f32 %v3621_v51, 0.0  ;;  %v6876_v51 = vrot.slane %v4187_v37, %v6088_v55 }
 0x6d9   : > { %v3718_v8 = vpack.c.bf16 %v3665_v29, %v3663_v6  ;;  %v6879_v6 = vrot.slane %v4050_v52, %v6097_v58  ;;  %v6882_v29 = vrot.slane %v4318_v36, %v7349_v27 }
 0x6da   : > { %v3719_v46 = vpack.c.bf16 %v3666_v19, %v3664_v18 }
 0x6dc   : > { %3977 = vmatprep.mubr.bf16.mxu1 %v3719_v46 }
 0x6dd   : > { %3978 = vmatmul.mubr.bf16.gmra.mrb[100].mxu1 %v3718_v8 }
 0x6e5   : > { %v3624_v49 = vpop.f32.mrb[88].mxu1 }
 0x6e6   : > { %v3625_v59 = vadd.f32 %v3624_v49, %v6807_v43  ;;  %v3626_v50 = vpop.f32.mrb[89].mxu1 }
 0x6e7   : > { %v3627_v48 = vadd.f32 %v3626_v50, %v6810_v1  ;;  %v3628_v25 = vpop.f32.mrb[90].mxu1 }
 0x6e8   : > { %v3629_v63 = vadd.f32 %v3628_v25, %v6807_v43  ;;  %v3630_v22 = vpop.f32.mrb[91].mxu1  ;;  %v3667_v16 = vmax.f32 %v3625_v59, 0.0 }
 0x6e9   : > { %v3631_v30 = vadd.f32 %v3630_v22, %v6810_v1  ;;  %v3668_v34 = vmax.f32 %v3627_v48, 0.0 }
 0x6ea   : > { %v3669_v44 = vmax.f32 %v3629_v63, 0.0 }
 0x6eb   : > { %v3670_v17 = vmax.f32 %v3631_v30, 0.0 }
 0x6ec   : > { %v3720_v31 = vpack.c.bf16 %v3669_v44, %v3667_v16 }
 0x6ed   : > { %v3721_v20 = vpack.c.bf16 %v3670_v17, %v3668_v34 }
 0x6ef   : > { %3987 = vmatprep.mubr.bf16.mxu1 %v3721_v20 }
 0x6f0   : > { %3988 = vmatmul.mubr.bf16.gmra.mrb[104].mxu1 %v3720_v31 }
 0x6f8   : > { %v3634_v9 = vpop.f32.mrb[92].mxu1 }
 0x6f9   : > { %v3635_v7 = vadd.f32 %v3634_v9, %v6807_v43  ;;  %v3636_v28 = vpop.f32.mrb[93].mxu1 }
 0x6fa   : > { %v3637_v21 = vadd.f32 %v3636_v28, %v6810_v1  ;;  %v3638_v24 = vpop.f32.mrb[94].mxu1 }
 0x6fb   : > { %v3639_v2 = vadd.f32 %v3638_v24, %v6807_v43  ;;  %v3640_v60 = vpop.f32.mrb[95].mxu1  ;;  %v3671_v56 = vmax.f32 %v3635_v7, 0.0  ;;  %v7348_v43 = vld [vmem:[#allocation16_spill] sm:$0xff] }
 0x6fc   : > { %v3641_v14 = vadd.f32 %v3640_v60, %v6810_v1  ;;  %v3672_v39 = vmax.f32 %v3637_v21, 0.0  ;;  %v4444_v57 = vsub.s32 3, %v7348_v43  ;;  %v4448_v1 = vsub.s32 7, %v7348_v43 }
 0x6fd   : > { %v3673_v11 = vmax.f32 %v3639_v2, 0.0 }
 0x6fe   : > { %v3674_v38 = vmax.f32 %v3641_v14, 0.0  ;;  %v4445_v54 = vrot.slane %v4040_v62, %v4444_v57  ;;  %v4449_v41 = vrot.slane %v4040_v62, %v4448_v1 }
 0x6ff   : > { %v3722_v40 = vpack.c.bf16 %v3673_v11, %v3671_v56 }
 0x700   : > { %v3723_v53 = vpack.c.bf16 %v3674_v38, %v3672_v39  ;;  %v6885_v46 = vrot.slane %v4445_v54, %v4444_v57  ;;  %v6887_v49 = vrot.slane %v4449_v41, %v4444_v57 }
 0x702   : > { %3997 = vmatprep.mubr.bf16.mxu1 %v3723_v53 }
 0x703   : > { %3998 = vmatmul.mubr.bf16.gmra.mrb[108].mxu1 %v3722_v40 }
 0x75b   : > { %v3929_v12 = vpop.f32.mrb[96].mxu0 }
 0x75c   : > { %v3930_v23 = vadd.f32 %v3929_v12, %v6853_v4  ;;  %v3931_v5 = vpop.f32.mrb[97].mxu0 }
 0x75d   : > { %v3932_v61 = vadd.f32 %v3931_v5, %v6859_v42  ;;  %v3933_v47 = vpop.f32.mrb[98].mxu0 }
 0x75e   : > { %v4008_v18 = vmax.f32 %v3930_v23, 0.0  ;;  %v3934_v19 = vadd.f32 %v3933_v47, %v6853_v4  ;;  %v3935_v8 = vpop.f32.mrb[99].mxu0 }
 0x75f   : > { %v4009_v59 = vmax.f32 %v3932_v61, 0.0  ;;  %v3936_v50 = vadd.f32 %v3935_v8, %v6859_v42 }
 0x760   : > { %v4010_v48 = vmax.f32 %v3934_v19, 0.0  ;;  %v4198_v55 = vmul.f32 %v6866_v13, %v4008_v18  ;;  %v4061_v58 = vmul.f32 %v6869_v26, %v4008_v18  ;;  %v4329_v25 = vmul.f32 %v6872_v15, %v4008_v18 }
 0x761   : > { %v4011_v63 = vmax.f32 %v3936_v50, 0.0  ;;  %v4199_v22 = vmul.f32 %v6876_v51, %v4009_v59  ;;  %v4062_v30 = vmul.f32 %v6879_v6, %v4009_v59  ;;  %v4330_v16 = vmul.f32 %v6882_v29, %v4009_v59 }
 0x762   : > { %v4200_v44 = vmul.f32 %v6866_v13, %v4010_v48  ;;  %v4460_v34 = vmul.f32 %v6885_v46, %v4008_v18  ;;  %v4461_v17 = vmul.f32 %v6887_v49, %v4009_v59  ;;  %v4331_v31 = vmul.f32 %v6872_v15, %v4010_v48 }
 0x763   : > { %v4230_v9 = vadd.f32 %v4199_v22, %v4198_v55  ;;  %v4093_v7 = vadd.f32 %v4062_v30, %v4061_v58  ;;  %v4361_v28 = vadd.f32 %v4330_v16, %v4329_v25  ;;  %v4201_v21 = vmul.f32 %v6876_v51, %v4011_v63 }
 0x764   : > { %v3939_v20 = vpop.f32.mrb[100].mxu0  ;;  %v4492_v60 = vadd.f32 %v4461_v17, %v4460_v34  ;;  %v4332_v14 = vmul.f32 %v6882_v29, %v4011_v63  ;;  %v4063_v56 = vmul.f32 %v6869_v26, %v4010_v48  ;;  %v4064_v40 = vmul.f32 %v6879_v6, %v4011_v63 }
 0x765   : > { %v3940_v24 = vadd.f32 %v3939_v20, %v6853_v4  ;;  %v3941_v2 = vpop.f32.mrb[101].mxu0  ;;  %4231 = vadd.xlane.f32.xlu0 %v4230_v9  ;;  %4094 = vadd.xlane.f32.xlu1 %v4093_v7  ;;  %v4233_v38 = vadd.f32 %v4201_v21, %v4200_v44  ;;  %v4462_v57 = vmul.f32 %v6885_v46, %v4010_v48 }
 0x766   : > { %v3942_v11 = vadd.f32 %v3941_v2, %v6859_v42  ;;  %v3943_v39 = vpop.f32.mrb[102].mxu0  ;;  %v4364_v43 = vadd.f32 %v4332_v14, %v4331_v31  ;;  %v4096_v45 = vadd.f32 %v4064_v40, %v4063_v56  ;;  %v4463_v27 = vmul.f32 %v6887_v49, %v4011_v63 }
 0x767   : > { %v4012_v53 = vmax.f32 %v3940_v24, 0.0  ;;  %v3944_v10 = vadd.f32 %v3943_v39, %v6853_v4  ;;  %v3945_v62 = vpop.f32.mrb[103].mxu0 }
 0x768   : > { %v4013_v1 = vmax.f32 %v3942_v11, 0.0  ;;  %v3946_v0 = vadd.f32 %v3945_v62, %v6859_v42  ;;  %v4495_v33 = vadd.f32 %v4463_v27, %v4462_v57 }
 0x769   : > { %v4014_v3 = vmax.f32 %v3944_v10, 0.0  ;;  %v4065_v32 = vmul.f32 %v6869_v26, %v4012_v53  ;;  %v4202_v37 = vmul.f32 %v6866_v13, %v4012_v53  ;;  %v4333_v35 = vmul.f32 %v6872_v15, %v4012_v53  ;;  %4362 = vadd.xlane.f32.xlu0 %v4361_v28  ;;  %4234 = vadd.xlane.f32.xlu1 %v4233_v38 }
 0x76a   : > { %v4015_v52 = vmax.f32 %v3946_v0, 0.0  ;;  %v4066_v36 = vmul.f32 %v6879_v6, %v4013_v1  ;;  %v4203_v54 = vmul.f32 %v6876_v51, %v4013_v1  ;;  %v4334_v23 = vmul.f32 %v6882_v29, %v4013_v1 }
 0x76b   : > { %v4067_v41 = vmul.f32 %v6869_v26, %v4014_v3  ;;  %v4204_v12 = vmul.f32 %v6866_v13, %v4014_v3  ;;  %v4335_v5 = vmul.f32 %v6872_v15, %v4014_v3  ;;  %v4464_v50 = vmul.f32 %v6885_v46, %v4012_v53 }
 0x76c   : > { %v4099_v61 = vadd.f32 %v4066_v36, %v4065_v32  ;;  %v4068_v47 = vmul.f32 %v6879_v6, %v4015_v52  ;;  %v4236_v18 = vadd.f32 %v4203_v54, %v4202_v37  ;;  %v4205_v19 = vmul.f32 %v6876_v51, %v4015_v52 }
 0x76d   : > { %v4367_v8 = vadd.f32 %v4334_v23, %v4333_v35  ;;  %v4336_v59 = vmul.f32 %v6882_v29, %v4015_v52  ;;  %v4465_v48 = vmul.f32 %v6887_v49, %v4013_v1  ;;  %4493 = vadd.xlane.f32.xlu0 %v4492_v60  ;;  %4365 = vadd.xlane.f32.xlu1 %v4364_v43 }
 0x76e   : > { %v4102_v55 = vadd.f32 %v4068_v47, %v4067_v41  ;;  %v4239_v58 = vadd.f32 %v4205_v19, %v4204_v12  ;;  %v4466_v25 = vmul.f32 %v6885_v46, %v4014_v3  ;;  %v4467_v30 = vmul.f32 %v6887_v49, %v4015_v52 }
 0x76f   : > { %v4370_v63 = vadd.f32 %v4336_v59, %v4335_v5  ;;  %v4498_v22 = vadd.f32 %v4465_v48, %v4464_v50 }
 0x770   : > { %v4501_v16 = vadd.f32 %v4467_v30, %v4466_v25 }
 0x771   : > { %4097 = vadd.xlane.f32.xlu0 %v4096_v45  ;;  %4496 = vadd.xlane.f32.xlu1 %v4495_v33 }
 0x775   : > { %4100 = vadd.xlane.f32.xlu0 %v4099_v61  ;;  %4103 = vadd.xlane.f32.xlu1 %v4102_v55 }
 0x777   : > { %v3949_v44 = vpop.f32.mrb[104].mxu0 }
 0x778   : > { %v3950_v34 = vadd.f32 %v3949_v44, %v6853_v4  ;;  %v3951_v17 = vpop.f32.mrb[105].mxu0 }
 0x779   : > { %v3952_v31 = vadd.f32 %v3951_v17, %v6859_v42  ;;  %v3953_v20 = vpop.f32.mrb[106].mxu0  ;;  %4237 = vadd.xlane.f32.xlu0 %v4236_v18  ;;  %4240 = vadd.xlane.f32.xlu1 %v4239_v58 }
 0x77a   : > { %v4016_v9 = vmax.f32 %v3950_v34, 0.0  ;;  %v3954_v7 = vadd.f32 %v3953_v20, %v6853_v4  ;;  %v3955_v28 = vpop.f32.mrb[107].mxu0 }
 0x77b   : > { %v4017_v21 = vmax.f32 %v3952_v31, 0.0  ;;  %v3956_v24 = vadd.f32 %v3955_v28, %v6859_v42 }
 0x77c   : > { %v4018_v2 = vmax.f32 %v3954_v7, 0.0  ;;  %v4069_v60 = vmul.f32 %v6869_v26, %v4016_v9  ;;  %v4206_v14 = vmul.f32 %v6866_v13, %v4016_v9  ;;  %v4337_v56 = vmul.f32 %v6872_v15, %v4016_v9 }
 0x77d   : > { %v4019_v11 = vmax.f32 %v3956_v24, 0.0  ;;  %v4070_v39 = vmul.f32 %v6879_v6, %v4017_v21  ;;  %v4207_v38 = vmul.f32 %v6876_v51, %v4017_v21  ;;  %v4338_v40 = vmul.f32 %v6882_v29, %v4017_v21  ;;  %4368 = vadd.xlane.f32.xlu0 %v4367_v8  ;;  %4371 = vadd.xlane.f32.xlu1 %v4370_v63 }
 0x77e   : > { %v4071_v53 = vmul.f32 %v6869_v26, %v4018_v2  ;;  %v4208_v10 = vmul.f32 %v6866_v13, %v4018_v2  ;;  %v4339_v62 = vmul.f32 %v6872_v15, %v4018_v2  ;;  %v4468_v3 = vmul.f32 %v6885_v46, %v4016_v9 }
 0x77f   : > { %v4105_v43 = vadd.f32 %v4070_v39, %v4069_v60  ;;  %v4072_v57 = vmul.f32 %v6879_v6, %v4019_v11  ;;  %v4242_v1 = vadd.f32 %v4207_v38, %v4206_v14  ;;  %v4209_v0 = vmul.f32 %v6876_v51, %v4019_v11 }
 0x780   : > { %v4373_v45 = vadd.f32 %v4338_v40, %v4337_v56  ;;  %v4340_v27 = vmul.f32 %v6882_v29, %v4019_v11  ;;  %v4469_v32 = vmul.f32 %v6887_v49, %v4017_v21  ;;  %v4470_v52 = vmul.f32 %v6885_v46, %v4018_v2 }
 0x781   : > { %v4108_v37 = vadd.f32 %v4072_v57, %v4071_v53  ;;  %v4245_v35 = vadd.f32 %v4209_v0, %v4208_v10  ;;  %v4471_v33 = vmul.f32 %v6887_v49, %v4019_v11  ;;  %4499 = vadd.xlane.f32.xlu0 %v4498_v22  ;;  %4502 = vadd.xlane.f32.xlu1 %v4501_v16 }
 0x782   : > { %v4376_v36 = vadd.f32 %v4340_v27, %v4339_v62  ;;  %v4504_v54 = vadd.f32 %v4469_v32, %v4468_v3 }
 0x783   : > { %v4507_v41 = vadd.f32 %v4471_v33, %v4470_v52 }
 0x785   : > { %4106 = vadd.xlane.f32.xlu0 %v4105_v43  ;;  %4109 = vadd.xlane.f32.xlu1 %v4108_v37 }
 0x789   : > { %4243 = vadd.xlane.f32.xlu0 %v4242_v1  ;;  %4246 = vadd.xlane.f32.xlu1 %v4245_v35 }
 0x78a   : > { %v3959_v12 = vpop.f32.mrb[108].mxu0 }
 0x78b   : > { %v3960_v23 = vadd.f32 %v3959_v12, %v6853_v4  ;;  %v3961_v5 = vpop.f32.mrb[109].mxu0 }
 0x78c   : > { %v3962_v61 = vadd.f32 %v3961_v5, %v6859_v42  ;;  %v3963_v47 = vpop.f32.mrb[110].mxu0 }
 0x78d   : > { %v4020_v18 = vmax.f32 %v3960_v23, 0.0  ;;  %v3964_v19 = vadd.f32 %v3963_v47, %v6853_v4  ;;  %v3965_v8 = vpop.f32.mrb[111].mxu0  ;;  %4374 = vadd.xlane.f32.xlu0 %v4373_v45  ;;  %4377 = vadd.xlane.f32.xlu1 %v4376_v36 }
 0x78e   : > { %v4021_v59 = vmax.f32 %v3962_v61, 0.0  ;;  %v3966_v50 = vadd.f32 %v3965_v8, %v6859_v42 }
 0x78f   : > { %v4022_v48 = vmax.f32 %v3964_v19, 0.0  ;;  %v4073_v55 = vmul.f32 %v6869_v26, %v4020_v18  ;;  %v4210_v58 = vmul.f32 %v6866_v13, %v4020_v18  ;;  %v4341_v25 = vmul.f32 %v6872_v15, %v4020_v18 }
 0x790   : > { %v4023_v63 = vmax.f32 %v3966_v50, 0.0  ;;  %v4074_v22 = vmul.f32 %v6879_v6, %v4021_v59  ;;  %v4211_v30 = vmul.f32 %v6876_v51, %v4021_v59  ;;  %v4342_v16 = vmul.f32 %v6882_v29, %v4021_v59 }
 0x791   : > { %v4075_v44 = vmul.f32 %v6869_v26, %v4022_v48  ;;  %v4212_v34 = vmul.f32 %v6866_v13, %v4022_v48  ;;  %v4343_v17 = vmul.f32 %v6872_v15, %v4022_v48  ;;  %v4472_v31 = vmul.f32 %v6885_v46, %v4020_v18  ;;  %4505 = vadd.xlane.f32.xlu0 %v4504_v54 }
 0x792   : > { %4508 = vadd.xlane.f32.xlu1 %v4507_v41  ;;  %v4111_v20 = vadd.f32 %v4074_v22, %v4073_v55  ;;  %v4076_v9 = vmul.f32 %v6879_v6, %v4023_v63  ;;  %v4248_v7 = vadd.f32 %v4211_v30, %v4210_v58  ;;  %v4213_v28 = vmul.f32 %v6876_v51, %v4023_v63 }
 0x793   : > { %v4379_v21 = vadd.f32 %v4342_v16, %v4341_v25  ;;  %v4344_v24 = vmul.f32 %v6882_v29, %v4023_v63  ;;  %v4473_v2 = vmul.f32 %v6887_v49, %v4021_v59  ;;  %v4474_v14 = vmul.f32 %v6885_v46, %v4022_v48 }
 0x794   : > { %v4114_v60 = vadd.f32 %v4076_v9, %v4075_v44  ;;  %v4475_v56 = vmul.f32 %v6887_v49, %v4023_v63  ;;  %v4251_v11 = vadd.f32 %v4213_v28, %v4212_v34 }
 0x795   : > { %v4382_v39 = vadd.f32 %v4344_v24, %v4343_v17  ;;  %v4510_v38 = vadd.f32 %v4473_v2, %v4472_v31  ;;  %4112 = vadd.xlane.f32.xlu0 %v4111_v20 }
 0x796   : > { %4115 = vadd.xlane.f32.xlu1 %v4114_v60  ;;  %v4513_v40 = vadd.f32 %v4475_v56, %v4474_v14 }
 0x799   : > { %4249 = vadd.xlane.f32.xlu0 %v4248_v7 }
 0x79a   : > { %4252 = vadd.xlane.f32.xlu1 %v4251_v11 }
 0x79d   : > { %v3969_v53 = vpop.f32.mrb[96].mxu1  ;;  %4380 = vadd.xlane.f32.xlu0 %v4379_v21 }
 0x79e   : > { %v3970_v10 = vadd.f32 %v3969_v53, %v6853_v4  ;;  %4383 = vadd.xlane.f32.xlu1 %v4382_v39  ;;  %v3971_v62 = vpop.f32.mrb[97].mxu1 }
 0x79f   : > { %v3972_v43 = vadd.f32 %v3971_v62, %v6859_v42  ;;  %v3973_v57 = vpop.f32.mrb[98].mxu1 }
 0x7a0   : > { %v4024_v1 = vmax.f32 %v3970_v10, 0.0  ;;  %v3974_v0 = vadd.f32 %v3973_v57, %v6853_v4  ;;  %v3975_v45 = vpop.f32.mrb[99].mxu1 }
 0x7a1   : > { %v4025_v27 = vmax.f32 %v3972_v43, 0.0  ;;  %v3976_v3 = vadd.f32 %v3975_v45, %v6859_v42  ;;  %4511 = vadd.xlane.f32.xlu0 %v4510_v38 }
 0x7a2   : > { %v4026_v32 = vmax.f32 %v3974_v0, 0.0  ;;  %4514 = vadd.xlane.f32.xlu1 %v4513_v40  ;;  %v4077_v37 = vmul.f32 %v6869_v26, %v4024_v1  ;;  %v4214_v35 = vmul.f32 %v6866_v13, %v4024_v1  ;;  %v4345_v52 = vmul.f32 %v6872_v15, %v4024_v1 }
 0x7a3   : > { %v4027_v33 = vmax.f32 %v3976_v3, 0.0  ;;  %v4078_v36 = vmul.f32 %v6879_v6, %v4025_v27  ;;  %v4215_v54 = vmul.f32 %v6876_v51, %v4025_v27  ;;  %v4346_v41 = vmul.f32 %v6882_v29, %v4025_v27 }
 0x7a4   : > { %v4079_v12 = vmul.f32 %v6869_v26, %v4026_v32  ;;  %v4216_v23 = vmul.f32 %v6866_v13, %v4026_v32  ;;  %v4347_v5 = vmul.f32 %v6872_v15, %v4026_v32  ;;  %v4476_v61 = vmul.f32 %v6885_v46, %v4024_v1 }
 0x7a5   : > { %v4117_v47 = vadd.f32 %v4078_v36, %v4077_v37  ;;  %v4080_v18 = vmul.f32 %v6879_v6, %v4027_v33  ;;  %v4254_v19 = vadd.f32 %v4215_v54, %v4214_v35  ;;  %v4217_v8 = vmul.f32 %v6876_v51, %v4027_v33 }
 0x7a6   : > { %v4385_v59 = vadd.f32 %v4346_v41, %v4345_v52  ;;  %v4348_v50 = vmul.f32 %v6882_v29, %v4027_v33  ;;  %v4477_v48 = vmul.f32 %v6887_v49, %v4025_v27  ;;  %v4478_v55 = vmul.f32 %v6885_v46, %v4026_v32 }
 0x7a7   : > { %4118 = vadd.xlane.f32.xlu0 %v4117_v47  ;;  %v4120_v58 = vadd.f32 %v4080_v18, %v4079_v12  ;;  %v4257_v25 = vadd.f32 %v4217_v8, %v4216_v23  ;;  %v4479_v63 = vmul.f32 %v6887_v49, %v4027_v33 }
 0x7a8   : > { %v4388_v22 = vadd.f32 %v4348_v50, %v4347_v5  ;;  %v4516_v30 = vadd.f32 %v4477_v48, %v4476_v61 }
 0x7a9   : > { %4121 = vadd.xlane.f32.xlu1 %v4120_v58  ;;  %v4519_v16 = vadd.f32 %v4479_v63, %v4478_v55 }
 0x7ab   : > { %4255 = vadd.xlane.f32.xlu0 %v4254_v19 }
 0x7ad   : > { %4258 = vadd.xlane.f32.xlu1 %v4257_v25 }
 0x7af   : > { %4386 = vadd.xlane.f32.xlu0 %v4385_v59 }
 0x7b0   : > { %v3979_v44 = vpop.f32.mrb[100].mxu1 }
 0x7b1   : > { %v3980_v34 = vadd.f32 %v3979_v44, %v6853_v4  ;;  %v3981_v17 = vpop.f32.mrb[101].mxu1  ;;  %4389 = vadd.xlane.f32.xlu1 %v4388_v22 }
 0x7b2   : > { %v3982_v31 = vadd.f32 %v3981_v17, %v6859_v42  ;;  %v3983_v20 = vpop.f32.mrb[102].mxu1 }
 0x7b3   : > { %v4028_v9 = vmax.f32 %v3980_v34, 0.0  ;;  %v3984_v7 = vadd.f32 %v3983_v20, %v6853_v4  ;;  %v3985_v28 = vpop.f32.mrb[103].mxu1  ;;  %4517 = vadd.xlane.f32.xlu0 %v4516_v30 }
 0x7b4   : > { %v4029_v21 = vmax.f32 %v3982_v31, 0.0  ;;  %v3986_v24 = vadd.f32 %v3985_v28, %v6859_v42 }
 0x7b5   : > { %v4030_v2 = vmax.f32 %v3984_v7, 0.0  ;;  %4520 = vadd.xlane.f32.xlu1 %v4519_v16  ;;  %v4081_v60 = vmul.f32 %v6869_v26, %v4028_v9  ;;  %v4218_v14 = vmul.f32 %v6866_v13, %v4028_v9  ;;  %v4349_v56 = vmul.f32 %v6872_v15, %v4028_v9 }
 0x7b6   : > { %v4031_v11 = vmax.f32 %v3986_v24, 0.0  ;;  %v4082_v39 = vmul.f32 %v6879_v6, %v4029_v21  ;;  %v4219_v38 = vmul.f32 %v6876_v51, %v4029_v21  ;;  %v4350_v40 = vmul.f32 %v6882_v29, %v4029_v21 }
 0x7b7   : > { %v4083_v53 = vmul.f32 %v6869_v26, %v4030_v2  ;;  %v4220_v10 = vmul.f32 %v6866_v13, %v4030_v2  ;;  %v4351_v62 = vmul.f32 %v6872_v15, %v4030_v2  ;;  %v4480_v43 = vmul.f32 %v6885_v46, %v4028_v9 }
 0x7b8   : > { %v4123_v57 = vadd.f32 %v4082_v39, %v4081_v60  ;;  %v4084_v1 = vmul.f32 %v6879_v6, %v4031_v11  ;;  %v4260_v0 = vadd.f32 %v4219_v38, %v4218_v14  ;;  %v4221_v45 = vmul.f32 %v6876_v51, %v4031_v11 }
 0x7b9   : > { %v4391_v27 = vadd.f32 %v4350_v40, %v4349_v56  ;;  %v4352_v3 = vmul.f32 %v6882_v29, %v4031_v11  ;;  %v4481_v32 = vmul.f32 %v6887_v49, %v4029_v21  ;;  %v4482_v37 = vmul.f32 %v6885_v46, %v4030_v2 }
 0x7ba   : > { %4124 = vadd.xlane.f32.xlu0 %v4123_v57  ;;  %v4126_v35 = vadd.f32 %v4084_v1, %v4083_v53  ;;  %v4263_v52 = vadd.f32 %v4221_v45, %v4220_v10  ;;  %v4483_v33 = vmul.f32 %v6887_v49, %v4031_v11 }
 0x7bb   : > { %v4394_v36 = vadd.f32 %v4352_v3, %v4351_v62  ;;  %v4522_v54 = vadd.f32 %v4481_v32, %v4480_v43 }
 0x7bc   : > { %4127 = vadd.xlane.f32.xlu1 %v4126_v35  ;;  %v4525_v41 = vadd.f32 %v4483_v33, %v4482_v37 }
 0x7be   : > { %4261 = vadd.xlane.f32.xlu0 %v4260_v0 }
 0x7c0   : > { %4264 = vadd.xlane.f32.xlu1 %v4263_v52 }
 0x7c2   : > { %4392 = vadd.xlane.f32.xlu0 %v4391_v27 }
 0x7c3   : > { %v3989_v12 = vpop.f32.mrb[104].mxu1 }
 0x7c4   : > { %v3990_v23 = vadd.f32 %v3989_v12, %v6853_v4  ;;  %v3991_v5 = vpop.f32.mrb[105].mxu1  ;;  %4395 = vadd.xlane.f32.xlu1 %v4394_v36 }
 0x7c5   : > { %v3992_v61 = vadd.f32 %v3991_v5, %v6859_v42  ;;  %v3993_v47 = vpop.f32.mrb[106].mxu1 }
 0x7c6   : > { %v4032_v18 = vmax.f32 %v3990_v23, 0.0  ;;  %v3994_v19 = vadd.f32 %v3993_v47, %v6853_v4  ;;  %v3995_v8 = vpop.f32.mrb[107].mxu1  ;;  %4523 = vadd.xlane.f32.xlu0 %v4522_v54 }
 0x7c7   : > { %v4033_v59 = vmax.f32 %v3992_v61, 0.0  ;;  %v3996_v50 = vadd.f32 %v3995_v8, %v6859_v42 }
 0x7c8   : > { %v4034_v48 = vmax.f32 %v3994_v19, 0.0  ;;  %4526 = vadd.xlane.f32.xlu1 %v4525_v41  ;;  %v4085_v55 = vmul.f32 %v6869_v26, %v4032_v18  ;;  %v4222_v58 = vmul.f32 %v6866_v13, %v4032_v18  ;;  %v4353_v25 = vmul.f32 %v6872_v15, %v4032_v18 }
 0x7c9   : > { %v4035_v63 = vmax.f32 %v3996_v50, 0.0  ;;  %v4086_v22 = vmul.f32 %v6879_v6, %v4033_v59  ;;  %v4223_v30 = vmul.f32 %v6876_v51, %v4033_v59  ;;  %v4354_v16 = vmul.f32 %v6882_v29, %v4033_v59 }
 0x7ca   : > { %v4087_v44 = vmul.f32 %v6869_v26, %v4034_v48  ;;  %v4224_v34 = vmul.f32 %v6866_v13, %v4034_v48  ;;  %v4355_v17 = vmul.f32 %v6872_v15, %v4034_v48  ;;  %v4484_v31 = vmul.f32 %v6885_v46, %v4032_v18 }
 0x7cb   : > { %v4129_v20 = vadd.f32 %v4086_v22, %v4085_v55  ;;  %v4088_v9 = vmul.f32 %v6879_v6, %v4035_v63  ;;  %v4266_v7 = vadd.f32 %v4223_v30, %v4222_v58  ;;  %v4225_v28 = vmul.f32 %v6876_v51, %v4035_v63 }
 0x7cc   : > { %v4397_v21 = vadd.f32 %v4354_v16, %v4353_v25  ;;  %v4356_v24 = vmul.f32 %v6882_v29, %v4035_v63  ;;  %v4485_v2 = vmul.f32 %v6887_v49, %v4033_v59  ;;  %v4486_v60 = vmul.f32 %v6885_v46, %v4034_v48 }
 0x7cd   : > { %4130 = vadd.xlane.f32.xlu0 %v4129_v20  ;;  %v4132_v14 = vadd.f32 %v4088_v9, %v4087_v44  ;;  %v4269_v56 = vadd.f32 %v4225_v28, %v4224_v34  ;;  %v4487_v11 = vmul.f32 %v6887_v49, %v4035_v63 }
 0x7ce   : > { %v4400_v39 = vadd.f32 %v4356_v24, %v4355_v17  ;;  %v4528_v38 = vadd.f32 %v4485_v2, %v4484_v31 }
 0x7cf   : > { %4133 = vadd.xlane.f32.xlu1 %v4132_v14  ;;  %v4531_v40 = vadd.f32 %v4487_v11, %v4486_v60 }
 0x7d1   : > { %4267 = vadd.xlane.f32.xlu0 %v4266_v7 }
 0x7d3   : > { %4270 = vadd.xlane.f32.xlu1 %v4269_v56 }
 0x7d5   : > { %4398 = vadd.xlane.f32.xlu0 %v4397_v21 }
 0x7d6   : > { %v3999_v53 = vpop.f32.mrb[108].mxu1 }
 0x7d7   : > { %v4000_v10 = vadd.f32 %v3999_v53, %v6853_v4  ;;  %4401 = vadd.xlane.f32.xlu1 %v4400_v39  ;;  %v4001_v62 = vpop.f32.mrb[109].mxu1 }
 0x7d8   : > { %v4002_v43 = vadd.f32 %v4001_v62, %v6859_v42  ;;  %v4003_v57 = vpop.f32.mrb[110].mxu1 }
 0x7d9   : > { %v4036_v1 = vmax.f32 %v4000_v10, 0.0  ;;  %v4004_v0 = vadd.f32 %v4003_v57, %v6853_v4  ;;  %4529 = vadd.xlane.f32.xlu0 %v4528_v38  ;;  %v4005_v45 = vpop.f32.mrb[111].mxu1 }
 0x7da   : > { %v4037_v27 = vmax.f32 %v4002_v43, 0.0  ;;  %v4006_v3 = vadd.f32 %v4005_v45, %v6859_v42 }
 0x7db   : > { %v4038_v32 = vmax.f32 %v4004_v0, 0.0  ;;  %4532 = vadd.xlane.f32.xlu1 %v4531_v40  ;;  %v4089_v37 = vmul.f32 %v6869_v26, %v4036_v1  ;;  %v4226_v35 = vmul.f32 %v6866_v13, %v4036_v1  ;;  %v4357_v52 = vmul.f32 %v6872_v15, %v4036_v1 }
 0x7dc   : > { %v4039_v33 = vmax.f32 %v4006_v3, 0.0  ;;  %v4090_v36 = vmul.f32 %v6879_v6, %v4037_v27  ;;  %v4227_v54 = vmul.f32 %v6876_v51, %v4037_v27  ;;  %v4358_v4 = vmul.f32 %v6882_v29, %v4037_v27 }
 0x7dd   : > { %v4091_v41 = vmul.f32 %v6869_v26, %v4038_v32  ;;  %v4228_v12 = vmul.f32 %v6866_v13, %v4038_v32  ;;  %v4359_v42 = vmul.f32 %v6872_v15, %v4038_v32  ;;  %v4488_v23 = vmul.f32 %v6885_v46, %v4036_v1 }
 0x7de   : > { %v4135_v5 = vadd.f32 %v4090_v36, %v4089_v37  ;;  %v4092_v61 = vmul.f32 %v6879_v6, %v4039_v33  ;;  %v4272_v47 = vadd.f32 %v4227_v54, %v4226_v35  ;;  %v4229_v18 = vmul.f32 %v6876_v51, %v4039_v33  ;;  %v7049_v51 = vld [vmem:[%s7353_s19] ss:$0 sm:$0xff] }
 0x7df   : > { %v4403_v19 = vadd.f32 %v4358_v4, %v4357_v52  ;;  %v4360_v8 = vmul.f32 %v6882_v29, %v4039_v33  ;;  %v4489_v59 = vmul.f32 %v6887_v49, %v4037_v27  ;;  %v4490_v50 = vmul.f32 %v6885_v46, %v4038_v32 }
 0x7e0   : > { %4136 = vadd.xlane.f32.xlu0 %v4135_v5  ;;  %v4138_v13 = vadd.f32 %v4092_v61, %v4091_v41  ;;  %v4275_v26 = vadd.f32 %v4229_v18, %v4228_v12  ;;  %v4491_v15 = vmul.f32 %v6887_v49, %v4039_v33 }
 0x7e1   : > { %v4406_v48 = vadd.f32 %v4360_v8, %v4359_v42  ;;  %v4534_v55 = vadd.f32 %v4489_v59, %v4488_v23 }
 0x7e2   : > { %4139 = vadd.xlane.f32.xlu1 %v4138_v13  ;;  %v4537_v6 = vadd.f32 %v4491_v15, %v4490_v50 }
 0x7e4   : > { %4273 = vadd.xlane.f32.xlu0 %v4272_v47 }
 0x7e6   : > { %4276 = vadd.xlane.f32.xlu1 %v4275_v26 }
 0x7e8   : > { %4404 = vadd.xlane.f32.xlu0 %v4403_v19 }
 0x7ea   : > { %4407 = vadd.xlane.f32.xlu1 %v4406_v48 }
 0x7ec   : > { %4535 = vadd.xlane.f32.xlu0 %v4534_v55 }
 0x7ee   : > { %4538 = vadd.xlane.f32.xlu1 %v4537_v6 }
 0x7f2   : > { %v4232_v29 = vpop.xlane.xlu0 %4231  ;;  %v4095_v46 = vpop.xlane.xlu1 %4094 }
 0x7f3   : > { %v4278_v49 = vadd.f32 %v7049_v51, %v4232_v29  ;;  %v4147_v58 = vadd.f32 %v7049_v51, %v4095_v46 }
 0x7f5   : > { %4164 = vst.msk [vmem:[%s7056_s28] sm:$0xff] %vm4163_vm0, %v4147_v58 }
 0x7f6   : > { %4295 = vst.msk [vmem:[%s7056_s28] sm:$0xff] %vm4294_vm1, %v4278_v49  ;;  %v4363_v25 = vpop.xlane.xlu0 %4362  ;;  %v4235_v63 = vpop.xlane.xlu1 %4234 }
 0x7f7   : > { %v4409_v22 = vadd.f32 %v7049_v51, %v4363_v25  ;;  %v4279_v20 = vadd.f32 %v7049_v51, %v4235_v63 }
 0x7f9   : > { %4426 = vst.msk [vmem:[%s7056_s28] sm:$0xff] %vm4425_vm2, %v4409_v22 }
 0x7fa   : > { %v4494_v30 = vpop.xlane.xlu0 %4493  ;;  %v4366_v16 = vpop.xlane.xlu1 %4365 }
 0x7fb   : > { %v4540_v44 = vadd.f32 %v7049_v51, %v4494_v30  ;;  %v4410_v9 = vadd.f32 %v7049_v51, %v4366_v16 }
 0x7fd   : > { %4557 = vst.msk [vmem:[%s7056_s28] sm:$0xff] %vm4556_vm3, %v4540_v44 }
 0x7fe   : > { %v4098_v34 = vpop.xlane.xlu0 %4097  ;;  %v4497_v17 = vpop.xlane.xlu1 %4496 }
 0x7ff   : > { %v4148_v31 = vadd.f32 %v7049_v51, %v4098_v34  ;;  %v4541_v7 = vadd.f32 %v7049_v51, %v4497_v17 }
 0x801   : > { %4165 = vst.msk [vmem:[%s7056_s28 + $0x8] sm:$0xff] %vm4163_vm0, %v4148_v31 }
 0x802   : > { %4296 = vst.msk [vmem:[%s7056_s28 + $0x8] sm:$0xff] %vm4294_vm1, %v4279_v20  ;;  %v4101_v28 = vpop.xlane.xlu0 %4100  ;;  %v4104_v21 = vpop.xlane.xlu1 %4103 }
 0x803   : > { %4427 = vst.msk [vmem:[%s7056_s28 + $0x8] sm:$0xff] %vm4425_vm2, %v4410_v9  ;;  %v4149_v24 = vadd.f32 %v7049_v51, %v4101_v28  ;;  %v4150_v2 = vadd.f32 %v7049_v51, %v4104_v21 }
 0x804   : > { %4558 = vst.msk [vmem:[%s7056_s28 + $0x8] sm:$0xff] %vm4556_vm3, %v4541_v7 }
 0x805   : > { %4166 = vst.msk [vmem:[%s7056_s28 + $0x10] sm:$0xff] %vm4163_vm0, %v4149_v24  ;;  %4167 = vst.msk [vmem:[%s7056_s28 + $0x18] sm:$0xff] %vm4163_vm0, %v4150_v2 }
 0x806   : > { %v4238_v60 = vpop.xlane.xlu0 %4237  ;;  %v4241_v14 = vpop.xlane.xlu1 %4240 }
 0x807   : > { %v4280_v56 = vadd.f32 %v7049_v51, %v4238_v60  ;;  %v4281_v11 = vadd.f32 %v7049_v51, %v4241_v14 }
 0x809   : > { %4297 = vst.msk [vmem:[%s7056_s28 + $0x10] sm:$0xff] %vm4294_vm1, %v4280_v56  ;;  %4298 = vst.msk [vmem:[%s7056_s28 + $0x18] sm:$0xff] %vm4294_vm1, %v4281_v11 }
 0x80a   : > { %v4369_v39 = vpop.xlane.xlu0 %4368  ;;  %v4372_v38 = vpop.xlane.xlu1 %4371 }
 0x80b   : > { %v4411_v40 = vadd.f32 %v7049_v51, %v4369_v39  ;;  %v4412_v53 = vadd.f32 %v7049_v51, %v4372_v38 }
 0x80d   : > { %4428 = vst.msk [vmem:[%s7056_s28 + $0x10] sm:$0xff] %vm4425_vm2, %v4411_v40  ;;  %4429 = vst.msk [vmem:[%s7056_s28 + $0x18] sm:$0xff] %vm4425_vm2, %v4412_v53 }
 0x80e   : > { %v4500_v10 = vpop.xlane.xlu0 %4499  ;;  %v4503_v62 = vpop.xlane.xlu1 %4502 }
 0x80f   : > { %v4542_v43 = vadd.f32 %v7049_v51, %v4500_v10  ;;  %v4543_v57 = vadd.f32 %v7049_v51, %v4503_v62 }
 0x811   : > { %4559 = vst.msk [vmem:[%s7056_s28 + $0x10] sm:$0xff] %vm4556_vm3, %v4542_v43  ;;  %4560 = vst.msk [vmem:[%s7056_s28 + $0x18] sm:$0xff] %vm4556_vm3, %v4543_v57 }
 0x812   : > { %v4107_v1 = vpop.xlane.xlu0 %4106  ;;  %v4110_v0 = vpop.xlane.xlu1 %4109 }
 0x813   : > { %v4151_v45 = vadd.f32 %v7049_v51, %v4107_v1  ;;  %v4152_v27 = vadd.f32 %v7049_v51, %v4110_v0 }
 0x815   : > { %4168 = vst.msk [vmem:[%s7056_s28 + $0x20] sm:$0xff] %vm4163_vm0, %v4151_v45  ;;  %4169 = vst.msk [vmem:[%s7056_s28 + $0x28] sm:$0xff] %vm4163_vm0, %v4152_v27 }
 0x816   : > { %v4244_v3 = vpop.xlane.xlu0 %4243  ;;  %v4247_v32 = vpop.xlane.xlu1 %4246 }
 0x817   : > { %v4282_v37 = vadd.f32 %v7049_v51, %v4244_v3  ;;  %v4283_v35 = vadd.f32 %v7049_v51, %v4247_v32 }
 0x819   : > { %4299 = vst.msk [vmem:[%s7056_s28 + $0x20] sm:$0xff] %vm4294_vm1, %v4282_v37  ;;  %4300 = vst.msk [vmem:[%s7056_s28 + $0x28] sm:$0xff] %vm4294_vm1, %v4283_v35 }
 0x81a   : > { %v4375_v52 = vpop.xlane.xlu0 %4374  ;;  %v4378_v33 = vpop.xlane.xlu1 %4377 }
 0x81b   : > { %v4413_v36 = vadd.f32 %v7049_v51, %v4375_v52  ;;  %v4414_v54 = vadd.f32 %v7049_v51, %v4378_v33 }
 0x81d   : > { %4430 = vst.msk [vmem:[%s7056_s28 + $0x20] sm:$0xff] %vm4425_vm2, %v4413_v36  ;;  %4431 = vst.msk [vmem:[%s7056_s28 + $0x28] sm:$0xff] %vm4425_vm2, %v4414_v54 }
 0x81e   : > { %v4506_v4 = vpop.xlane.xlu0 %4505 }
 0x81f   : > { %v4509_v41 = vpop.xlane.xlu1 %4508  ;;  %v4544_v12 = vadd.f32 %v7049_v51, %v4506_v4 }
 0x820   : > { %v4545_v42 = vadd.f32 %v7049_v51, %v4509_v41 }
 0x821   : > { %4561 = vst.msk [vmem:[%s7056_s28 + $0x20] sm:$0xff] %vm4556_vm3, %v4544_v12 }
 0x822   : > { %4562 = vst.msk [vmem:[%s7056_s28 + $0x28] sm:$0xff] %vm4556_vm3, %v4545_v42  ;;  %v4113_v23 = vpop.xlane.xlu0 %4112 }
 0x823   : > { %v4116_v5 = vpop.xlane.xlu1 %4115  ;;  %v4153_v61 = vadd.f32 %v7049_v51, %v4113_v23 }
 0x824   : > { %v4154_v47 = vadd.f32 %v7049_v51, %v4116_v5 }
 0x825   : > { %4170 = vst.msk [vmem:[%s7056_s28 + $0x30] sm:$0xff] %vm4163_vm0, %v4153_v61 }
 0x826   : > { %4171 = vst.msk [vmem:[%s7056_s28 + $0x38] sm:$0xff] %vm4163_vm0, %v4154_v47  ;;  %v4250_v18 = vpop.xlane.xlu0 %4249 }
 0x827   : > { %v4253_v19 = vpop.xlane.xlu1 %4252  ;;  %v4284_v8 = vadd.f32 %v7049_v51, %v4250_v18 }
 0x828   : > { %v4285_v59 = vadd.f32 %v7049_v51, %v4253_v19 }
 0x829   : > { %4301 = vst.msk [vmem:[%s7056_s28 + $0x30] sm:$0xff] %vm4294_vm1, %v4284_v8 }
 0x82a   : > { %4302 = vst.msk [vmem:[%s7056_s28 + $0x38] sm:$0xff] %vm4294_vm1, %v4285_v59  ;;  %v4381_v50 = vpop.xlane.xlu0 %4380 }
 0x82b   : > { %v4384_v13 = vpop.xlane.xlu1 %4383  ;;  %v4415_v26 = vadd.f32 %v7049_v51, %v4381_v50 }
 0x82c   : > { %v4416_v15 = vadd.f32 %v7049_v51, %v4384_v13 }
 0x82d   : > { %4432 = vst.msk [vmem:[%s7056_s28 + $0x30] sm:$0xff] %vm4425_vm2, %v4415_v26 }
 0x82e   : > { %4433 = vst.msk [vmem:[%s7056_s28 + $0x38] sm:$0xff] %vm4425_vm2, %v4416_v15  ;;  %v4512_v48 = vpop.xlane.xlu0 %4511 }
 0x82f   : > { %v4515_v55 = vpop.xlane.xlu1 %4514  ;;  %v4546_v6 = vadd.f32 %v7049_v51, %v4512_v48 }
 0x830   : > { %v4547_v29 = vadd.f32 %v7049_v51, %v4515_v55 }
 0x831   : > { %4563 = vst.msk [vmem:[%s7056_s28 + $0x30] sm:$0xff] %vm4556_vm3, %v4546_v6 }
 0x832   : > { %4564 = vst.msk [vmem:[%s7056_s28 + $0x38] sm:$0xff] %vm4556_vm3, %v4547_v29 }
 0x834   : > { %v4119_v46 = vpop.xlane.xlu0 %4118 }
 0x835   : > { %v4155_v49 = vadd.f32 %v7049_v51, %v4119_v46 }
 0x836   : > { %v4122_v58 = vpop.xlane.xlu1 %4121 }
 0x837   : > { %4172 = vst.msk [vmem:[%s7056_s28 + $0x40] sm:$0xff] %vm4163_vm0, %v4155_v49  ;;  %v4156_v25 = vadd.f32 %v7049_v51, %v4122_v58 }
 0x838   : > { %v4256_v63 = vpop.xlane.xlu0 %4255 }
 0x839   : > { %4173 = vst.msk [vmem:[%s7056_s28 + $0x48] sm:$0xff] %vm4163_vm0, %v4156_v25  ;;  %v4286_v22 = vadd.f32 %v7049_v51, %v4256_v63 }
 0x83a   : > { %v4259_v30 = vpop.xlane.xlu1 %4258 }
 0x83b   : > { %4303 = vst.msk [vmem:[%s7056_s28 + $0x40] sm:$0xff] %vm4294_vm1, %v4286_v22  ;;  %v4287_v16 = vadd.f32 %v7049_v51, %v4259_v30 }
 0x83c   : > { %v4387_v44 = vpop.xlane.xlu0 %4386 }
 0x83d   : > { %4304 = vst.msk [vmem:[%s7056_s28 + $0x48] sm:$0xff] %vm4294_vm1, %v4287_v16  ;;  %v4417_v34 = vadd.f32 %v7049_v51, %v4387_v44 }
 0x83e   : > { %v4390_v17 = vpop.xlane.xlu1 %4389 }
 0x83f   : > { %4434 = vst.msk [vmem:[%s7056_s28 + $0x40] sm:$0xff] %vm4425_vm2, %v4417_v34  ;;  %v4418_v31 = vadd.f32 %v7049_v51, %v4390_v17 }
 0x840   : > { %v4518_v20 = vpop.xlane.xlu0 %4517 }
 0x841   : > { %4435 = vst.msk [vmem:[%s7056_s28 + $0x48] sm:$0xff] %vm4425_vm2, %v4418_v31  ;;  %v4548_v9 = vadd.f32 %v7049_v51, %v4518_v20 }
 0x842   : > { %v4521_v7 = vpop.xlane.xlu1 %4520 }
 0x843   : > { %4565 = vst.msk [vmem:[%s7056_s28 + $0x40] sm:$0xff] %vm4556_vm3, %v4548_v9  ;;  %v4549_v28 = vadd.f32 %v7049_v51, %v4521_v7 }
 0x845   : > { %4566 = vst.msk [vmem:[%s7056_s28 + $0x48] sm:$0xff] %vm4556_vm3, %v4549_v28 }
 0x847   : > { %v4125_v21 = vpop.xlane.xlu0 %4124 }
 0x848   : > { %v4157_v24 = vadd.f32 %v7049_v51, %v4125_v21 }
 0x849   : > { %v4128_v2 = vpop.xlane.xlu1 %4127 }
 0x84a   : > { %4174 = vst.msk [vmem:[%s7056_s28 + $0x50] sm:$0xff] %vm4163_vm0, %v4157_v24  ;;  %v4158_v60 = vadd.f32 %v7049_v51, %v4128_v2 }
 0x84b   : > { %v4262_v14 = vpop.xlane.xlu0 %4261 }
 0x84c   : > { %4175 = vst.msk [vmem:[%s7056_s28 + $0x58] sm:$0xff] %vm4163_vm0, %v4158_v60  ;;  %v4288_v56 = vadd.f32 %v7049_v51, %v4262_v14 }
 0x84d   : > { %v4265_v11 = vpop.xlane.xlu1 %4264 }
 0x84e   : > { %4305 = vst.msk [vmem:[%s7056_s28 + $0x50] sm:$0xff] %vm4294_vm1, %v4288_v56  ;;  %v4289_v39 = vadd.f32 %v7049_v51, %v4265_v11 }
 0x84f   : > { %v4393_v38 = vpop.xlane.xlu0 %4392 }
 0x850   : > { %4306 = vst.msk [vmem:[%s7056_s28 + $0x58] sm:$0xff] %vm4294_vm1, %v4289_v39  ;;  %v4419_v40 = vadd.f32 %v7049_v51, %v4393_v38 }
 0x851   : > { %v4396_v53 = vpop.xlane.xlu1 %4395 }
 0x852   : > { %4436 = vst.msk [vmem:[%s7056_s28 + $0x50] sm:$0xff] %vm4425_vm2, %v4419_v40  ;;  %v4420_v10 = vadd.f32 %v7049_v51, %v4396_v53 }
 0x853   : > { %v4524_v62 = vpop.xlane.xlu0 %4523 }
 0x854   : > { %4437 = vst.msk [vmem:[%s7056_s28 + $0x58] sm:$0xff] %vm4425_vm2, %v4420_v10  ;;  %v4550_v43 = vadd.f32 %v7049_v51, %v4524_v62 }
 0x855   : > { %v4527_v57 = vpop.xlane.xlu1 %4526 }
 0x856   : > { %4567 = vst.msk [vmem:[%s7056_s28 + $0x50] sm:$0xff] %vm4556_vm3, %v4550_v43  ;;  %v4551_v1 = vadd.f32 %v7049_v51, %v4527_v57 }
 0x858   : > { %4568 = vst.msk [vmem:[%s7056_s28 + $0x58] sm:$0xff] %vm4556_vm3, %v4551_v1 }
 0x85a   : > { %v4131_v0 = vpop.xlane.xlu0 %4130 }
 0x85b   : > { %v4159_v45 = vadd.f32 %v7049_v51, %v4131_v0 }
 0x85c   : > { %v4134_v27 = vpop.xlane.xlu1 %4133 }
 0x85d   : > { %4176 = vst.msk [vmem:[%s7056_s28 + $0x60] sm:$0xff] %vm4163_vm0, %v4159_v45  ;;  %v4160_v3 = vadd.f32 %v7049_v51, %v4134_v27 }
 0x85e   : > { %v4268_v32 = vpop.xlane.xlu0 %4267 }
 0x85f   : > { %4177 = vst.msk [vmem:[%s7056_s28 + $0x68] sm:$0xff] %vm4163_vm0, %v4160_v3  ;;  %v4290_v37 = vadd.f32 %v7049_v51, %v4268_v32 }
 0x860   : > { %v4271_v35 = vpop.xlane.xlu1 %4270 }
 0x861   : > { %4307 = vst.msk [vmem:[%s7056_s28 + $0x60] sm:$0xff] %vm4294_vm1, %v4290_v37  ;;  %v4291_v52 = vadd.f32 %v7049_v51, %v4271_v35 }
 0x862   : > { %v4399_v33 = vpop.xlane.xlu0 %4398 }
 0x863   : > { %4308 = vst.msk [vmem:[%s7056_s28 + $0x68] sm:$0xff] %vm4294_vm1, %v4291_v52  ;;  %v4421_v36 = vadd.f32 %v7049_v51, %v4399_v33 }
 0x864   : > { %v4402_v54 = vpop.xlane.xlu1 %4401 }
 0x865   : > { %4438 = vst.msk [vmem:[%s7056_s28 + $0x60] sm:$0xff] %vm4425_vm2, %v4421_v36  ;;  %v4422_v4 = vadd.f32 %v7049_v51, %v4402_v54 }
 0x866   : > { %v4530_v41 = vpop.xlane.xlu0 %4529 }
 0x867   : > { %4439 = vst.msk [vmem:[%s7056_s28 + $0x68] sm:$0xff] %vm4425_vm2, %v4422_v4  ;;  %v4552_v12 = vadd.f32 %v7049_v51, %v4530_v41 }
 0x868   : > { %v4533_v42 = vpop.xlane.xlu1 %4532 }
 0x869   : > { %4569 = vst.msk [vmem:[%s7056_s28 + $0x60] sm:$0xff] %vm4556_vm3, %v4552_v12  ;;  %v4553_v23 = vadd.f32 %v7049_v51, %v4533_v42 }
 0x86b   : > { %4570 = vst.msk [vmem:[%s7056_s28 + $0x68] sm:$0xff] %vm4556_vm3, %v4553_v23 }
 0x86d   : > { %v4137_v5 = vpop.xlane.xlu0 %4136 }
 0x86e   : > { %v4161_v61 = vadd.f32 %v7049_v51, %v4137_v5 }
 0x86f   : > { %v4140_v47 = vpop.xlane.xlu1 %4139 }
 0x870   : > { %4178 = vst.msk [vmem:[%s7056_s28 + $0x70] sm:$0xff] %vm4163_vm0, %v4161_v61  ;;  %v4162_v18 = vadd.f32 %v7049_v51, %v4140_v47 }
 0x871   : > { %v4274_v19 = vpop.xlane.xlu0 %4273 }
 0x872   : > { %4179 = vst.msk [vmem:[%s7056_s28 + $0x78] sm:$0xff] %vm4163_vm0, %v4162_v18  ;;  %v4292_v8 = vadd.f32 %v7049_v51, %v4274_v19 }
 0x873   : > { %v4277_v59 = vpop.xlane.xlu1 %4276 }
 0x874   : > { %4309 = vst.msk [vmem:[%s7056_s28 + $0x70] sm:$0xff] %vm4294_vm1, %v4292_v8  ;;  %v4293_v50 = vadd.f32 %v7049_v51, %v4277_v59 }
 0x875   : > { %v4405_v13 = vpop.xlane.xlu0 %4404 }
 0x876   : > { %4310 = vst.msk [vmem:[%s7056_s28 + $0x78] sm:$0xff] %vm4294_vm1, %v4293_v50  ;;  %v4423_v26 = vadd.f32 %v7049_v51, %v4405_v13 }
 0x877   : > { %v4408_v15 = vpop.xlane.xlu1 %4407 }
 0x878   : > { %4440 = vst.msk [vmem:[%s7056_s28 + $0x70] sm:$0xff] %vm4425_vm2, %v4423_v26  ;;  %v4424_v48 = vadd.f32 %v7049_v51, %v4408_v15 }
 0x879   : > { %v4536_v55 = vpop.xlane.xlu0 %4535 }
 0x87a   : > { %4441 = vst.msk [vmem:[%s7056_s28 + $0x78] sm:$0xff] %vm4425_vm2, %v4424_v48  ;;  %v4554_v6 = vadd.f32 %v7049_v51, %v4536_v55 }
 0x87b   : > { %v4539_v29 = vpop.xlane.xlu1 %4538 }
 0x87c   : > { %4571 = vst.msk [vmem:[%s7056_s28 + $0x70] sm:$0xff] %vm4556_vm3, %v4554_v6  ;;  %v4555_v46 = vadd.f32 %v7049_v51, %v4539_v29 }
 0x87e   : > { %4572 = vst.msk [vmem:[%s7056_s28 + $0x78] sm:$0xff] %vm4556_vm3, %v4555_v46 }
 0x87f PF: > { %s34_s1 = sadd.s32 1, %s5597_s1  }
 0x880   : > { %p31_p3 = scmp.ge.s32.totalorder %s34_s1, 5  }
 0x882   :  { %33 = sbr.rel (!%p31_p3) target bundleno = 15 (0xf), region = 155 }
 0x889   :  { %4595 = vsyncpa [#allocation3], 1 }
 0x88a   :  { %4597 = vsyncpa [#allocation3 + $0x1], 1 }
 0x88b   :  { %4598 = vsyncpa [#allocation5], 1 }
 0x88c   :  { %4599 = vsyncpa [#allocation8], 1 }
 0x88d   :  { %4600 = vsyncpa [#allocation11], 1 }

</bundles_post_ra>
